<compile_context>
chip_gen: v5e
topology: v5e:2x2
jax: 0.10.0
libtpu: 0.0.40
codegen_flags: <defaults>
</compile_context>

<pallas_src>
import functools

import jax
import jax.numpy as jnp
from jax.experimental import pallas as pl
from jax.experimental.pallas import tpu as pltpu

HIDDEN = 6          # hidden_size of Oli_Network_1
HID_PAD = 8         # padded hidden size (sublane aligned)
BN_EPS = 1e-5


# ----------------------------------------------------------------------------
# Fused kernel: 2 ConvLSTM layers (recurrence unrolled over T) + classifier
# (Conv2d 6->1 + BatchNorm2d(1, train-mode stats) + ReLU), single program.
# ----------------------------------------------------------------------------
def _fused_oli_kernel(x3_ref, wx3_ref, wh0_ref, wl1_ref, wcls_ref, o_ref, *,
                      seq_len, width):
    T, W = seq_len, width
    TW = T * W
    hp = HID_PAD
    f32 = jnp.float32
    bf16 = jnp.bfloat16

    wx3 = wx3_ref[...]      # (4*hp, 3)      bf16  layer-0 x-tap weights
    wh0 = wh0_ref[...]      # (4*hp, 3*hp)   bf16  layer-0 h-tap weights
    wl1 = wl1_ref[...]      # (4*hp, 6*hp)   bf16  layer-1 [h0; h1]-tap weights
    wcls = wcls_ref[...]    # (1, 3*hp)      bf16  classifier tap weights

    # Non-recurrent x contribution for ALL timesteps: one lane-dense N=T*W matmul.
    gates_x = jnp.dot(wx3, x3_ref[...], preferred_element_type=f32)   # (4*hp, T*W) f32

    # Hoisted constants (JAX does not CSE zeros/broadcasts inside the loop).
    zc1 = jnp.zeros((hp, 1), f32)
    zc2 = jnp.zeros((2 * hp, 1), f32)

    def shift3(a, zc):
        # Width-3 conv taps [a[x-1]; a[x]; a[x+1]] with zero edge padding.
        # These blocks are only W(=16) lanes wide, so lane-aligned pltpu.roll does not
        # apply; the tiny slices stay in-vreg.  Cast to bf16 for the MXU.
        left = jnp.concatenate([zc, a[:, :-1]], axis=1)
        right = jnp.concatenate([a[:, 1:], zc], axis=1)
        return jnp.concatenate([left, a, right], axis=0).astype(bf16)

    def cell(w3, taps, c_prev, gx=None):
        # One MXU matmul per cell (bf16 operands, f32 accumulate).
        gates = jnp.dot(w3, taps, preferred_element_type=f32)          # (4*hp, W)
        if gx is not None:
            gates = gx + gates      # v7x: add folds into the MRB pop path
        # torch.split order is (i, f, o, g): fuse sigmoid over the 24 i|f|o rows.
        sig = jax.nn.sigmoid(gates[:3 * hp])
        g = jnp.tanh(gates[3 * hp:])
        i, f, o = sig[:hp], sig[hp:2 * hp], sig[2 * hp:]
        c_next = f * c_prev + i * g
        h_next = o * jnp.tanh(c_next)
        return h_next, c_next

    h0 = jnp.zeros((hp, W), f32)
    c0 = jnp.zeros((hp, W), f32)
    h1 = jnp.zeros((hp, W), f32)
    c1 = jnp.zeros((hp, W), f32)

    # Padded hidden rows stay exactly zero: their weights are zero-padded, so their gates
    # are 0 -> i=f=o=0.5, g=0 -> c stays 0 (c is zero-initialized), h stays 0.
    h1_steps = []
    # T is small (8): fully unrolled.
    # TODO(synk): switch to lax.fori_loop with a VMEM scratch for h1 if T grows past ~32.
    for t in range(T):
        gx_t = gates_x[:, t * W:(t + 1) * W]                           # static slice
        h0, c0 = cell(wh0, shift3(h0, zc1), c0, gx=gx_t)               # layer 0
        comb = jnp.concatenate([h0, h1], axis=0)                       # (2*hp, W)
        h1, c1 = cell(wl1, shift3(comb, zc2), c1)                      # layer 1
        h1_steps.append(h1)

    H1 = jnp.concatenate(h1_steps, axis=1)                             # (hp, T*W) f32

    # Classifier Conv2d(6->1, k=3, pad=1, bias=False) over ALL timesteps in one matmul.
    # Taps via XLU roll on the full-128-lane slab; per-frame edges masked so no leakage
    # between timesteps (each timestep is an independent H=1 image of width W).
    col = jax.lax.broadcasted_iota(jnp.int32, (hp, TW), 1)
    frame_pos = col % W
    h_left = jnp.where(frame_pos == 0, 0.0, pltpu.roll(H1, 1, 1))        # H1[:, x-1]
    h_right = jnp.where(frame_pos == W - 1, 0.0, pltpu.roll(H1, TW - 1, 1))  # H1[:, x+1]
    taps_cls = jnp.concatenate([h_left, H1, h_right], axis=0).astype(bf16)   # (3*hp, TW)
    conv = jnp.dot(wcls, taps_cls, preferred_element_type=f32)          # (1, TW)

    # BatchNorm2d(1): fresh module in train() mode -> batch statistics over N*H*W,
    # gamma = 1, beta = 0, biased variance.  (If the reference module were run in eval()
    # with default running stats it would be conv / sqrt(1 + eps) instead.)  Then ReLU.
    mean = jnp.mean(conv)
    var = jnp.mean((conv - mean) ** 2)
    y = (conv - mean) * jax.lax.rsqrt(var + BN_EPS)
    o_ref[...] = jnp.maximum(y, 0.0)                                    # lane-dense store


# ----------------------------------------------------------------------------
# Host-side (traced JAX) weight / input preparation: extract the middle kernel row
# (H == 1), pad hidden 6 -> 8, stack the three width taps, cast to bf16.
# ----------------------------------------------------------------------------
def _prep_x_taps(x):
    """x: (T, W) f32 -> (3, T*W) bf16 rows = [x[t,w-1], x[t,w], x[t,w+1]] (zero edges)."""
    T, W = x.shape
    zc = jnp.zeros((T, 1), x.dtype)
    xl = jnp.concatenate([zc, x[:, :-1]], axis=1)
    xr = jnp.concatenate([x[:, 1:], zc], axis=1)
    x3 = jnp.stack([xl.reshape(-1), x.reshape(-1), xr.reshape(-1)], axis=0)
    return x3.astype(jnp.bfloat16)


def _prep_lstm_weight_l0(w):
    """w: (4*HIDDEN, 1+HIDDEN, 3, 3) -> (wx3 (32,3), wh3 (32,24)) both bf16."""
    w_mid = w[:, :, 1, :]                                            # ky == 1 only
    w_g = w_mid.reshape(4, HIDDEN, 1 + HIDDEN, 3)
    w_g = jnp.pad(w_g, ((0, 0), (0, HID_PAD - HIDDEN), (0, 0), (0, 0)))
    w_g = w_g.reshape(4 * HID_PAD, 1 + HIDDEN, 3)                    # (32, 7, 3)
    wx3 = w_g[:, 0, :]                                               # (32, 3) x taps
    wh = jnp.pad(w_g[:, 1:, :], ((0, 0), (0, HID_PAD - HIDDEN), (0, 0)))  # (32, 8, 3)
    wh3 = jnp.concatenate([wh[:, :, 0], wh[:, :, 1], wh[:, :, 2]], axis=1)  # (32, 24)
    return wx3.astype(jnp.bfloat16), wh3.astype(jnp.bfloat16)


def _prep_lstm_weight_l1(w):
    """w: (4*HIDDEN, 2*HIDDEN, 3, 3) -> (32, 48) bf16 for the [h0; h1]-stacked RHS."""
    w_mid = w[:, :, 1, :]
    w_g = w_mid.reshape(4, HIDDEN, 2 * HIDDEN, 3)
    w_g = jnp.pad(w_g, ((0, 0), (0, HID_PAD - HIDDEN), (0, 0), (0, 0)))
    w_g = w_g.reshape(4 * HID_PAD, 2 * HIDDEN, 3)                    # (32, 12, 3)
    w_h0 = jnp.pad(w_g[:, :HIDDEN, :], ((0, 0), (0, HID_PAD - HIDDEN), (0, 0)))
    w_h1 = jnp.pad(w_g[:, HIDDEN:, :], ((0, 0), (0, HID_PAD - HIDDEN), (0, 0)))
    w_p = jnp.concatenate([w_h0, w_h1], axis=1)                      # (32, 16, 3)
    w3 = jnp.concatenate([w_p[:, :, 0], w_p[:, :, 1], w_p[:, :, 2]], axis=1)  # (32, 48)
    return w3.astype(jnp.bfloat16)


def _prep_cls_weight(w):
    """w: (1, HIDDEN, 3, 3) -> (1, 24) bf16 = [left taps | center taps | right taps]."""
    w_mid = w[0, :, 1, :]                                            # (6, 3)
    w_mid = jnp.pad(w_mid, ((0, HID_PAD - HIDDEN), (0, 0)))          # (8, 3)
    w3 = jnp.concatenate([w_mid[:, 0], w_mid[:, 1], w_mid[:, 2]], axis=0)[None, :]
    return w3.astype(jnp.bfloat16)


# ----------------------------------------------------------------------------
# Full Oli_Network_1 forward.
# ----------------------------------------------------------------------------
def oli_network_1(weight_avg, params):
    W = weight_avg.shape[-1]
    # weight_avg.view(-1, 1, 1, 1, W): T frames, batch=1, C=1, H=1  ->  (T, W)
    x = weight_avg.reshape(-1, W).astype(jnp.float32)
    T = x.shape[0]

    x3 = _prep_x_taps(x)
    wx3, wh0 = _prep_lstm_weight_l0(params["lstm0_w"])
    wl1 = _prep_lstm_weight_l1(params["lstm1_w"])
    wcls = _prep_cls_weight(params["cls_w"])

    vmem = pl.BlockSpec(memory_space=pltpu.MemorySpace.VMEM)
    kernel = functools.partial(_fused_oli_kernel, seq_len=T, width=W)
    # Gridless single program: whole working set is a few KB, so no tiling / pipelining
    # needed on any generation (v5e/v6e/v7x).  On v7x one TC is idle by construction;
    # only worth a parallel grid split over W if W grows to hundreds of lanes.
    out = pl.pallas_call(
        kernel,
        out_shape=jax.ShapeDtypeStruct((1, T * W), jnp.float32),     # lane-dense output
        in_specs=[vmem, vmem, vmem, vmem, vmem],
        out_specs=vmem,
    )(x3, wx3, wh0, wl1, wcls)
    return out.reshape(T, W)


if __name__ == "__main__":
    key = jax.random.PRNGKey(0)
    k_in, k_w0, k_w1, k_wc = jax.random.split(key, 4)

    W = 16
    weight_avg = jax.random.normal(k_in, (2, 4, W), dtype=jnp.float32)   # view -> T = 8

    # Deterministic synthetic parameters (shapes from the module __init__):
    #   ConvLSTMCell conv weights (bias=False): (4*Hd, C_in+Hd, 3, 3)
    #   Classifier conv weight   (bias=False): (1, Hd, 3, 3)
    params = {
        "lstm0_w": 0.3 * jax.random.normal(k_w0, (4 * HIDDEN, 1 + HIDDEN, 3, 3),
                                           dtype=jnp.float32),
        "lstm1_w": 0.3 * jax.random.normal(k_w1, (4 * HIDDEN, 2 * HIDDEN, 3, 3),
                                           dtype=jnp.float32),
        "cls_w": 0.3 * jax.random.normal(k_wc, (1, HIDDEN, 3, 3), dtype=jnp.float32),
    }

    out = oli_network_1(weight_avg, params)
    out = jax.block_until_ready(out)
    assert out.shape == (8, W), out.shape
    assert bool(jnp.all(jnp.isfinite(out)))
    print("KERNEL_OK")
</pallas_src>

<mosaic_0001>
module attributes {stable_mosaic.version = 11 : i64} {
  func.func @_fused_oli_kernel(%arg0: memref<3x128xbf16, #tpu.memory_space<vmem>>, %arg1: memref<32x3xbf16, #tpu.memory_space<vmem>>, %arg2: memref<32x24xbf16, #tpu.memory_space<vmem>>, %arg3: memref<32x48xbf16, #tpu.memory_space<vmem>>, %arg4: memref<1x24xbf16, #tpu.memory_space<vmem>>, %arg5: memref<1x128xf32, #tpu.memory_space<vmem>>) attributes {dimension_semantics = [], scalar_prefetch = 0 : i64, scratch_operands = 0 : i64, tpu.core_type = #tpu.core_type<tc>} {
    %c0 = arith.constant 0 : index
    %c0_0 = arith.constant 0 : index
    %0 = vector.load %arg1[%c0, %c0_0] : memref<32x3xbf16, #tpu.memory_space<vmem>>, vector<32x3xbf16>
    %c0_1 = arith.constant 0 : index
    %c0_2 = arith.constant 0 : index
    %1 = vector.load %arg2[%c0_1, %c0_2] : memref<32x24xbf16, #tpu.memory_space<vmem>>, vector<32x24xbf16>
    %c0_3 = arith.constant 0 : index
    %c0_4 = arith.constant 0 : index
    %2 = vector.load %arg3[%c0_3, %c0_4] : memref<32x48xbf16, #tpu.memory_space<vmem>>, vector<32x48xbf16>
    %c0_5 = arith.constant 0 : index
    %c0_6 = arith.constant 0 : index
    %3 = vector.load %arg4[%c0_5, %c0_6] : memref<1x24xbf16, #tpu.memory_space<vmem>>, vector<1x24xbf16>
    %c0_7 = arith.constant 0 : index
    %c0_8 = arith.constant 0 : index
    %4 = vector.load %arg0[%c0_7, %c0_8] : memref<3x128xbf16, #tpu.memory_space<vmem>>, vector<3x128xbf16>
    %cst = arith.constant dense<0.000000e+00> : vector<32x128xf32>
    %5 = tpu.matmul %0, %4, %cst {dimension_numbers = #tpu.dot_dimension_numbers<[1], [0], [0], [1], [0, 0, 1, 1], [], []>} : vector<32x3xbf16>, vector<3x128xbf16>, vector<32x128xf32> -> vector<32x128xf32>
    %cst_9 = arith.constant 0.000000e+00 : f32
    %6 = vector.broadcast %cst_9 : f32 to vector<8x1xf32>
    %cst_10 = arith.constant 0.000000e+00 : f32
    %7 = vector.broadcast %cst_10 : f32 to vector<16x1xf32>
    %cst_11 = arith.constant 0.000000e+00 : f32
    %8 = vector.broadcast %cst_11 : f32 to vector<8x16xf32>
    %cst_12 = arith.constant 0.000000e+00 : f32
    %9 = vector.broadcast %cst_12 : f32 to vector<8x16xf32>
    %cst_13 = arith.constant 0.000000e+00 : f32
    %10 = vector.broadcast %cst_13 : f32 to vector<8x16xf32>
    %cst_14 = arith.constant 0.000000e+00 : f32
    %11 = vector.broadcast %cst_14 : f32 to vector<8x16xf32>
    %12 = vector.extract_strided_slice %5 {offsets = [0, 0], sizes = [32, 16], strides = [1, 1]} : vector<32x128xf32> to vector<32x16xf32>
    %13 = vector.extract_strided_slice %8 {offsets = [0, 0], sizes = [8, 15], strides = [1, 1]} : vector<8x16xf32> to vector<8x15xf32>
    %14 = tpu.concatenate %6, %13 in 1 : vector<8x1xf32>, vector<8x15xf32> -> vector<8x16xf32>
    %15 = vector.extract_strided_slice %8 {offsets = [0, 1], sizes = [8, 15], strides = [1, 1]} : vector<8x16xf32> to vector<8x15xf32>
    %16 = tpu.concatenate %15, %6 in 1 : vector<8x15xf32>, vector<8x1xf32> -> vector<8x16xf32>
    %17 = tpu.concatenate %14, %8, %16 in 0 : vector<8x16xf32>, vector<8x16xf32>, vector<8x16xf32> -> vector<24x16xf32>
    %18 = arith.truncf %17 : vector<24x16xf32> to vector<24x16xbf16>
    %cst_15 = arith.constant dense<0.000000e+00> : vector<32x16xf32>
    %19 = tpu.matmul %1, %18, %cst_15 {dimension_numbers = #tpu.dot_dimension_numbers<[1], [0], [0], [1], [0, 0, 1, 1], [], []>} : vector<32x24xbf16>, vector<24x16xbf16>, vector<32x16xf32> -> vector<32x16xf32>
    %20 = arith.addf %12, %19 : vector<32x16xf32>
    %21 = vector.extract_strided_slice %20 {offsets = [0, 0], sizes = [24, 16], strides = [1, 1]} : vector<32x16xf32> to vector<24x16xf32>
    %22 = arith.negf %21 : vector<24x16xf32>
    %23 = math.exp %22 : vector<24x16xf32>
    %cst_16 = arith.constant 1.000000e+00 : f32
    %24 = vector.broadcast %cst_16 : f32 to vector<24x16xf32>
    %25 = arith.addf %24, %23 : vector<24x16xf32>
    %26 = arith.divf %24, %25 : vector<24x16xf32>
    %27 = vector.extract_strided_slice %20 {offsets = [24, 0], sizes = [8, 16], strides = [1, 1]} : vector<32x16xf32> to vector<8x16xf32>
    %28 = math.tanh %27 : vector<8x16xf32>
    %29 = vector.extract_strided_slice %26 {offsets = [0, 0], sizes = [8, 16], strides = [1, 1]} : vector<24x16xf32> to vector<8x16xf32>
    %30 = vector.extract_strided_slice %26 {offsets = [8, 0], sizes = [8, 16], strides = [1, 1]} : vector<24x16xf32> to vector<8x16xf32>
    %31 = vector.extract_strided_slice %26 {offsets = [16, 0], sizes = [8, 16], strides = [1, 1]} : vector<24x16xf32> to vector<8x16xf32>
    %32 = arith.mulf %30, %9 : vector<8x16xf32>
    %33 = arith.mulf %29, %28 : vector<8x16xf32>
    %34 = arith.addf %32, %33 : vector<8x16xf32>
    %35 = math.tanh %34 : vector<8x16xf32>
    %36 = arith.mulf %31, %35 : vector<8x16xf32>
    %37 = tpu.concatenate %36, %10 in 0 : vector<8x16xf32>, vector<8x16xf32> -> vector<16x16xf32>
    %38 = vector.extract_strided_slice %37 {offsets = [0, 0], sizes = [16, 15], strides = [1, 1]} : vector<16x16xf32> to vector<16x15xf32>
    %39 = tpu.concatenate %7, %38 in 1 : vector<16x1xf32>, vector<16x15xf32> -> vector<16x16xf32>
    %40 = vector.extract_strided_slice %37 {offsets = [0, 1], sizes = [16, 15], strides = [1, 1]} : vector<16x16xf32> to vector<16x15xf32>
    %41 = tpu.concatenate %40, %7 in 1 : vector<16x15xf32>, vector<16x1xf32> -> vector<16x16xf32>
    %42 = tpu.concatenate %39, %37, %41 in 0 : vector<16x16xf32>, vector<16x16xf32>, vector<16x16xf32> -> vector<48x16xf32>
    %43 = arith.truncf %42 : vector<48x16xf32> to vector<48x16xbf16>
    %cst_17 = arith.constant dense<0.000000e+00> : vector<32x16xf32>
    %44 = tpu.matmul %2, %43, %cst_17 {dimension_numbers = #tpu.dot_dimension_numbers<[1], [0], [0], [1], [0, 0, 1, 1], [], []>} : vector<32x48xbf16>, vector<48x16xbf16>, vector<32x16xf32> -> vector<32x16xf32>
    %45 = vector.extract_strided_slice %44 {offsets = [0, 0], sizes = [24, 16], strides = [1, 1]} : vector<32x16xf32> to vector<24x16xf32>
    %46 = arith.negf %45 : vector<24x16xf32>
    %47 = math.exp %46 : vector<24x16xf32>
    %cst_18 = arith.constant 1.000000e+00 : f32
    %48 = vector.broadcast %cst_18 : f32 to vector<24x16xf32>
    %49 = arith.addf %48, %47 : vector<24x16xf32>
    %50 = arith.divf %48, %49 : vector<24x16xf32>
    %51 = vector.extract_strided_slice %44 {offsets = [24, 0], sizes = [8, 16], strides = [1, 1]} : vector<32x16xf32> to vector<8x16xf32>
    %52 = math.tanh %51 : vector<8x16xf32>
    %53 = vector.extract_strided_slice %50 {offsets = [0, 0], sizes = [8, 16], strides = [1, 1]} : vector<24x16xf32> to vector<8x16xf32>
    %54 = vector.extract_strided_slice %50 {offsets = [8, 0], sizes = [8, 16], strides = [1, 1]} : vector<24x16xf32> to vector<8x16xf32>
    %55 = vector.extract_strided_slice %50 {offsets = [16, 0], sizes = [8, 16], strides = [1, 1]} : vector<24x16xf32> to vector<8x16xf32>
    %56 = arith.mulf %54, %11 : vector<8x16xf32>
    %57 = arith.mulf %53, %52 : vector<8x16xf32>
    %58 = arith.addf %56, %57 : vector<8x16xf32>
    %59 = math.tanh %58 : vector<8x16xf32>
    %60 = arith.mulf %55, %59 : vector<8x16xf32>
    %61 = vector.extract_strided_slice %5 {offsets = [0, 16], sizes = [32, 16], strides = [1, 1]} : vector<32x128xf32> to vector<32x16xf32>
    %62 = vector.extract_strided_slice %36 {offsets = [0, 0], sizes = [8, 15], strides = [1, 1]} : vector<8x16xf32> to vector<8x15xf32>
    %63 = tpu.concatenate %6, %62 in 1 : vector<8x1xf32>, vector<8x15xf32> -> vector<8x16xf32>
    %64 = vector.extract_strided_slice %36 {offsets = [0, 1], sizes = [8, 15], strides = [1, 1]} : vector<8x16xf32> to vector<8x15xf32>
    %65 = tpu.concatenate %64, %6 in 1 : vector<8x15xf32>, vector<8x1xf32> -> vector<8x16xf32>
    %66 = tpu.concatenate %63, %36, %65 in 0 : vector<8x16xf32>, vector<8x16xf32>, vector<8x16xf32> -> vector<24x16xf32>
    %67 = arith.truncf %66 : vector<24x16xf32> to vector<24x16xbf16>
    %cst_19 = arith.constant dense<0.000000e+00> : vector<32x16xf32>
    %68 = tpu.matmul %1, %67, %cst_19 {dimension_numbers = #tpu.dot_dimension_numbers<[1], [0], [0], [1], [0, 0, 1, 1], [], []>} : vector<32x24xbf16>, vector<24x16xbf16>, vector<32x16xf32> -> vector<32x16xf32>
    %69 = arith.addf %61, %68 : vector<32x16xf32>
    %70 = vector.extract_strided_slice %69 {offsets = [0, 0], sizes = [24, 16], strides = [1, 1]} : vector<32x16xf32> to vector<24x16xf32>
    %71 = arith.negf %70 : vector<24x16xf32>
    %72 = math.exp %71 : vector<24x16xf32>
    %cst_20 = arith.constant 1.000000e+00 : f32
    %73 = vector.broadcast %cst_20 : f32 to vector<24x16xf32>
    %74 = arith.addf %73, %72 : vector<24x16xf32>
    %75 = arith.divf %73, %74 : vector<24x16xf32>
    %76 = vector.extract_strided_slice %69 {offsets = [24, 0], sizes = [8, 16], strides = [1, 1]} : vector<32x16xf32> to vector<8x16xf32>
    %77 = math.tanh %76 : vector<8x16xf32>
    %78 = vector.extract_strided_slice %75 {offsets = [0, 0], sizes = [8, 16], strides = [1, 1]} : vector<24x16xf32> to vector<8x16xf32>
    %79 = vector.extract_strided_slice %75 {offsets = [8, 0], sizes = [8, 16], strides = [1, 1]} : vector<24x16xf32> to vector<8x16xf32>
    %80 = vector.extract_strided_slice %75 {offsets = [16, 0], sizes = [8, 16], strides = [1, 1]} : vector<24x16xf32> to vector<8x16xf32>
    %81 = arith.mulf %79, %34 : vector<8x16xf32>
    %82 = arith.mulf %78, %77 : vector<8x16xf32>
    %83 = arith.addf %81, %82 : vector<8x16xf32>
    %84 = math.tanh %83 : vector<8x16xf32>
    %85 = arith.mulf %80, %84 : vector<8x16xf32>
    %86 = tpu.concatenate %85, %60 in 0 : vector<8x16xf32>, vector<8x16xf32> -> vector<16x16xf32>
    %87 = vector.extract_strided_slice %86 {offsets = [0, 0], sizes = [16, 15], strides = [1, 1]} : vector<16x16xf32> to vector<16x15xf32>
    %88 = tpu.concatenate %7, %87 in 1 : vector<16x1xf32>, vector<16x15xf32> -> vector<16x16xf32>
    %89 = vector.extract_strided_slice %86 {offsets = [0, 1], sizes = [16, 15], strides = [1, 1]} : vector<16x16xf32> to vector<16x15xf32>
    %90 = tpu.concatenate %89, %7 in 1 : vector<16x15xf32>, vector<16x1xf32> -> vector<16x16xf32>
    %91 = tpu.concatenate %88, %86, %90 in 0 : vector<16x16xf32>, vector<16x16xf32>, vector<16x16xf32> -> vector<48x16xf32>
    %92 = arith.truncf %91 : vector<48x16xf32> to vector<48x16xbf16>
    %cst_21 = arith.constant dense<0.000000e+00> : vector<32x16xf32>
    %93 = tpu.matmul %2, %92, %cst_21 {dimension_numbers = #tpu.dot_dimension_numbers<[1], [0], [0], [1], [0, 0, 1, 1], [], []>} : vector<32x48xbf16>, vector<48x16xbf16>, vector<32x16xf32> -> vector<32x16xf32>
    %94 = vector.extract_strided_slice %93 {offsets = [0, 0], sizes = [24, 16], strides = [1, 1]} : vector<32x16xf32> to vector<24x16xf32>
    %95 = arith.negf %94 : vector<24x16xf32>
    %96 = math.exp %95 : vector<24x16xf32>
    %cst_22 = arith.constant 1.000000e+00 : f32
    %97 = vector.broadcast %cst_22 : f32 to vector<24x16xf32>
    %98 = arith.addf %97, %96 : vector<24x16xf32>
    %99 = arith.divf %97, %98 : vector<24x16xf32>
    %100 = vector.extract_strided_slice %93 {offsets = [24, 0], sizes = [8, 16], strides = [1, 1]} : vector<32x16xf32> to vector<8x16xf32>
    %101 = math.tanh %100 : vector<8x16xf32>
    %102 = vector.extract_strided_slice %99 {offsets = [0, 0], sizes = [8, 16], strides = [1, 1]} : vector<24x16xf32> to vector<8x16xf32>
    %103 = vector.extract_strided_slice %99 {offsets = [8, 0], sizes = [8, 16], strides = [1, 1]} : vector<24x16xf32> to vector<8x16xf32>
    %104 = vector.extract_strided_slice %99 {offsets = [16, 0], sizes = [8, 16], strides = [1, 1]} : vector<24x16xf32> to vector<8x16xf32>
    %105 = arith.mulf %103, %58 : vector<8x16xf32>
    %106 = arith.mulf %102, %101 : vector<8x16xf32>
    %107 = arith.addf %105, %106 : vector<8x16xf32>
    %108 = math.tanh %107 : vector<8x16xf32>
    %109 = arith.mulf %104, %108 : vector<8x16xf32>
    %110 = vector.extract_strided_slice %5 {offsets = [0, 32], sizes = [32, 16], strides = [1, 1]} : vector<32x128xf32> to vector<32x16xf32>
    %111 = vector.extract_strided_slice %85 {offsets = [0, 0], sizes = [8, 15], strides = [1, 1]} : vector<8x16xf32> to vector<8x15xf32>
    %112 = tpu.concatenate %6, %111 in 1 : vector<8x1xf32>, vector<8x15xf32> -> vector<8x16xf32>
    %113 = vector.extract_strided_slice %85 {offsets = [0, 1], sizes = [8, 15], strides = [1, 1]} : vector<8x16xf32> to vector<8x15xf32>
    %114 = tpu.concatenate %113, %6 in 1 : vector<8x15xf32>, vector<8x1xf32> -> vector<8x16xf32>
    %115 = tpu.concatenate %112, %85, %114 in 0 : vector<8x16xf32>, vector<8x16xf32>, vector<8x16xf32> -> vector<24x16xf32>
    %116 = arith.truncf %115 : vector<24x16xf32> to vector<24x16xbf16>
    %cst_23 = arith.constant dense<0.000000e+00> : vector<32x16xf32>
    %117 = tpu.matmul %1, %116, %cst_23 {dimension_numbers = #tpu.dot_dimension_numbers<[1], [0], [0], [1], [0, 0, 1, 1], [], []>} : vector<32x24xbf16>, vector<24x16xbf16>, vector<32x16xf32> -> vector<32x16xf32>
    %118 = arith.addf %110, %117 : vector<32x16xf32>
    %119 = vector.extract_strided_slice %118 {offsets = [0, 0], sizes = [24, 16], strides = [1, 1]} : vector<32x16xf32> to vector<24x16xf32>
    %120 = arith.negf %119 : vector<24x16xf32>
    %121 = math.exp %120 : vector<24x16xf32>
    %cst_24 = arith.constant 1.000000e+00 : f32
    %122 = vector.broadcast %cst_24 : f32 to vector<24x16xf32>
    %123 = arith.addf %122, %121 : vector<24x16xf32>
    %124 = arith.divf %122, %123 : vector<24x16xf32>
    %125 = vector.extract_strided_slice %118 {offsets = [24, 0], sizes = [8, 16], strides = [1, 1]} : vector<32x16xf32> to vector<8x16xf32>
    %126 = math.tanh %125 : vector<8x16xf32>
    %127 = vector.extract_strided_slice %124 {offsets = [0, 0], sizes = [8, 16], strides = [1, 1]} : vector<24x16xf32> to vector<8x16xf32>
    %128 = vector.extract_strided_slice %124 {offsets = [8, 0], sizes = [8, 16], strides = [1, 1]} : vector<24x16xf32> to vector<8x16xf32>
    %129 = vector.extract_strided_slice %124 {offsets = [16, 0], sizes = [8, 16], strides = [1, 1]} : vector<24x16xf32> to vector<8x16xf32>
    %130 = arith.mulf %128, %83 : vector<8x16xf32>
    %131 = arith.mulf %127, %126 : vector<8x16xf32>
    %132 = arith.addf %130, %131 : vector<8x16xf32>
    %133 = math.tanh %132 : vector<8x16xf32>
    %134 = arith.mulf %129, %133 : vector<8x16xf32>
    %135 = tpu.concatenate %134, %109 in 0 : vector<8x16xf32>, vector<8x16xf32> -> vector<16x16xf32>
    %136 = vector.extract_strided_slice %135 {offsets = [0, 0], sizes = [16, 15], strides = [1, 1]} : vector<16x16xf32> to vector<16x15xf32>
    %137 = tpu.concatenate %7, %136 in 1 : vector<16x1xf32>, vector<16x15xf32> -> vector<16x16xf32>
    %138 = vector.extract_strided_slice %135 {offsets = [0, 1], sizes = [16, 15], strides = [1, 1]} : vector<16x16xf32> to vector<16x15xf32>
    %139 = tpu.concatenate %138, %7 in 1 : vector<16x15xf32>, vector<16x1xf32> -> vector<16x16xf32>
    %140 = tpu.concatenate %137, %135, %139 in 0 : vector<16x16xf32>, vector<16x16xf32>, vector<16x16xf32> -> vector<48x16xf32>
    %141 = arith.truncf %140 : vector<48x16xf32> to vector<48x16xbf16>
    %cst_25 = arith.constant dense<0.000000e+00> : vector<32x16xf32>
    %142 = tpu.matmul %2, %141, %cst_25 {dimension_numbers = #tpu.dot_dimension_numbers<[1], [0], [0], [1], [0, 0, 1, 1], [], []>} : vector<32x48xbf16>, vector<48x16xbf16>, vector<32x16xf32> -> vector<32x16xf32>
    %143 = vector.extract_strided_slice %142 {offsets = [0, 0], sizes = [24, 16], strides = [1, 1]} : vector<32x16xf32> to vector<24x16xf32>
    %144 = arith.negf %143 : vector<24x16xf32>
    %145 = math.exp %144 : vector<24x16xf32>
    %cst_26 = arith.constant 1.000000e+00 : f32
    %146 = vector.broadcast %cst_26 : f32 to vector<24x16xf32>
    %147 = arith.addf %146, %145 : vector<24x16xf32>
    %148 = arith.divf %146, %147 : vector<24x16xf32>
    %149 = vector.extract_strided_slice %142 {offsets = [24, 0], sizes = [8, 16], strides = [1, 1]} : vector<32x16xf32> to vector<8x16xf32>
    %150 = math.tanh %149 : vector<8x16xf32>
    %151 = vector.extract_strided_slice %148 {offsets = [0, 0], sizes = [8, 16], strides = [1, 1]} : vector<24x16xf32> to vector<8x16xf32>
    %152 = vector.extract_strided_slice %148 {offsets = [8, 0], sizes = [8, 16], strides = [1, 1]} : vector<24x16xf32> to vector<8x16xf32>
    %153 = vector.extract_strided_slice %148 {offsets = [16, 0], sizes = [8, 16], strides = [1, 1]} : vector<24x16xf32> to vector<8x16xf32>
    %154 = arith.mulf %152, %107 : vector<8x16xf32>
    %155 = arith.mulf %151, %150 : vector<8x16xf32>
    %156 = arith.addf %154, %155 : vector<8x16xf32>
    %157 = math.tanh %156 : vector<8x16xf32>
    %158 = arith.mulf %153, %157 : vector<8x16xf32>
    %159 = vector.extract_strided_slice %5 {offsets = [0, 48], sizes = [32, 16], strides = [1, 1]} : vector<32x128xf32> to vector<32x16xf32>
    %160 = vector.extract_strided_slice %134 {offsets = [0, 0], sizes = [8, 15], strides = [1, 1]} : vector<8x16xf32> to vector<8x15xf32>
    %161 = tpu.concatenate %6, %160 in 1 : vector<8x1xf32>, vector<8x15xf32> -> vector<8x16xf32>
    %162 = vector.extract_strided_slice %134 {offsets = [0, 1], sizes = [8, 15], strides = [1, 1]} : vector<8x16xf32> to vector<8x15xf32>
    %163 = tpu.concatenate %162, %6 in 1 : vector<8x15xf32>, vector<8x1xf32> -> vector<8x16xf32>
    %164 = tpu.concatenate %161, %134, %163 in 0 : vector<8x16xf32>, vector<8x16xf32>, vector<8x16xf32> -> vector<24x16xf32>
    %165 = arith.truncf %164 : vector<24x16xf32> to vector<24x16xbf16>
    %cst_27 = arith.constant dense<0.000000e+00> : vector<32x16xf32>
    %166 = tpu.matmul %1, %165, %cst_27 {dimension_numbers = #tpu.dot_dimension_numbers<[1], [0], [0], [1], [0, 0, 1, 1], [], []>} : vector<32x24xbf16>, vector<24x16xbf16>, vector<32x16xf32> -> vector<32x16xf32>
    %167 = arith.addf %159, %166 : vector<32x16xf32>
    %168 = vector.extract_strided_slice %167 {offsets = [0, 0], sizes = [24, 16], strides = [1, 1]} : vector<32x16xf32> to vector<24x16xf32>
    %169 = arith.negf %168 : vector<24x16xf32>
    %170 = math.exp %169 : vector<24x16xf32>
    %cst_28 = arith.constant 1.000000e+00 : f32
    %171 = vector.broadcast %cst_28 : f32 to vector<24x16xf32>
    %172 = arith.addf %171, %170 : vector<24x16xf32>
    %173 = arith.divf %171, %172 : vector<24x16xf32>
    %174 = vector.extract_strided_slice %167 {offsets = [24, 0], sizes = [8, 16], strides = [1, 1]} : vector<32x16xf32> to vector<8x16xf32>
    %175 = math.tanh %174 : vector<8x16xf32>
    %176 = vector.extract_strided_slice %173 {offsets = [0, 0], sizes = [8, 16], strides = [1, 1]} : vector<24x16xf32> to vector<8x16xf32>
    %177 = vector.extract_strided_slice %173 {offsets = [8, 0], sizes = [8, 16], strides = [1, 1]} : vector<24x16xf32> to vector<8x16xf32>
    %178 = vector.extract_strided_slice %173 {offsets = [16, 0], sizes = [8, 16], strides = [1, 1]} : vector<24x16xf32> to vector<8x16xf32>
    %179 = arith.mulf %177, %132 : vector<8x16xf32>
    %180 = arith.mulf %176, %175 : vector<8x16xf32>
    %181 = arith.addf %179, %180 : vector<8x16xf32>
    %182 = math.tanh %181 : vector<8x16xf32>
    %183 = arith.mulf %178, %182 : vector<8x16xf32>
    %184 = tpu.concatenate %183, %158 in 0 : vector<8x16xf32>, vector<8x16xf32> -> vector<16x16xf32>
    %185 = vector.extract_strided_slice %184 {offsets = [0, 0], sizes = [16, 15], strides = [1, 1]} : vector<16x16xf32> to vector<16x15xf32>
    %186 = tpu.concatenate %7, %185 in 1 : vector<16x1xf32>, vector<16x15xf32> -> vector<16x16xf32>
    %187 = vector.extract_strided_slice %184 {offsets = [0, 1], sizes = [16, 15], strides = [1, 1]} : vector<16x16xf32> to vector<16x15xf32>
    %188 = tpu.concatenate %187, %7 in 1 : vector<16x15xf32>, vector<16x1xf32> -> vector<16x16xf32>
    %189 = tpu.concatenate %186, %184, %188 in 0 : vector<16x16xf32>, vector<16x16xf32>, vector<16x16xf32> -> vector<48x16xf32>
    %190 = arith.truncf %189 : vector<48x16xf32> to vector<48x16xbf16>
    %cst_29 = arith.constant dense<0.000000e+00> : vector<32x16xf32>
    %191 = tpu.matmul %2, %190, %cst_29 {dimension_numbers = #tpu.dot_dimension_numbers<[1], [0], [0], [1], [0, 0, 1, 1], [], []>} : vector<32x48xbf16>, vector<48x16xbf16>, vector<32x16xf32> -> vector<32x16xf32>
    %192 = vector.extract_strided_slice %191 {offsets = [0, 0], sizes = [24, 16], strides = [1, 1]} : vector<32x16xf32> to vector<24x16xf32>
    %193 = arith.negf %192 : vector<24x16xf32>
    %194 = math.exp %193 : vector<24x16xf32>
    %cst_30 = arith.constant 1.000000e+00 : f32
    %195 = vector.broadcast %cst_30 : f32 to vector<24x16xf32>
    %196 = arith.addf %195, %194 : vector<24x16xf32>
    %197 = arith.divf %195, %196 : vector<24x16xf32>
    %198 = vector.extract_strided_slice %191 {offsets = [24, 0], sizes = [8, 16], strides = [1, 1]} : vector<32x16xf32> to vector<8x16xf32>
    %199 = math.tanh %198 : vector<8x16xf32>
    %200 = vector.extract_strided_slice %197 {offsets = [0, 0], sizes = [8, 16], strides = [1, 1]} : vector<24x16xf32> to vector<8x16xf32>
    %201 = vector.extract_strided_slice %197 {offsets = [8, 0], sizes = [8, 16], strides = [1, 1]} : vector<24x16xf32> to vector<8x16xf32>
    %202 = vector.extract_strided_slice %197 {offsets = [16, 0], sizes = [8, 16], strides = [1, 1]} : vector<24x16xf32> to vector<8x16xf32>
    %203 = arith.mulf %201, %156 : vector<8x16xf32>
    %204 = arith.mulf %200, %199 : vector<8x16xf32>
    %205 = arith.addf %203, %204 : vector<8x16xf32>
    %206 = math.tanh %205 : vector<8x16xf32>
    %207 = arith.mulf %202, %206 : vector<8x16xf32>
    %208 = vector.extract_strided_slice %5 {offsets = [0, 64], sizes = [32, 16], strides = [1, 1]} : vector<32x128xf32> to vector<32x16xf32>
    %209 = vector.extract_strided_slice %183 {offsets = [0, 0], sizes = [8, 15], strides = [1, 1]} : vector<8x16xf32> to vector<8x15xf32>
    %210 = tpu.concatenate %6, %209 in 1 : vector<8x1xf32>, vector<8x15xf32> -> vector<8x16xf32>
    %211 = vector.extract_strided_slice %183 {offsets = [0, 1], sizes = [8, 15], strides = [1, 1]} : vector<8x16xf32> to vector<8x15xf32>
    %212 = tpu.concatenate %211, %6 in 1 : vector<8x15xf32>, vector<8x1xf32> -> vector<8x16xf32>
    %213 = tpu.concatenate %210, %183, %212 in 0 : vector<8x16xf32>, vector<8x16xf32>, vector<8x16xf32> -> vector<24x16xf32>
    %214 = arith.truncf %213 : vector<24x16xf32> to vector<24x16xbf16>
    %cst_31 = arith.constant dense<0.000000e+00> : vector<32x16xf32>
    %215 = tpu.matmul %1, %214, %cst_31 {dimension_numbers = #tpu.dot_dimension_numbers<[1], [0], [0], [1], [0, 0, 1, 1], [], []>} : vector<32x24xbf16>, vector<24x16xbf16>, vector<32x16xf32> -> vector<32x16xf32>
    %216 = arith.addf %208, %215 : vector<32x16xf32>
    %217 = vector.extract_strided_slice %216 {offsets = [0, 0], sizes = [24, 16], strides = [1, 1]} : vector<32x16xf32> to vector<24x16xf32>
    %218 = arith.negf %217 : vector<24x16xf32>
    %219 = math.exp %218 : vector<24x16xf32>
    %cst_32 = arith.constant 1.000000e+00 : f32
    %220 = vector.broadcast %cst_32 : f32 to vector<24x16xf32>
    %221 = arith.addf %220, %219 : vector<24x16xf32>
    %222 = arith.divf %220, %221 : vector<24x16xf32>
    %223 = vector.extract_strided_slice %216 {offsets = [24, 0], sizes = [8, 16], strides = [1, 1]} : vector<32x16xf32> to vector<8x16xf32>
    %224 = math.tanh %223 : vector<8x16xf32>
    %225 = vector.extract_strided_slice %222 {offsets = [0, 0], sizes = [8, 16], strides = [1, 1]} : vector<24x16xf32> to vector<8x16xf32>
    %226 = vector.extract_strided_slice %222 {offsets = [8, 0], sizes = [8, 16], strides = [1, 1]} : vector<24x16xf32> to vector<8x16xf32>
    %227 = vector.extract_strided_slice %222 {offsets = [16, 0], sizes = [8, 16], strides = [1, 1]} : vector<24x16xf32> to vector<8x16xf32>
    %228 = arith.mulf %226, %181 : vector<8x16xf32>
    %229 = arith.mulf %225, %224 : vector<8x16xf32>
    %230 = arith.addf %228, %229 : vector<8x16xf32>
    %231 = math.tanh %230 : vector<8x16xf32>
    %232 = arith.mulf %227, %231 : vector<8x16xf32>
    %233 = tpu.concatenate %232, %207 in 0 : vector<8x16xf32>, vector<8x16xf32> -> vector<16x16xf32>
    %234 = vector.extract_strided_slice %233 {offsets = [0, 0], sizes = [16, 15], strides = [1, 1]} : vector<16x16xf32> to vector<16x15xf32>
    %235 = tpu.concatenate %7, %234 in 1 : vector<16x1xf32>, vector<16x15xf32> -> vector<16x16xf32>
    %236 = vector.extract_strided_slice %233 {offsets = [0, 1], sizes = [16, 15], strides = [1, 1]} : vector<16x16xf32> to vector<16x15xf32>
    %237 = tpu.concatenate %236, %7 in 1 : vector<16x15xf32>, vector<16x1xf32> -> vector<16x16xf32>
    %238 = tpu.concatenate %235, %233, %237 in 0 : vector<16x16xf32>, vector<16x16xf32>, vector<16x16xf32> -> vector<48x16xf32>
    %239 = arith.truncf %238 : vector<48x16xf32> to vector<48x16xbf16>
    %cst_33 = arith.constant dense<0.000000e+00> : vector<32x16xf32>
    %240 = tpu.matmul %2, %239, %cst_33 {dimension_numbers = #tpu.dot_dimension_numbers<[1], [0], [0], [1], [0, 0, 1, 1], [], []>} : vector<32x48xbf16>, vector<48x16xbf16>, vector<32x16xf32> -> vector<32x16xf32>
    %241 = vector.extract_strided_slice %240 {offsets = [0, 0], sizes = [24, 16], strides = [1, 1]} : vector<32x16xf32> to vector<24x16xf32>
    %242 = arith.negf %241 : vector<24x16xf32>
    %243 = math.exp %242 : vector<24x16xf32>
    %cst_34 = arith.constant 1.000000e+00 : f32
    %244 = vector.broadcast %cst_34 : f32 to vector<24x16xf32>
    %245 = arith.addf %244, %243 : vector<24x16xf32>
    %246 = arith.divf %244, %245 : vector<24x16xf32>
    %247 = vector.extract_strided_slice %240 {offsets = [24, 0], sizes = [8, 16], strides = [1, 1]} : vector<32x16xf32> to vector<8x16xf32>
    %248 = math.tanh %247 : vector<8x16xf32>
    %249 = vector.extract_strided_slice %246 {offsets = [0, 0], sizes = [8, 16], strides = [1, 1]} : vector<24x16xf32> to vector<8x16xf32>
    %250 = vector.extract_strided_slice %246 {offsets = [8, 0], sizes = [8, 16], strides = [1, 1]} : vector<24x16xf32> to vector<8x16xf32>
    %251 = vector.extract_strided_slice %246 {offsets = [16, 0], sizes = [8, 16], strides = [1, 1]} : vector<24x16xf32> to vector<8x16xf32>
    %252 = arith.mulf %250, %205 : vector<8x16xf32>
    %253 = arith.mulf %249, %248 : vector<8x16xf32>
    %254 = arith.addf %252, %253 : vector<8x16xf32>
    %255 = math.tanh %254 : vector<8x16xf32>
    %256 = arith.mulf %251, %255 : vector<8x16xf32>
    %257 = vector.extract_strided_slice %5 {offsets = [0, 80], sizes = [32, 16], strides = [1, 1]} : vector<32x128xf32> to vector<32x16xf32>
    %258 = vector.extract_strided_slice %232 {offsets = [0, 0], sizes = [8, 15], strides = [1, 1]} : vector<8x16xf32> to vector<8x15xf32>
    %259 = tpu.concatenate %6, %258 in 1 : vector<8x1xf32>, vector<8x15xf32> -> vector<8x16xf32>
    %260 = vector.extract_strided_slice %232 {offsets = [0, 1], sizes = [8, 15], strides = [1, 1]} : vector<8x16xf32> to vector<8x15xf32>
    %261 = tpu.concatenate %260, %6 in 1 : vector<8x15xf32>, vector<8x1xf32> -> vector<8x16xf32>
    %262 = tpu.concatenate %259, %232, %261 in 0 : vector<8x16xf32>, vector<8x16xf32>, vector<8x16xf32> -> vector<24x16xf32>
    %263 = arith.truncf %262 : vector<24x16xf32> to vector<24x16xbf16>
    %cst_35 = arith.constant dense<0.000000e+00> : vector<32x16xf32>
    %264 = tpu.matmul %1, %263, %cst_35 {dimension_numbers = #tpu.dot_dimension_numbers<[1], [0], [0], [1], [0, 0, 1, 1], [], []>} : vector<32x24xbf16>, vector<24x16xbf16>, vector<32x16xf32> -> vector<32x16xf32>
    %265 = arith.addf %257, %264 : vector<32x16xf32>
    %266 = vector.extract_strided_slice %265 {offsets = [0, 0], sizes = [24, 16], strides = [1, 1]} : vector<32x16xf32> to vector<24x16xf32>
    %267 = arith.negf %266 : vector<24x16xf32>
    %268 = math.exp %267 : vector<24x16xf32>
    %cst_36 = arith.constant 1.000000e+00 : f32
    %269 = vector.broadcast %cst_36 : f32 to vector<24x16xf32>
    %270 = arith.addf %269, %268 : vector<24x16xf32>
    %271 = arith.divf %269, %270 : vector<24x16xf32>
    %272 = vector.extract_strided_slice %265 {offsets = [24, 0], sizes = [8, 16], strides = [1, 1]} : vector<32x16xf32> to vector<8x16xf32>
    %273 = math.tanh %272 : vector<8x16xf32>
    %274 = vector.extract_strided_slice %271 {offsets = [0, 0], sizes = [8, 16], strides = [1, 1]} : vector<24x16xf32> to vector<8x16xf32>
    %275 = vector.extract_strided_slice %271 {offsets = [8, 0], sizes = [8, 16], strides = [1, 1]} : vector<24x16xf32> to vector<8x16xf32>
    %276 = vector.extract_strided_slice %271 {offsets = [16, 0], sizes = [8, 16], strides = [1, 1]} : vector<24x16xf32> to vector<8x16xf32>
    %277 = arith.mulf %275, %230 : vector<8x16xf32>
    %278 = arith.mulf %274, %273 : vector<8x16xf32>
    %279 = arith.addf %277, %278 : vector<8x16xf32>
    %280 = math.tanh %279 : vector<8x16xf32>
    %281 = arith.mulf %276, %280 : vector<8x16xf32>
    %282 = tpu.concatenate %281, %256 in 0 : vector<8x16xf32>, vector<8x16xf32> -> vector<16x16xf32>
    %283 = vector.extract_strided_slice %282 {offsets = [0, 0], sizes = [16, 15], strides = [1, 1]} : vector<16x16xf32> to vector<16x15xf32>
    %284 = tpu.concatenate %7, %283 in 1 : vector<16x1xf32>, vector<16x15xf32> -> vector<16x16xf32>
    %285 = vector.extract_strided_slice %282 {offsets = [0, 1], sizes = [16, 15], strides = [1, 1]} : vector<16x16xf32> to vector<16x15xf32>
    %286 = tpu.concatenate %285, %7 in 1 : vector<16x15xf32>, vector<16x1xf32> -> vector<16x16xf32>
    %287 = tpu.concatenate %284, %282, %286 in 0 : vector<16x16xf32>, vector<16x16xf32>, vector<16x16xf32> -> vector<48x16xf32>
    %288 = arith.truncf %287 : vector<48x16xf32> to vector<48x16xbf16>
    %cst_37 = arith.constant dense<0.000000e+00> : vector<32x16xf32>
    %289 = tpu.matmul %2, %288, %cst_37 {dimension_numbers = #tpu.dot_dimension_numbers<[1], [0], [0], [1], [0, 0, 1, 1], [], []>} : vector<32x48xbf16>, vector<48x16xbf16>, vector<32x16xf32> -> vector<32x16xf32>
    %290 = vector.extract_strided_slice %289 {offsets = [0, 0], sizes = [24, 16], strides = [1, 1]} : vector<32x16xf32> to vector<24x16xf32>
    %291 = arith.negf %290 : vector<24x16xf32>
    %292 = math.exp %291 : vector<24x16xf32>
    %cst_38 = arith.constant 1.000000e+00 : f32
    %293 = vector.broadcast %cst_38 : f32 to vector<24x16xf32>
    %294 = arith.addf %293, %292 : vector<24x16xf32>
    %295 = arith.divf %293, %294 : vector<24x16xf32>
    %296 = vector.extract_strided_slice %289 {offsets = [24, 0], sizes = [8, 16], strides = [1, 1]} : vector<32x16xf32> to vector<8x16xf32>
    %297 = math.tanh %296 : vector<8x16xf32>
    %298 = vector.extract_strided_slice %295 {offsets = [0, 0], sizes = [8, 16], strides = [1, 1]} : vector<24x16xf32> to vector<8x16xf32>
    %299 = vector.extract_strided_slice %295 {offsets = [8, 0], sizes = [8, 16], strides = [1, 1]} : vector<24x16xf32> to vector<8x16xf32>
    %300 = vector.extract_strided_slice %295 {offsets = [16, 0], sizes = [8, 16], strides = [1, 1]} : vector<24x16xf32> to vector<8x16xf32>
    %301 = arith.mulf %299, %254 : vector<8x16xf32>
    %302 = arith.mulf %298, %297 : vector<8x16xf32>
    %303 = arith.addf %301, %302 : vector<8x16xf32>
    %304 = math.tanh %303 : vector<8x16xf32>
    %305 = arith.mulf %300, %304 : vector<8x16xf32>
    %306 = vector.extract_strided_slice %5 {offsets = [0, 96], sizes = [32, 16], strides = [1, 1]} : vector<32x128xf32> to vector<32x16xf32>
    %307 = vector.extract_strided_slice %281 {offsets = [0, 0], sizes = [8, 15], strides = [1, 1]} : vector<8x16xf32> to vector<8x15xf32>
    %308 = tpu.concatenate %6, %307 in 1 : vector<8x1xf32>, vector<8x15xf32> -> vector<8x16xf32>
    %309 = vector.extract_strided_slice %281 {offsets = [0, 1], sizes = [8, 15], strides = [1, 1]} : vector<8x16xf32> to vector<8x15xf32>
    %310 = tpu.concatenate %309, %6 in 1 : vector<8x15xf32>, vector<8x1xf32> -> vector<8x16xf32>
    %311 = tpu.concatenate %308, %281, %310 in 0 : vector<8x16xf32>, vector<8x16xf32>, vector<8x16xf32> -> vector<24x16xf32>
    %312 = arith.truncf %311 : vector<24x16xf32> to vector<24x16xbf16>
    %cst_39 = arith.constant dense<0.000000e+00> : vector<32x16xf32>
    %313 = tpu.matmul %1, %312, %cst_39 {dimension_numbers = #tpu.dot_dimension_numbers<[1], [0], [0], [1], [0, 0, 1, 1], [], []>} : vector<32x24xbf16>, vector<24x16xbf16>, vector<32x16xf32> -> vector<32x16xf32>
    %314 = arith.addf %306, %313 : vector<32x16xf32>
    %315 = vector.extract_strided_slice %314 {offsets = [0, 0], sizes = [24, 16], strides = [1, 1]} : vector<32x16xf32> to vector<24x16xf32>
    %316 = arith.negf %315 : vector<24x16xf32>
    %317 = math.exp %316 : vector<24x16xf32>
    %cst_40 = arith.constant 1.000000e+00 : f32
    %318 = vector.broadcast %cst_40 : f32 to vector<24x16xf32>
    %319 = arith.addf %318, %317 : vector<24x16xf32>
    %320 = arith.divf %318, %319 : vector<24x16xf32>
    %321 = vector.extract_strided_slice %314 {offsets = [24, 0], sizes = [8, 16], strides = [1, 1]} : vector<32x16xf32> to vector<8x16xf32>
    %322 = math.tanh %321 : vector<8x16xf32>
    %323 = vector.extract_strided_slice %320 {offsets = [0, 0], sizes = [8, 16], strides = [1, 1]} : vector<24x16xf32> to vector<8x16xf32>
    %324 = vector.extract_strided_slice %320 {offsets = [8, 0], sizes = [8, 16], strides = [1, 1]} : vector<24x16xf32> to vector<8x16xf32>
    %325 = vector.extract_strided_slice %320 {offsets = [16, 0], sizes = [8, 16], strides = [1, 1]} : vector<24x16xf32> to vector<8x16xf32>
    %326 = arith.mulf %324, %279 : vector<8x16xf32>
    %327 = arith.mulf %323, %322 : vector<8x16xf32>
    %328 = arith.addf %326, %327 : vector<8x16xf32>
    %329 = math.tanh %328 : vector<8x16xf32>
    %330 = arith.mulf %325, %329 : vector<8x16xf32>
    %331 = tpu.concatenate %330, %305 in 0 : vector<8x16xf32>, vector<8x16xf32> -> vector<16x16xf32>
    %332 = vector.extract_strided_slice %331 {offsets = [0, 0], sizes = [16, 15], strides = [1, 1]} : vector<16x16xf32> to vector<16x15xf32>
    %333 = tpu.concatenate %7, %332 in 1 : vector<16x1xf32>, vector<16x15xf32> -> vector<16x16xf32>
    %334 = vector.extract_strided_slice %331 {offsets = [0, 1], sizes = [16, 15], strides = [1, 1]} : vector<16x16xf32> to vector<16x15xf32>
    %335 = tpu.concatenate %334, %7 in 1 : vector<16x15xf32>, vector<16x1xf32> -> vector<16x16xf32>
    %336 = tpu.concatenate %333, %331, %335 in 0 : vector<16x16xf32>, vector<16x16xf32>, vector<16x16xf32> -> vector<48x16xf32>
    %337 = arith.truncf %336 : vector<48x16xf32> to vector<48x16xbf16>
    %cst_41 = arith.constant dense<0.000000e+00> : vector<32x16xf32>
    %338 = tpu.matmul %2, %337, %cst_41 {dimension_numbers = #tpu.dot_dimension_numbers<[1], [0], [0], [1], [0, 0, 1, 1], [], []>} : vector<32x48xbf16>, vector<48x16xbf16>, vector<32x16xf32> -> vector<32x16xf32>
    %339 = vector.extract_strided_slice %338 {offsets = [0, 0], sizes = [24, 16], strides = [1, 1]} : vector<32x16xf32> to vector<24x16xf32>
    %340 = arith.negf %339 : vector<24x16xf32>
    %341 = math.exp %340 : vector<24x16xf32>
    %cst_42 = arith.constant 1.000000e+00 : f32
    %342 = vector.broadcast %cst_42 : f32 to vector<24x16xf32>
    %343 = arith.addf %342, %341 : vector<24x16xf32>
    %344 = arith.divf %342, %343 : vector<24x16xf32>
    %345 = vector.extract_strided_slice %338 {offsets = [24, 0], sizes = [8, 16], strides = [1, 1]} : vector<32x16xf32> to vector<8x16xf32>
    %346 = math.tanh %345 : vector<8x16xf32>
    %347 = vector.extract_strided_slice %344 {offsets = [0, 0], sizes = [8, 16], strides = [1, 1]} : vector<24x16xf32> to vector<8x16xf32>
    %348 = vector.extract_strided_slice %344 {offsets = [8, 0], sizes = [8, 16], strides = [1, 1]} : vector<24x16xf32> to vector<8x16xf32>
    %349 = vector.extract_strided_slice %344 {offsets = [16, 0], sizes = [8, 16], strides = [1, 1]} : vector<24x16xf32> to vector<8x16xf32>
    %350 = arith.mulf %348, %303 : vector<8x16xf32>
    %351 = arith.mulf %347, %346 : vector<8x16xf32>
    %352 = arith.addf %350, %351 : vector<8x16xf32>
    %353 = math.tanh %352 : vector<8x16xf32>
    %354 = arith.mulf %349, %353 : vector<8x16xf32>
    %355 = vector.extract_strided_slice %5 {offsets = [0, 112], sizes = [32, 16], strides = [1, 1]} : vector<32x128xf32> to vector<32x16xf32>
    %356 = vector.extract_strided_slice %330 {offsets = [0, 0], sizes = [8, 15], strides = [1, 1]} : vector<8x16xf32> to vector<8x15xf32>
    %357 = tpu.concatenate %6, %356 in 1 : vector<8x1xf32>, vector<8x15xf32> -> vector<8x16xf32>
    %358 = vector.extract_strided_slice %330 {offsets = [0, 1], sizes = [8, 15], strides = [1, 1]} : vector<8x16xf32> to vector<8x15xf32>
    %359 = tpu.concatenate %358, %6 in 1 : vector<8x15xf32>, vector<8x1xf32> -> vector<8x16xf32>
    %360 = tpu.concatenate %357, %330, %359 in 0 : vector<8x16xf32>, vector<8x16xf32>, vector<8x16xf32> -> vector<24x16xf32>
    %361 = arith.truncf %360 : vector<24x16xf32> to vector<24x16xbf16>
    %cst_43 = arith.constant dense<0.000000e+00> : vector<32x16xf32>
    %362 = tpu.matmul %1, %361, %cst_43 {dimension_numbers = #tpu.dot_dimension_numbers<[1], [0], [0], [1], [0, 0, 1, 1], [], []>} : vector<32x24xbf16>, vector<24x16xbf16>, vector<32x16xf32> -> vector<32x16xf32>
    %363 = arith.addf %355, %362 : vector<32x16xf32>
    %364 = vector.extract_strided_slice %363 {offsets = [0, 0], sizes = [24, 16], strides = [1, 1]} : vector<32x16xf32> to vector<24x16xf32>
    %365 = arith.negf %364 : vector<24x16xf32>
    %366 = math.exp %365 : vector<24x16xf32>
    %cst_44 = arith.constant 1.000000e+00 : f32
    %367 = vector.broadcast %cst_44 : f32 to vector<24x16xf32>
    %368 = arith.addf %367, %366 : vector<24x16xf32>
    %369 = arith.divf %367, %368 : vector<24x16xf32>
    %370 = vector.extract_strided_slice %363 {offsets = [24, 0], sizes = [8, 16], strides = [1, 1]} : vector<32x16xf32> to vector<8x16xf32>
    %371 = math.tanh %370 : vector<8x16xf32>
    %372 = vector.extract_strided_slice %369 {offsets = [0, 0], sizes = [8, 16], strides = [1, 1]} : vector<24x16xf32> to vector<8x16xf32>
    %373 = vector.extract_strided_slice %369 {offsets = [8, 0], sizes = [8, 16], strides = [1, 1]} : vector<24x16xf32> to vector<8x16xf32>
    %374 = vector.extract_strided_slice %369 {offsets = [16, 0], sizes = [8, 16], strides = [1, 1]} : vector<24x16xf32> to vector<8x16xf32>
    %375 = arith.mulf %373, %328 : vector<8x16xf32>
    %376 = arith.mulf %372, %371 : vector<8x16xf32>
    %377 = arith.addf %375, %376 : vector<8x16xf32>
    %378 = math.tanh %377 : vector<8x16xf32>
    %379 = arith.mulf %374, %378 : vector<8x16xf32>
    %380 = tpu.concatenate %379, %354 in 0 : vector<8x16xf32>, vector<8x16xf32> -> vector<16x16xf32>
    %381 = vector.extract_strided_slice %380 {offsets = [0, 0], sizes = [16, 15], strides = [1, 1]} : vector<16x16xf32> to vector<16x15xf32>
    %382 = tpu.concatenate %7, %381 in 1 : vector<16x1xf32>, vector<16x15xf32> -> vector<16x16xf32>
    %383 = vector.extract_strided_slice %380 {offsets = [0, 1], sizes = [16, 15], strides = [1, 1]} : vector<16x16xf32> to vector<16x15xf32>
    %384 = tpu.concatenate %383, %7 in 1 : vector<16x15xf32>, vector<16x1xf32> -> vector<16x16xf32>
    %385 = tpu.concatenate %382, %380, %384 in 0 : vector<16x16xf32>, vector<16x16xf32>, vector<16x16xf32> -> vector<48x16xf32>
    %386 = arith.truncf %385 : vector<48x16xf32> to vector<48x16xbf16>
    %cst_45 = arith.constant dense<0.000000e+00> : vector<32x16xf32>
    %387 = tpu.matmul %2, %386, %cst_45 {dimension_numbers = #tpu.dot_dimension_numbers<[1], [0], [0], [1], [0, 0, 1, 1], [], []>} : vector<32x48xbf16>, vector<48x16xbf16>, vector<32x16xf32> -> vector<32x16xf32>
    %388 = vector.extract_strided_slice %387 {offsets = [0, 0], sizes = [24, 16], strides = [1, 1]} : vector<32x16xf32> to vector<24x16xf32>
    %389 = arith.negf %388 : vector<24x16xf32>
    %390 = math.exp %389 : vector<24x16xf32>
    %cst_46 = arith.constant 1.000000e+00 : f32
    %391 = vector.broadcast %cst_46 : f32 to vector<24x16xf32>
    %392 = arith.addf %391, %390 : vector<24x16xf32>
    %393 = arith.divf %391, %392 : vector<24x16xf32>
    %394 = vector.extract_strided_slice %387 {offsets = [24, 0], sizes = [8, 16], strides = [1, 1]} : vector<32x16xf32> to vector<8x16xf32>
    %395 = math.tanh %394 : vector<8x16xf32>
    %396 = vector.extract_strided_slice %393 {offsets = [0, 0], sizes = [8, 16], strides = [1, 1]} : vector<24x16xf32> to vector<8x16xf32>
    %397 = vector.extract_strided_slice %393 {offsets = [8, 0], sizes = [8, 16], strides = [1, 1]} : vector<24x16xf32> to vector<8x16xf32>
    %398 = vector.extract_strided_slice %393 {offsets = [16, 0], sizes = [8, 16], strides = [1, 1]} : vector<24x16xf32> to vector<8x16xf32>
    %399 = arith.mulf %397, %352 : vector<8x16xf32>
    %400 = arith.mulf %396, %395 : vector<8x16xf32>
    %401 = arith.addf %399, %400 : vector<8x16xf32>
    %402 = math.tanh %401 : vector<8x16xf32>
    %403 = arith.mulf %398, %402 : vector<8x16xf32>
    %404 = tpu.concatenate %60, %109, %158, %207, %256, %305, %354, %403 in 1 : vector<8x16xf32>, vector<8x16xf32>, vector<8x16xf32>, vector<8x16xf32>, vector<8x16xf32>, vector<8x16xf32>, vector<8x16xf32>, vector<8x16xf32> -> vector<8x128xf32>
    %405 = tpu.iota {dimensions = array<i32: 1>} : vector<8x128xi32>
    %c16_i32 = arith.constant 16 : i32
    %c0_i32 = arith.constant 0 : i32
    %406 = arith.cmpi eq, %c16_i32, %c0_i32 : i32
    %c1_i32 = arith.constant 1 : i32
    %407 = arith.select %406, %c1_i32, %c16_i32 : i32
    %408 = vector.broadcast %407 : i32 to vector<8x128xi32>
    %409 = arith.remsi %405, %408 : vector<8x128xi32>
    %c0_i32_47 = arith.constant 0 : i32
    %410 = vector.broadcast %c0_i32_47 : i32 to vector<8x128xi32>
    %411 = arith.cmpi ne, %409, %410 : vector<8x128xi32>
    %c0_i32_48 = arith.constant 0 : i32
    %412 = vector.broadcast %c0_i32_48 : i32 to vector<8x128xi32>
    %413 = arith.cmpi slt, %409, %412 : vector<8x128xi32>
    %c0_i32_49 = arith.constant 0 : i32
    %414 = arith.cmpi slt, %407, %c0_i32_49 : i32
    %415 = vector.broadcast %414 : i1 to vector<8x128xi1>
    %416 = vector.broadcast %415 : vector<8x128xi1> to vector<8x128xi1>
    %417 = arith.xori %413, %416 : vector<8x128xi1>
    %418 = arith.andi %417, %411 : vector<8x128xi1>
    %419 = vector.broadcast %407 : i32 to vector<8x128xi32>
    %420 = arith.addi %409, %419 : vector<8x128xi32>
    %421 = arith.select %418, %420, %409 : vector<8x128xi1>, vector<8x128xi32>
    %c0_i32_50 = arith.constant 0 : i32
    %422 = vector.broadcast %c0_i32_50 : i32 to vector<8x128xi32>
    %423 = arith.cmpi eq, %421, %422 : vector<8x128xi32>
    %c1_i32_51 = arith.constant 1 : i32
    %424 = tpu.dynamic_rotate %404 by %c1_i32_51 dim 1 : vector<8x128xf32>, i32 -> vector<8x128xf32>
    %cst_52 = arith.constant 0.000000e+00 : f32
    %425 = vector.broadcast %cst_52 : f32 to vector<8x128xf32>
    %426 = arith.select %423, %425, %424 : vector<8x128xi1>, vector<8x128xf32>
    %c15_i32 = arith.constant 15 : i32
    %427 = vector.broadcast %c15_i32 : i32 to vector<8x128xi32>
    %428 = arith.cmpi eq, %421, %427 : vector<8x128xi32>
    %c127_i32 = arith.constant 127 : i32
    %429 = tpu.dynamic_rotate %404 by %c127_i32 dim 1 : vector<8x128xf32>, i32 -> vector<8x128xf32>
    %cst_53 = arith.constant 0.000000e+00 : f32
    %430 = vector.broadcast %cst_53 : f32 to vector<8x128xf32>
    %431 = arith.select %428, %430, %429 : vector<8x128xi1>, vector<8x128xf32>
    %432 = tpu.concatenate %426, %404, %431 in 0 : vector<8x128xf32>, vector<8x128xf32>, vector<8x128xf32> -> vector<24x128xf32>
    %433 = arith.truncf %432 : vector<24x128xf32> to vector<24x128xbf16>
    %cst_54 = arith.constant dense<0.000000e+00> : vector<1x128xf32>
    %434 = tpu.matmul %3, %433, %cst_54 {dimension_numbers = #tpu.dot_dimension_numbers<[1], [0], [0], [1], [0, 0, 1, 1], [], []>} : vector<1x24xbf16>, vector<24x128xbf16>, vector<1x128xf32> -> vector<1x128xf32>
    %435 = vector.shape_cast %434 : vector<1x128xf32> to vector<1x1x128xf32>
    %cst_55 = arith.constant dense<0.000000e+00> : vector<1xf32>
    %436 = vector.multi_reduction <add>, %435, %cst_55 [1, 2] : vector<1x1x128xf32> to vector<1xf32>
    %437 = vector.shape_cast %436 : vector<1xf32> to vector<1x1x1xf32>
    %438 = vector.extract %437[0, 0, 0] : f32 from vector<1x1x1xf32>
    %cst_56 = arith.constant 1.280000e+02 : f32
    %439 = arith.divf %438, %cst_56 : f32
    %440 = vector.broadcast %439 : f32 to vector<1x128xf32>
    %441 = arith.subf %434, %440 : vector<1x128xf32>
    %442 = arith.mulf %441, %441 : vector<1x128xf32>
    %443 = vector.shape_cast %442 : vector<1x128xf32> to vector<1x1x128xf32>
    %cst_57 = arith.constant dense<0.000000e+00> : vector<1xf32>
    %444 = vector.multi_reduction <add>, %443, %cst_57 [1, 2] : vector<1x1x128xf32> to vector<1xf32>
    %445 = vector.shape_cast %444 : vector<1xf32> to vector<1x1x1xf32>
    %446 = vector.extract %445[0, 0, 0] : f32 from vector<1x1x1xf32>
    %cst_58 = arith.constant 1.280000e+02 : f32
    %447 = arith.divf %446, %cst_58 : f32
    %448 = vector.broadcast %439 : f32 to vector<1x128xf32>
    %449 = arith.subf %434, %448 : vector<1x128xf32>
    %cst_59 = arith.constant 9.99999974E-6 : f32
    %450 = arith.addf %447, %cst_59 : f32
    %451 = math.rsqrt %450 : f32
    %452 = vector.broadcast %451 : f32 to vector<1x128xf32>
    %453 = arith.mulf %449, %452 : vector<1x128xf32>
    %cst_60 = arith.constant 0.000000e+00 : f32
    %454 = vector.broadcast %cst_60 : f32 to vector<1x128xf32>
    %455 = arith.maximumf %453, %454 : vector<1x128xf32>
    %c0_61 = arith.constant 0 : index
    %c0_62 = arith.constant 0 : index
    %456 = vector.load %arg5[%c0_61, %c0_62] : memref<1x128xf32, #tpu.memory_space<vmem>>, vector<1x128xf32>
    tpu.vector_store %arg5[%c0_61, %c0_62], %455 {strides = array<i32>} : memref<1x128xf32, #tpu.memory_space<vmem>>, vector<1x128xf32>,
    return
  }
}

</mosaic_0001>

<bundles_post_ra>
// kernel: tpu_custom_call.1
= control target key start
LH: loop header
LB: loop body
LE: loop exit
PB: predicated region body
PF: predicated region fallthrough
CT: control target
= control target key end

     0   :  { %vm3115_vm0 = vcmask 1040384   ;;  %v2672_v1 = vmov 0.0|0.0   ;;  %vm90_vm1 = vcmask 195584   ;;  %vm54_vm2 = vcmask 1041408   ;;  %s3109_s0 = inlined_call_operand.vmem [shape: bf16[3,128], index: 0, kind: input, shape index: {}]   ;;  %s3110_s1 = inlined_call_operand.vmem [shape: bf16[32,3], index: 1, kind: input, shape index: {}]   ;;  %s3111_s2 = inlined_call_operand.vmem [shape: bf16[32,24], index: 2, kind: input, shape index: {}]   ;;  %s3112_s3 = inlined_call_operand.vmem [shape: bf16[32,48], index: 3, kind: input, shape index: {}]   ;;  %s3113_s4 = inlined_call_operand.vmem [shape: bf16[1,24], index: 4, kind: input, shape index: {}]   ;;  %s3114_s5 = inlined_call_operand.hbm [shape: f32[1,128], index: 5, kind: output, shape index: {}]  }
   0x1   :  { %v2733_v0 = vld [vmem:[%s3111_s2] sm:$0xff]  ;;  %108 = vmatpush.bf16.msra.mxu1 %v2672_v1  ;;  %v2673_v3 = vmov 65535  }
   0x2   :  { %v35_v2 = vld [vmem:[%s3109_s0] sm:$0x3]  ;;  %v55_v4 = vsel %vm3115_vm0, 4294967295, %v2673_v3 }
   0x3   :  { %10 = vsyncpa [#allocation3], 0  ;;  %v56_v5 = vsel %vm54_vm2, %v55_v4, 0  ;;  %v2218_v7 = vld [vmem:[%s3110_s1] sm:$0xff]  ;;  %v2219_v8 = vld [vmem:[%s3110_s1 + $0x8] sm:$0xff]  ;;  %vm46_vm3 = vcmask 23552  }
   0x4   :  { %2033 = vmatmul.msk.bf16.vlgmr.msra.gmra.mxu1 %vm90_vm1, %v2733_v0  ;;  %v58_v6 = vand.u32 %v56_v5, %v35_v2  ;;  %v2750_v9 = vld [vmem:[%s3111_s2 + $0x8] sm:$0xff]  ;;  %s2674_s1 = smov 127   ;;  %s2675_s27 = smov 1   ;;  %vm204_vm2 = vcmask 121856  }
   0x5   :  { %s2676_s28 = smov 16   ;;  %s2678_s8 = smov 113  }
   0x6   :  { %67 = vmatpush.bf16.msra.mxu0 %v58_v6  ;;  %2225 = vmatpush.bf16.msra.mxu3 %v58_v6  ;;  %s2679_s9 = smov 112   ;;  %s2680_s10 = smov 111  }
   0x7   :  { %s2681_s11 = smov 32   ;;  %s2682_s12 = smov 97  }
   0x8   :  { %s2683_s13 = smov 96   ;;  %s2684_s14 = smov 95  }
   0x9   :  { %2023 = vmatmul.msk.bf16.vlgmr.msra.gmra.mxu0 %vm46_vm3, %v2218_v7  ;;  %2024 = vmatmul.msk.bf16.vlgmr.msra.gmra.mxu3 %vm46_vm3, %v2219_v8  ;;  %vm2771_vm3 = vmpackc.low %vm204_vm2, %vm204_vm2  ;;  %s2685_s15 = smov 48   ;;  %s2686_s16 = smov 81  }
   0xa   :  { %s2687_s17 = smov 80   ;;  %s2688_s18 = smov 79  }
   0xb   :  { %s2689_s26 = smov 64   ;;  %s2690_s29 = smov 65  }
   0xc   :  { %s2691_s30 = smov 63   ;;  %s2692_s6 = smov 49  }
   0xd   :  { %s2693_s7 = smov 47   ;;  %s2699_s23 = smov [#allocation2]  }
   0xe   :  { %s2004_s24 = sshll.u32 %s2699_s23, 4  ;;  %s2005_s24 = int_to_ptr.vmem [resolvable:$true] %s2004_s24 }
  0x14   :  { %2034 = vmatmul.msk.bf16.gmra.mxu1 %vm90_vm1, %v2750_v9 }
  0x81   :  { %v110_v10 = vpop.f32.mrf.mxu1 }
  0x86   :  { %v2754_v11 = vpop.f32.mrf.mxu0 }
  0x87   :  { %v120_v12 = vadd.f32 %v110_v10, %v2754_v11 }
  0x89   :  { %v2035_v13 = vmul.f32 -1.442695, %v120_v12  ;;  %v112_v14 = vpop.f32.mrf.mxu1 }
  0x8b   :  { %2378 = vpow2.f32 %v2035_v13 }
  0x8c   :  { %v2760_v17 = vpop.f32.mrf.mxu3 }
  0x8e   :  { %v2757_v15 = vpop.f32.mrf.mxu0 }
  0x8f   :  { %v121_v16 = vadd.f32 %v112_v14, %v2757_v15 }
  0x91   :  { %v2379_v18 = vpop.eup %2378  ;;  %v2036_v19 = vmul.f32 -1.442695, %v121_v16  ;;  %v115_v20 = vpop.f32.mrf.mxu1 }
  0x92   :  { %v133_v21 = vadd.f32 1.0, %v2379_v18  ;;  %v122_v22 = vadd.f32 %v115_v20, %v2760_v17 }
  0x93   :  { %2380 = vpow2.f32 %v2036_v19 }
  0x94   :  { %2382 = vrcp.f32 %v133_v21  ;;  %v2037_v23 = vmul.f32 -1.442695, %v122_v22  ;;  %v2763_v30 = vpop.f32.mrf.mxu3  ;;  %v147_v38 = vand.u32 2147483648, %v133_v21  ;;  %vm141_vm5 = vweird.f32 %v133_v21  ;;  %v2644_v22 = vld [vmem:[%s3111_s2 + $0x8] sm:$0xff] }
  0x95   :  { %v145_v40 = vand.u32 2147483647, %v133_v21 }
  0x96   :  { %2384 = vpow2.f32 %v2037_v23  ;;  %v148_v48 = vor.u32 1.1754944e-38, %v147_v38 }
  0x97   :  { %vm146_vm8 = vcmp.eq.f32.partialorder %v145_v40, 8.507059e+37 }
  0x99   :  { %v2381_v24 = vpop.eup %2380  ;;  %v117_v31 = vpop.f32.mrf.mxu1 }
  0x9a   :  { %v2383_v25 = vpop.eup %2382  ;;  %v134_v26 = vadd.f32 1.0, %v2381_v24  ;;  %v123_v34 = vadd.f32 %v117_v31, %v2763_v30 }
  0x9b   :  { %v137_v27 = vmul.f32 %v2383_v25, %v133_v21  ;;  %vm142_vm4 = vweird.f32 %v2383_v25 }
  0x9c   :  { %v2385_v28 = vpop.eup %2384  ;;  %2386 = vrcp.f32 %v134_v26  ;;  %vm143_vm6 = vmor %vm141_vm5, %vm142_vm4  ;;  %v162_v43 = vand.u32 2147483648, %v134_v26  ;;  %v160_v46 = vand.u32 2147483647, %v134_v26  ;;  %vm156_vm9 = vweird.f32 %v134_v26 }
  0x9d   :  { %v135_v29 = vadd.f32 1.0, %v2385_v28  ;;  %v138_v32 = vsub.f32 1.0, %v137_v27  ;;  %vm97_vm4 = vcmask 1043456   ;;  %vm195_vm5 = vcmask 7168  }
  0x9e   :  { %v163_v52 = vor.u32 1.1754944e-38, %v162_v43  ;;  %vm161_vm11 = vcmp.eq.f32.partialorder %v160_v46, 8.507059e+37 }
  0x9f   :  { %2388 = vrcp.f32 %v135_v29  ;;  %v139_v33 = vmul.f32 %v2383_v25, %v138_v32  ;;  %vm171_vm12 = vweird.f32 %v135_v29  ;;  %v177_v60 = vand.u32 2147483648, %v135_v29 }
  0xa0   :  { %2390 = vtanh.f32 %v123_v34  ;;  %v175_v61 = vand.u32 2147483647, %v135_v29 }
  0xa1   :  { %v140_v36 = vadd.f32 %v2383_v25, %v139_v33  ;;  %v178_v63 = vor.u32 1.1754944e-38, %v177_v60 }
  0xa2   :  { %v2387_v35 = vpop.eup %2386  ;;  %vm176_vm15 = vcmp.eq.f32.partialorder %v175_v61, 8.507059e+37 }
  0xa3   :  { %v152_v37 = vmul.f32 %v2387_v35, %v134_v26  ;;  %v144_v44 = vsel %vm143_vm6, %v2383_v25, %v140_v36  ;;  %vm157_vm7 = vweird.f32 %v2387_v35  ;;  %vm2049_vm6 = vmneg %vm195_vm5  ;;  %v2791_v25 = vld [vmem:[%s3112_s3] sm:$0xff]  ;;  %v2804_v26 = vld [vmem:[%s3112_s3 + $0x8] sm:$0xff] }
  0xa4   :  { %v149_v51 = vsel %vm146_vm8, %v148_v48, %v144_v44  ;;  %vm158_vm10 = vmor %vm156_vm9, %vm157_vm7  ;;  %vm2677_vm8 = vmmov 1  }
  0xa5   :  { %v2389_v39 = vpop.eup %2388  ;;  %v153_v41 = vsub.f32 1.0, %v152_v37  ;;  %vm2779_vm7 = vmpackc.low %vm2049_vm6, %vm2049_vm6 }
  0xa6   :  { %v167_v42 = vmul.f32 %v2389_v39, %v135_v29  ;;  %v2391_v50 = vpop.eup %2390  ;;  %vm172_vm13 = vweird.f32 %v2389_v39  ;;  %vm2784_vm9 = vmpackc.low %vm2677_vm8, %vm2049_vm6 }
  0xa7   :  { %v154_v45 = vmul.f32 %v2387_v35, %v153_v41  ;;  %v183_v57 = vmul.f32 %v2391_v50, %v149_v51  ;;  %vm173_vm14 = vmor %vm171_vm12, %vm172_vm13 }
  0xa8   :  { %v168_v47 = vsub.f32 1.0, %v167_v42 }
  0xa9   :  { %v155_v49 = vadd.f32 %v2387_v35, %v154_v45 }
  0xaa   :  { %v169_v54 = vmul.f32 %v2389_v39, %v168_v47 }
  0xab   :  { %v159_v53 = vsel %vm158_vm10, %v2387_v35, %v155_v49  ;;  %vm220_vm10 = vcmask 392192  }
  0xac   :  { %v164_v55 = vsel %vm161_vm11, %v163_v52, %v159_v53  ;;  %v170_v59 = vadd.f32 %v2389_v39, %v169_v54 }
  0xad   :  { %v182_v56 = vmul.f32 0.0, %v164_v55 }
  0xae   :  { %v174_v62 = vsel %vm173_vm14, %v2389_v39, %v170_v59 }
  0xaf   :  { %v184_v58 = vadd.f32 %v183_v57, %v182_v56  ;;  %v179_v2 = vsel %vm176_vm15, %v178_v63, %v174_v62 }
  0xb1   :  { %2392 = vtanh.f32 %v184_v58 }
  0xb7   :  { %v2393_v1 = vpop.eup %2392 }
  0xb8   :  { %v186_v3 = vmul.f32 %v2393_v1, %v179_v2 }
  0xba   :  { %v2263_v4 = vpack.i.bf16 0.0, %v186_v3  ;;  %v208_v16 = vpack.c.bf16 0.0, %v186_v3 }
  0xbc   :  { %2264 = vrot.lane.b32.xlu0 %v2263_v4, %s2674_s1 }
  0xc4   :  { %2269 = vrot.lane.b32.xlu0 %v2263_v4, %s2675_s27 }
  0xcc   :  { %412 = vrot.lane.b32.xlu0 %v184_v58, %s2676_s28 }
 0x12e   :  { %v2265_v5 = vpop.permute.xlu0 %2264 }
 0x12f   :  { %v2267_v6 = vunpack.i.h.bf16 %v2265_v5  ;;  %v2266_v7 = vunpack.i.l.bf16 %v2265_v5 }
 0x131   :  { %v2047_v10 = vpack.c.bf16 %v2267_v6, %v2266_v7  ;;  %v205_v12 = vsel %vm204_vm2, %v2266_v7, 0.0 }
 0x132   :  { %v310_v13 = vpack.c.bf16 %v205_v12, %v205_v12 }
 0x133   :  { %2048 = vmatpush.bf16.msk.msra.mxu2 %vm2771_vm3, %v2047_v10 }
 0x134   :  { %v312_v14 = vsel %vm97_vm4, %v310_v13, 0 }
 0x135   :  { %320 = vmatpush.bf16.msrb.mxu3 %v312_v14 }
 0x136   :  { %v2270_v18 = vpop.permute.xlu0 %2269 }
 0x137   :  { %v2272_v19 = vunpack.i.h.bf16 %v2270_v18  ;;  %v2271_v20 = vunpack.i.l.bf16 %v2270_v18  ;;  %233 = vmatpush.bf16.msra.mxu2 %v208_v16 }
 0x139   :  { %v2052_v23 = vpack.c.bf16 %v2272_v19, %v2271_v20  ;;  %v2061_v24 = vpack.c.bf16 %v186_v3, %v2271_v20 }
 0x13b   :  { %2053 = vmatpush.bf16.msk.msra.mxu2 %vm2779_vm7, %v2052_v23  ;;  %2062 = vmatpush.bf16.msk.msrb.mxu3 %vm2784_vm9, %v2061_v24 }
 0x13e   :  { %2054 = vmatmul.msk.bf16.vlgmr.msra.gmra.mxu2 %vm220_vm10, %v2791_v25  ;;  %2063 = vmatmul.msk.bf16.vlgmr.msrb.gmra.mxu3 %vm90_vm1, %v2733_v0 }
 0x14e   :  { %2055 = vmatmul.msk.bf16.gmra.mxu2 %vm220_vm10, %v2804_v26  ;;  %2064 = vmatmul.msk.bf16.gmra.mxu3 %vm90_vm1, %v2750_v9 }
 0x1c1   :  { %v236_v27 = vpop.f32.mrf.mxu2  ;;  %v323_v28 = vpop.f32.mrf.mxu3 }
 0x1c2   :  { %v2056_v29 = vmul.f32 -1.442695, %v236_v27  ;;  %337 = vrot.lane.b32.xlu1 %v323_v28, %s2676_s28 }
 0x1c4   :  { %2394 = vpow2.f32 %v2056_v29 }
 0x1c9   :  { %v238_v31 = vpop.f32.mrf.mxu2  ;;  %v325_v32 = vpop.f32.mrf.mxu3 }
 0x1ca   :  { %v2395_v33 = vpop.eup %2394  ;;  %v2057_v34 = vmul.f32 -1.442695, %v238_v31  ;;  %339 = vrot.lane.b32.xlu1 %v325_v32, %s2676_s28 }
 0x1cb   :  { %v255_v35 = vadd.f32 1.0, %v2395_v33 }
 0x1cc   :  { %2396 = vpow2.f32 %v2057_v34 }
 0x1cd   :  { %2398 = vrcp.f32 %v255_v35  ;;  %vm263_vm12 = vweird.f32 %v255_v35  ;;  %v269_v54 = vand.u32 2147483648, %v255_v35  ;;  %v267_v56 = vand.u32 2147483647, %v255_v35 }
 0x1cf   :  { %v270_v63 = vor.u32 1.1754944e-38, %v269_v54  ;;  %vm268_vm6 = vcmp.eq.f32.partialorder %v267_v56, 8.507059e+37 }
 0x1d1   :  { %v241_v36 = vpop.f32.mrf.mxu2  ;;  %v328_v37 = vpop.f32.mrf.mxu3 }
 0x1d2   :  { %v2397_v38 = vpop.eup %2396  ;;  %v2058_v39 = vmul.f32 -1.442695, %v241_v36  ;;  %341 = vrot.lane.b32.xlu2 %v328_v37, %s2676_s28 }
 0x1d3   :  { %v2399_v40 = vpop.eup %2398  ;;  %v256_v41 = vadd.f32 1.0, %v2397_v38 }
 0x1d4   :  { %v259_v42 = vmul.f32 %v2399_v40, %v255_v35  ;;  %2400 = vpow2.f32 %v2058_v39  ;;  %vm264_vm11 = vweird.f32 %v2399_v40 }
 0x1d5   :  { %2402 = vrcp.f32 %v256_v41  ;;  %v284_v53 = vand.u32 2147483648, %v256_v41  ;;  %v282_v57 = vand.u32 2147483647, %v256_v41  ;;  %vm265_vm14 = vmor %vm263_vm12, %vm264_vm11  ;;  %vm278_vm15 = vweird.f32 %v256_v41 }
 0x1d6   :  { %v260_v43 = vsub.f32 1.0, %v259_v42 }
 0x1d7   :  { %v285_v62 = vor.u32 1.1754944e-38, %v284_v53  ;;  %vm283_vm0 = vcmp.eq.f32.partialorder %v282_v57, 8.507059e+37 }
 0x1d8   :  { %v261_v47 = vmul.f32 %v2399_v40, %v260_v43 }
 0x1d9   :  { %v243_v44 = vpop.f32.mrf.mxu2  ;;  %v330_v45 = vpop.f32.mrf.mxu3 }
 0x1da   :  { %v2401_v46 = vpop.eup %2400  ;;  %343 = vrot.lane.b32.xlu2 %v330_v45, %s2676_s28  ;;  %2404 = vtanh.f32 %v243_v44  ;;  %v262_v52 = vadd.f32 %v2399_v40, %v261_v47 }
 0x1db   :  { %v2403_v48 = vpop.eup %2402  ;;  %v257_v49 = vadd.f32 1.0, %v2401_v46 }
 0x1dc   :  { %v274_v50 = vmul.f32 %v2403_v48, %v256_v41  ;;  %vm279_vm13 = vweird.f32 %v2403_v48  ;;  %v266_v59 = vsel %vm265_vm14, %v2399_v40, %v262_v52 }
 0x1dd   :  { %2406 = vrcp.f32 %v257_v49  ;;  %vm280_vm5 = vmor %vm278_vm15, %vm279_vm13  ;;  %v271_v3 = vsel %vm268_vm6, %v270_v63, %v266_v59  ;;  %v299_v14 = vand.u32 2147483648, %v257_v49  ;;  %vm293_vm12 = vweird.f32 %v257_v49 }
 0x1de   :  { %v275_v51 = vsub.f32 1.0, %v274_v50  ;;  %v297_v16 = vand.u32 2147483647, %v257_v49 }
 0x1df   :  { %v300_v19 = vor.u32 1.1754944e-38, %v299_v14 }
 0x1e0   :  { %v276_v55 = vmul.f32 %v2403_v48, %v275_v51  ;;  %v2405_v58 = vpop.eup %2404  ;;  %vm298_vm14 = vcmp.eq.f32.partialorder %v297_v16, 8.507059e+37 }
 0x1e1   :  { %v305_v6 = vmul.f32 %v2405_v58, %v271_v3 }
 0x1e2   :  { %v277_v60 = vadd.f32 %v2403_v48, %v276_v55 }
 0x1e3   :  { %v2407_v61 = vpop.eup %2406 }
 0x1e4   :  { %v289_v1 = vmul.f32 %v2407_v61, %v257_v49  ;;  %v281_v2 = vsel %vm280_vm5, %v2403_v48, %v277_v60  ;;  %vm294_vm11 = vweird.f32 %v2407_v61 }
 0x1e5   :  { %v286_v4 = vsel %vm283_vm0, %v285_v62, %v281_v2  ;;  %vm295_vm13 = vmor %vm293_vm12, %vm294_vm11 }
 0x1e6   :  { %v304_v5 = vmul.f32 0.0, %v286_v4  ;;  %v290_v7 = vsub.f32 1.0, %v289_v1 }
 0x1e8   :  { %v2814_v10 = vadd.f32 %v305_v6, %v304_v5  ;;  %v291_v12 = vmul.f32 %v2407_v61, %v290_v7  ;;  %v413_v5 = vpop.permute.xlu0 %412 }
 0x1ea   :  { %v292_v13 = vadd.f32 %v2407_v61, %v291_v12  ;;  %2408 = vtanh.f32 %v2814_v10 }
 0x1ec   :  { %v296_v18 = vsel %vm295_vm13, %v2407_v61, %v292_v13 }
 0x1ed   :  { %v301_v23 = vsel %vm298_vm14, %v300_v19, %v296_v18 }
 0x1f0   :  { %v2409_v20 = vpop.eup %2408 }
 0x1f1   :  { %v2817_v24 = vmul.f32 %v2409_v20, %v301_v23 }
 0x1f3   :  { %421 = vrot.lane.b32.xlu1 %v2817_v24, %s2676_s28 }
 0x22c   :  { %v342_v27 = vpop.permute.xlu2 %341 }
 0x22d   :  { %v351_v28 = vadd.f32 %v342_v27, %v2760_v17 }
 0x22f   :  { %v2067_v33 = vmul.f32 -1.442695, %v351_v28 }
 0x234   :  { %v338_v29 = vpop.permute.xlu1 %337  ;;  %v344_v47 = vpop.permute.xlu2 %343 }
 0x235   :  { %v349_v31 = vadd.f32 %v338_v29, %v2754_v11  ;;  %v352_v50 = vadd.f32 %v344_v47, %v2763_v30 }
 0x237   :  { %v2065_v32 = vmul.f32 -1.442695, %v349_v31 }
 0x239   :  { %2410 = vpow2.f32 %v2065_v32 }
 0x23a   :  { %2412 = vpow2.f32 %v2067_v33 }
 0x23c   :  { %v340_v34 = vpop.permute.xlu1 %339 }
 0x23d   :  { %v350_v35 = vadd.f32 %v340_v34, %v2757_v15 }
 0x23f   :  { %v2411_v36 = vpop.eup %2410  ;;  %v2066_v37 = vmul.f32 -1.442695, %v350_v35 }
 0x240   :  { %v362_v38 = vadd.f32 1.0, %v2411_v36  ;;  %v2413_v39 = vpop.eup %2412 }
 0x241   :  { %2414 = vpow2.f32 %v2066_v37  ;;  %v364_v40 = vadd.f32 1.0, %v2413_v39 }
 0x242   :  { %2416 = vrcp.f32 %v362_v38  ;;  %v376_v54 = vand.u32 2147483648, %v362_v38  ;;  %vm370_vm15 = vweird.f32 %v362_v38  ;;  %v374_v55 = vand.u32 2147483647, %v362_v38 }
 0x243   :  { %2418 = vrcp.f32 %v364_v40  ;;  %v406_v18 = vand.u32 2147483648, %v364_v40  ;;  %v404_v19 = vand.u32 2147483647, %v364_v40 }
 0x244   :  { %v377_v62 = vor.u32 1.1754944e-38, %v376_v54  ;;  %vm375_vm11 = vcmp.eq.f32.partialorder %v374_v55, 8.507059e+37 }
 0x245   :  { %v407_v23 = vor.u32 1.1754944e-38, %v406_v18 }
 0x247   :  { %v2415_v41 = vpop.eup %2414 }
 0x248   :  { %v2417_v42 = vpop.eup %2416  ;;  %v363_v43 = vadd.f32 1.0, %v2415_v41 }
 0x249   :  { %v366_v44 = vmul.f32 %v2417_v42, %v362_v38  ;;  %v2419_v48 = vpop.eup %2418  ;;  %vm371_vm0 = vweird.f32 %v2417_v42 }
 0x24a   :  { %2420 = vrcp.f32 %v363_v43  ;;  %v396_v53 = vmul.f32 %v2419_v48, %v364_v40  ;;  %vm372_vm5 = vmor %vm370_vm15, %vm371_vm0  ;;  %v391_v57 = vand.u32 2147483648, %v363_v43  ;;  %v389_v60 = vand.u32 2147483647, %v363_v43 }
 0x24b   :  { %v367_v45 = vsub.f32 1.0, %v366_v44  ;;  %2422 = vtanh.f32 %v352_v50  ;;  %vm385_vm12 = vweird.f32 %v363_v43  ;;  %vm401_vm0 = vweird.f32 %v2419_v48 }
 0x24c   :  { %v397_v61 = vsub.f32 1.0, %v396_v53  ;;  %v392_v2 = vor.u32 1.1754944e-38, %v391_v57  ;;  %vm390_vm14 = vcmp.eq.f32.partialorder %v389_v60, 8.507059e+37  ;;  %vm400_vm15 = vweird.f32 %v364_v40 }
 0x24d   :  { %v368_v46 = vmul.f32 %v2417_v42, %v367_v45 }
 0x24e   :  { %v398_v7 = vmul.f32 %v2419_v48, %v397_v61 }
 0x24f   :  { %v369_v51 = vadd.f32 %v2417_v42, %v368_v46 }
 0x250   :  { %v2421_v49 = vpop.eup %2420  ;;  %v399_v16 = vadd.f32 %v2419_v48, %v398_v7 }
 0x251   :  { %v381_v52 = vmul.f32 %v2421_v49, %v363_v43  ;;  %v373_v58 = vsel %vm372_vm5, %v2417_v42, %v369_v51  ;;  %vm386_vm6 = vweird.f32 %v2421_v49  ;;  %v2423_v4 = vpop.eup %2422  ;;  %vm402_vm5 = vmor %vm400_vm15, %vm401_vm0 }
 0x252   :  { %v378_v1 = vsel %vm375_vm11, %v377_v62, %v373_v58  ;;  %vm387_vm13 = vmor %vm385_vm12, %vm386_vm6  ;;  %v403_v20 = vsel %vm402_vm5, %v2419_v48, %v399_v16  ;;  %vm405_vm6 = vcmp.eq.f32.partialorder %v404_v19, 8.507059e+37 }
 0x253   :  { %v382_v56 = vsub.f32 1.0, %v381_v52  ;;  %v416_v12 = vmul.f32 %v2423_v4, %v378_v1  ;;  %v408_v28 = vsel %vm405_vm6, %v407_v23, %v403_v20 }
 0x255   :  { %v383_v59 = vmul.f32 %v2421_v49, %v382_v56 }
 0x257   :  { %v384_v63 = vadd.f32 %v2421_v49, %v383_v59 }
 0x259   :  { %v388_v3 = vsel %vm387_vm13, %v2421_v49, %v384_v63 }
 0x25a   :  { %v393_v6 = vsel %vm390_vm14, %v392_v2, %v388_v3 }
 0x25b   :  { %v415_v13 = vmul.f32 %v413_v5, %v393_v6 }
 0x25d   :  { %v417_v14 = vadd.f32 %v416_v12, %v415_v13 }
 0x25f   :  { %2424 = vtanh.f32 %v417_v14 }
 0x265   :  { %v2425_v27 = vpop.eup %2424  ;;  %v422_v31 = vpop.permute.xlu1 %421 }
 0x266   :  { %v419_v29 = vmul.f32 %v2425_v27, %v408_v28 }
 0x268   :  { %v2283_v32 = vpack.i.bf16 %v422_v31, %v419_v29 }
 0x26a   :  { %2284 = vrot.lane.b32.xlu1 %v2283_v32, %s2678_s8  ;;  %2279 = vrot.lane.b32.xlu0 %v2283_v32, %s2679_s9  ;;  %s2694_s8 = smov 33  }
 0x26b   :  { %2274 = vrot.lane.b32.xlu2 %v2283_v32, %s2680_s10  ;;  %s2695_s10 = smov 31  }
 0x2c5   :  { %v2275_v33 = vpop.permute.xlu2 %2274 }
 0x2c6   :  { %v2277_v34 = vunpack.i.h.bf16 %v2275_v33  ;;  %v2276_v35 = vunpack.i.l.bf16 %v2275_v33 }
 0x2c8   :  { %v2069_v36 = vpack.c.bf16 %v2277_v34, %v2276_v35  ;;  %v438_v37 = vsel %vm204_vm2, %v2276_v35, 0.0 }
 0x2c9   :  { %v532_v38 = vpack.c.bf16 %v438_v37, %v438_v37 }
 0x2ca   :  { %2070 = vmatpush.bf16.msk.msrb.mxu0 %vm2771_vm3, %v2069_v36 }
 0x2cb   :  { %v534_v39 = vsel %vm97_vm4, %v532_v38, 0 }
 0x2cc   :  { %542 = vmatpush.bf16.msrb.mxu1 %v534_v39 }
 0x2dc   :  { %v2285_v40 = vpop.permute.xlu1 %2284  ;;  %v2280_v41 = vpop.permute.xlu0 %2279 }
 0x2dd   :  { %v2286_v42 = vunpack.i.l.bf16 %v2285_v40  ;;  %v2282_v43 = vunpack.i.h.bf16 %v2280_v41  ;;  %v2281_v44 = vunpack.i.l.bf16 %v2280_v41  ;;  %v2287_v45 = vunpack.i.h.bf16 %v2285_v40 }
 0x2df   :  { %v2083_v46 = vpack.c.bf16 %v2281_v44, %v2286_v42  ;;  %v447_v47 = vpack.c.bf16 %v2282_v43, %v2281_v44  ;;  %v2074_v48 = vpack.c.bf16 %v2287_v45, %v2286_v42 }
 0x2e1   :  { %455 = vmatpush.bf16.msrb.mxu0 %v447_v47  ;;  %2084 = vmatpush.bf16.msk.msrb.mxu1 %vm2784_vm9, %v2083_v46 }
 0x2e4   :  { %2085 = vmatmul.msk.bf16.vlgmr.msrb.gmra.mxu1 %vm90_vm1, %v2733_v0 }
 0x2e5   :  { %2075 = vmatpush.bf16.msk.msrb.mxu0 %vm2779_vm7, %v2074_v48 }
 0x2e8   :  { %2076 = vmatmul.msk.bf16.vlgmr.msrb.gmra.mxu0 %vm220_vm10, %v2791_v25 }
 0x2f4   :  { %2086 = vmatmul.msk.bf16.gmra.mxu1 %vm90_vm1, %v2750_v9 }
 0x2f8   :  { %2077 = vmatmul.msk.bf16.gmra.mxu0 %vm220_vm10, %v2804_v26 }
 0x361   :  { %v545_v49 = vpop.f32.mrf.mxu1 }
 0x362   :  { %559 = vrot.lane.b32.xlu2 %v545_v49, %s2681_s11 }
 0x365   :  { %v458_v50 = vpop.f32.mrf.mxu0 }
 0x366   :  { %v2078_v51 = vmul.f32 -1.442695, %v458_v50 }
 0x368   :  { %2426 = vpow2.f32 %v2078_v51 }
 0x369   :  { %v547_v52 = vpop.f32.mrf.mxu1 }
 0x36a   :  { %561 = vrot.lane.b32.xlu0 %v547_v52, %s2681_s11 }
 0x36d   :  { %v460_v53 = vpop.f32.mrf.mxu0 }
 0x36e   :  { %v2427_v54 = vpop.eup %2426  ;;  %v2079_v55 = vmul.f32 -1.442695, %v460_v53 }
 0x36f   :  { %v477_v56 = vadd.f32 1.0, %v2427_v54 }
 0x370   :  { %2428 = vpow2.f32 %v2079_v55 }
 0x371   :  { %2430 = vrcp.f32 %v477_v56  ;;  %v550_v57 = vpop.f32.mrf.mxu1  ;;  %vm485_vm12 = vweird.f32 %v477_v56  ;;  %v491_v18 = vand.u32 2147483648, %v477_v56  ;;  %v489_v20 = vand.u32 2147483647, %v477_v56 }
 0x372   :  { %634 = vrot.lane.b32.xlu0 %v417_v14, %s2676_s28  ;;  %563 = vrot.lane.b32.xlu1 %v550_v57, %s2681_s11 }
 0x373   :  { %v492_v33 = vor.u32 1.1754944e-38, %v491_v18  ;;  %vm490_vm5 = vcmp.eq.f32.partialorder %v489_v20, 8.507059e+37 }
 0x375   :  { %v463_v58 = vpop.f32.mrf.mxu0 }
 0x376   :  { %v2429_v59 = vpop.eup %2428  ;;  %v2080_v60 = vmul.f32 -1.442695, %v463_v58 }
 0x377   :  { %v2431_v61 = vpop.eup %2430  ;;  %v478_v62 = vadd.f32 1.0, %v2429_v59 }
 0x378   :  { %v481_v63 = vmul.f32 %v2431_v61, %v477_v56  ;;  %2432 = vpow2.f32 %v2080_v60  ;;  %vm486_vm11 = vweird.f32 %v2431_v61 }
 0x379   :  { %2434 = vrcp.f32 %v478_v62  ;;  %v552_v1 = vpop.f32.mrf.mxu1  ;;  %v506_v16 = vand.u32 2147483648, %v478_v62  ;;  %v504_v23 = vand.u32 2147483647, %v478_v62  ;;  %vm487_vm14 = vmor %vm485_vm12, %vm486_vm11  ;;  %vm500_vm0 = vweird.f32 %v478_v62 }
 0x37a   :  { %v482_v2 = vsub.f32 1.0, %v481_v63  ;;  %565 = vrot.lane.b32.xlu2 %v552_v1, %s2681_s11 }
 0x37b   :  { %v507_v32 = vor.u32 1.1754944e-38, %v506_v16  ;;  %vm505_vm6 = vcmp.eq.f32.partialorder %v504_v23, 8.507059e+37 }
 0x37c   :  { %v483_v5 = vmul.f32 %v2431_v61, %v482_v2 }
 0x37d   :  { %v465_v3 = vpop.f32.mrf.mxu0 }
 0x37e   :  { %v2433_v4 = vpop.eup %2432  ;;  %2436 = vtanh.f32 %v465_v3  ;;  %v484_v14 = vadd.f32 %v2431_v61, %v483_v5 }
 0x37f   :  { %v2435_v6 = vpop.eup %2434  ;;  %v479_v7 = vadd.f32 1.0, %v2433_v4 }
 0x380   :  { %v496_v12 = vmul.f32 %v2435_v6, %v478_v62  ;;  %vm501_vm13 = vweird.f32 %v2435_v6  ;;  %v488_v28 = vsel %vm487_vm14, %v2431_v61, %v484_v14 }
 0x381   :  { %2438 = vrcp.f32 %v479_v7  ;;  %vm502_vm15 = vmor %vm500_vm0, %vm501_vm13  ;;  %v493_v36 = vsel %vm490_vm5, %v492_v33, %v488_v28  ;;  %v521_v44 = vand.u32 2147483648, %v479_v7  ;;  %vm515_vm12 = vweird.f32 %v479_v7 }
 0x382   :  { %v497_v13 = vsub.f32 1.0, %v496_v12  ;;  %v519_v45 = vand.u32 2147483647, %v479_v7 }
 0x383   :  { %v522_v47 = vor.u32 1.1754944e-38, %v521_v44 }
 0x384   :  { %v498_v19 = vmul.f32 %v2435_v6, %v497_v13  ;;  %v2437_v27 = vpop.eup %2436  ;;  %vm520_vm14 = vcmp.eq.f32.partialorder %v519_v45, 8.507059e+37 }
 0x385   :  { %v527_v39 = vmul.f32 %v2437_v27, %v493_v36 }
 0x386   :  { %v499_v29 = vadd.f32 %v2435_v6, %v498_v19 }
 0x387   :  { %v2439_v31 = vpop.eup %2438 }
 0x388   :  { %v511_v34 = vmul.f32 %v2439_v31, %v479_v7  ;;  %v503_v35 = vsel %vm502_vm15, %v2435_v6, %v499_v29  ;;  %vm516_vm11 = vweird.f32 %v2439_v31 }
 0x389   :  { %v508_v37 = vsel %vm505_vm6, %v507_v32, %v503_v35  ;;  %vm517_vm13 = vmor %vm515_vm12, %vm516_vm11 }
 0x38a   :  { %v526_v38 = vmul.f32 %v508_v37, %v2814_v10  ;;  %v512_v40 = vsub.f32 1.0, %v511_v34 }
 0x38c   :  { %v2848_v41 = vadd.f32 %v527_v39, %v526_v38  ;;  %v513_v42 = vmul.f32 %v2439_v31, %v512_v40 }
 0x38e   :  { %v514_v43 = vadd.f32 %v2439_v31, %v513_v42  ;;  %2440 = vtanh.f32 %v2848_v41 }
 0x390   :  { %v518_v46 = vsel %vm517_vm13, %v2439_v31, %v514_v43 }
 0x391   :  { %v523_v49 = vsel %vm520_vm14, %v522_v47, %v518_v46 }
 0x394   :  { %v2441_v48 = vpop.eup %2440 }
 0x395   :  { %v2851_v50 = vmul.f32 %v2441_v48, %v523_v49 }
 0x397   :  { %643 = vrot.lane.b32.xlu1 %v2851_v50, %s2681_s11 }
 0x3bc   :  { %v560_v10 = vpop.permute.xlu2 %559 }
 0x3bd   :  { %v571_v51 = vadd.f32 %v560_v10, %v2754_v11 }
 0x3bf   :  { %v2087_v52 = vmul.f32 -1.442695, %v571_v51 }
 0x3c1   :  { %2442 = vpow2.f32 %v2087_v52 }
 0x3c7   :  { %v2443_v53 = vpop.eup %2442 }
 0x3c8   :  { %v584_v54 = vadd.f32 1.0, %v2443_v53 }
 0x3ca   :  { %2444 = vrcp.f32 %v584_v54  ;;  %vm592_vm15 = vweird.f32 %v584_v54  ;;  %v598_v18 = vand.u32 2147483648, %v584_v54  ;;  %v596_v20 = vand.u32 2147483647, %v584_v54 }
 0x3cc   :  { %v599_v33 = vor.u32 1.1754944e-38, %v598_v18  ;;  %vm597_vm13 = vcmp.eq.f32.partialorder %v596_v20, 8.507059e+37 }
 0x3d0   :  { %v2445_v58 = vpop.eup %2444 }
 0x3d1   :  { %v588_v62 = vmul.f32 %v2445_v58, %v584_v54  ;;  %vm593_vm0 = vweird.f32 %v2445_v58 }
 0x3d2   :  { %vm594_vm6 = vmor %vm592_vm15, %vm593_vm0 }
 0x3d3   :  { %v589_v3 = vsub.f32 1.0, %v588_v62 }
 0x3d4   :  { %v566_v2 = vpop.permute.xlu2 %565 }
 0x3d5   :  { %v574_v4 = vadd.f32 %v566_v2, %v2763_v30  ;;  %v590_v6 = vmul.f32 %v2445_v58, %v589_v3 }
 0x3d7   :  { %v591_v14 = vadd.f32 %v2445_v58, %v590_v6 }
 0x3d9   :  { %v595_v29 = vsel %vm594_vm6, %v2445_v58, %v591_v14 }
 0x3da   :  { %v600_v37 = vsel %vm597_vm13, %v599_v33, %v595_v29 }
 0x3dc   :  { %v562_v55 = vpop.permute.xlu0 %561 }
 0x3dd   :  { %v572_v56 = vadd.f32 %v562_v55, %v2757_v15 }
 0x3df   :  { %v2088_v57 = vmul.f32 -1.442695, %v572_v56 }
 0x3e1   :  { %2446 = vpow2.f32 %v2088_v57 }
 0x3e4   :  { %v564_v59 = vpop.permute.xlu1 %563  ;;  %v635_v39 = vpop.permute.xlu0 %634 }
 0x3e5   :  { %v573_v60 = vadd.f32 %v564_v59, %v2760_v17 }
 0x3e7   :  { %v2447_v61 = vpop.eup %2446  ;;  %v2089_v63 = vmul.f32 -1.442695, %v573_v60 }
 0x3e8   :  { %v585_v1 = vadd.f32 1.0, %v2447_v61 }
 0x3e9   :  { %2448 = vpow2.f32 %v2089_v63 }
 0x3ea   :  { %2450 = vrcp.f32 %v585_v1  ;;  %v613_v19 = vand.u32 2147483648, %v585_v1  ;;  %v611_v27 = vand.u32 2147483647, %v585_v1  ;;  %vm607_vm11 = vweird.f32 %v585_v1 }
 0x3eb   :  { %2452 = vtanh.f32 %v574_v4 }
 0x3ec   :  { %v614_v34 = vor.u32 1.1754944e-38, %v613_v19  ;;  %vm612_vm14 = vcmp.eq.f32.partialorder %v611_v27, 8.507059e+37 }
 0x3ef   :  { %v2449_v5 = vpop.eup %2448 }
 0x3f0   :  { %v2451_v7 = vpop.eup %2450  ;;  %v586_v12 = vadd.f32 1.0, %v2449_v5 }
 0x3f1   :  { %v603_v13 = vmul.f32 %v2451_v7, %v585_v1  ;;  %vm608_vm5 = vweird.f32 %v2451_v7  ;;  %v2453_v28 = vpop.eup %2452 }
 0x3f2   :  { %2454 = vrcp.f32 %v586_v12  ;;  %vm609_vm12 = vmor %vm607_vm11, %vm608_vm5  ;;  %v638_v42 = vmul.f32 %v2453_v28, %v600_v37  ;;  %v628_v47 = vand.u32 2147483648, %v586_v12  ;;  %vm622_vm15 = vweird.f32 %v586_v12 }
 0x3f3   :  { %v604_v16 = vsub.f32 1.0, %v603_v13  ;;  %v626_v48 = vand.u32 2147483647, %v586_v12 }
 0x3f4   :  { %v629_v51 = vor.u32 1.1754944e-38, %v628_v47 }
 0x3f5   :  { %v605_v23 = vmul.f32 %v2451_v7, %v604_v16  ;;  %vm627_vm6 = vcmp.eq.f32.partialorder %v626_v48, 8.507059e+37 }
 0x3f7   :  { %v606_v31 = vadd.f32 %v2451_v7, %v605_v23 }
 0x3f8   :  { %v2455_v32 = vpop.eup %2454 }
 0x3f9   :  { %v610_v35 = vsel %vm609_vm12, %v2451_v7, %v606_v31  ;;  %v618_v36 = vmul.f32 %v2455_v32, %v586_v12  ;;  %vm623_vm0 = vweird.f32 %v2455_v32 }
 0x3fa   :  { %v615_v38 = vsel %vm612_vm14, %v614_v34, %v610_v35  ;;  %vm624_vm5 = vmor %vm622_vm15, %vm623_vm0 }
 0x3fb   :  { %v637_v40 = vmul.f32 %v635_v39, %v615_v38  ;;  %v619_v43 = vsub.f32 1.0, %v618_v36 }
 0x3fd   :  { %v639_v44 = vadd.f32 %v638_v42, %v637_v40  ;;  %v620_v45 = vmul.f32 %v2455_v32, %v619_v43 }
 0x3ff   :  { %2456 = vtanh.f32 %v639_v44  ;;  %v621_v46 = vadd.f32 %v2455_v32, %v620_v45 }
 0x401   :  { %v625_v49 = vsel %vm624_vm5, %v2455_v32, %v621_v46 }
 0x402   :  { %v630_v52 = vsel %vm627_vm6, %v629_v51, %v625_v49 }
 0x405   :  { %v2457_v10 = vpop.eup %2456 }
 0x406   :  { %v641_v53 = vmul.f32 %v2457_v10, %v630_v52 }
 0x409   :  { %v644_v54 = vpop.permute.xlu1 %643 }
 0x40a   :  { %v2298_v55 = vpack.i.bf16 %v644_v54, %v641_v53 }
 0x40c   :  { %2299 = vrot.lane.b32.xlu1 %v2298_v55, %s2682_s12  ;;  %2294 = vrot.lane.b32.xlu0 %v2298_v55, %s2683_s13 }
 0x40d   :  { %2289 = vrot.lane.b32.xlu2 %v2298_v55, %s2684_s14 }
 0x467   :  { %v2290_v56 = vpop.permute.xlu2 %2289 }
 0x468   :  { %v2292_v57 = vunpack.i.h.bf16 %v2290_v56  ;;  %v2291_v58 = vunpack.i.l.bf16 %v2290_v56 }
 0x46a   :  { %v2091_v59 = vpack.c.bf16 %v2292_v57, %v2291_v58  ;;  %v660_v60 = vsel %vm204_vm2, %v2291_v58, 0.0 }
 0x46b   :  { %v754_v61 = vpack.c.bf16 %v660_v60, %v660_v60 }
 0x46c   :  { %2092 = vmatpush.bf16.msk.msra.mxu3 %vm2771_vm3, %v2091_v59 }
 0x46d   :  { %v756_v62 = vsel %vm97_vm4, %v754_v61, 0 }
 0x46e   :  { %764 = vmatpush.bf16.msrb.mxu2 %v756_v62 }
 0x47e   :  { %v2300_v63 = vpop.permute.xlu1 %2299  ;;  %v2295_v1 = vpop.permute.xlu0 %2294 }
 0x47f   :  { %v2301_v2 = vunpack.i.l.bf16 %v2300_v63  ;;  %v2297_v3 = vunpack.i.h.bf16 %v2295_v1  ;;  %v2296_v4 = vunpack.i.l.bf16 %v2295_v1  ;;  %v2302_v5 = vunpack.i.h.bf16 %v2300_v63 }
 0x481   :  { %v669_v6 = vpack.c.bf16 %v2297_v3, %v2296_v4  ;;  %v2105_v7 = vpack.c.bf16 %v2296_v4, %v2301_v2  ;;  %v2096_v12 = vpack.c.bf16 %v2302_v5, %v2301_v2 }
 0x483   :  { %677 = vmatpush.bf16.msra.mxu3 %v669_v6  ;;  %2106 = vmatpush.bf16.msk.msrb.mxu2 %vm2784_vm9, %v2105_v7 }
 0x486   :  { %2107 = vmatmul.msk.bf16.vlgmr.msrb.gmra.mxu2 %vm90_vm1, %v2733_v0 }
 0x487   :  { %2097 = vmatpush.bf16.msk.msra.mxu3 %vm2779_vm7, %v2096_v12 }
 0x48a   :  { %2098 = vmatmul.msk.bf16.vlgmr.msra.gmra.mxu3 %vm220_vm10, %v2791_v25 }
 0x496   :  { %2108 = vmatmul.msk.bf16.gmra.mxu2 %vm90_vm1, %v2750_v9 }
 0x49a   :  { %2099 = vmatmul.msk.bf16.gmra.mxu3 %vm220_vm10, %v2804_v26 }
 0x509   :  { %v767_v13 = vpop.f32.mrf.mxu2 }
 0x50a   :  { %781 = vrot.lane.b32.xlu2 %v767_v13, %s2685_s15 }
 0x50d   :  { %v680_v14 = vpop.f32.mrf.mxu3 }
 0x50e   :  { %v2100_v16 = vmul.f32 -1.442695, %v680_v14 }
 0x510   :  { %2458 = vpow2.f32 %v2100_v16 }
 0x511   :  { %v769_v0 = vpop.f32.mrf.mxu2 }
 0x512   :  { %783 = vrot.lane.b32.xlu0 %v769_v0, %s2685_s15 }
 0x515   :  { %v682_v18 = vpop.f32.mrf.mxu3 }
 0x516   :  { %v2459_v19 = vpop.eup %2458  ;;  %v2101_v20 = vmul.f32 -1.442695, %v682_v18 }
 0x517   :  { %v699_v25 = vadd.f32 1.0, %v2459_v19 }
 0x518   :  { %2460 = vpow2.f32 %v2101_v20 }
 0x519   :  { %2462 = vrcp.f32 %v699_v25  ;;  %v772_v9 = vpop.f32.mrf.mxu2  ;;  %vm707_vm12 = vweird.f32 %v699_v25  ;;  %v711_v46 = vand.u32 2147483647, %v699_v25 }
 0x51a   :  { %856 = vrot.lane.b32.xlu0 %v639_v44, %s2676_s28  ;;  %785 = vrot.lane.b32.xlu1 %v772_v9, %s2685_s15  ;;  %v713_v44 = vand.u32 2147483648, %v699_v25 }
 0x51b   :  { %vm712_vm5 = vcmp.eq.f32.partialorder %v711_v46, 8.507059e+37 }
 0x51c   :  { %v714_v53 = vor.u32 1.1754944e-38, %v713_v44 }
 0x51d   :  { %v685_v26 = vpop.f32.mrf.mxu3 }
 0x51e   :  { %v2461_v23 = vpop.eup %2460  ;;  %v2102_v27 = vmul.f32 -1.442695, %v685_v26 }
 0x51f   :  { %v2463_v28 = vpop.eup %2462  ;;  %v700_v29 = vadd.f32 1.0, %v2461_v23 }
 0x520   :  { %v703_v31 = vmul.f32 %v2463_v28, %v699_v25  ;;  %2464 = vpow2.f32 %v2102_v27  ;;  %vm708_vm11 = vweird.f32 %v2463_v28 }
 0x521   :  { %2466 = vrcp.f32 %v700_v29  ;;  %v774_v32 = vpop.f32.mrf.mxu2  ;;  %v728_v43 = vand.u32 2147483648, %v700_v29  ;;  %v726_v47 = vand.u32 2147483647, %v700_v29  ;;  %vm709_vm14 = vmor %vm707_vm12, %vm708_vm11  ;;  %vm722_vm0 = vweird.f32 %v700_v29 }
 0x522   :  { %v704_v33 = vsub.f32 1.0, %v703_v31  ;;  %787 = vrot.lane.b32.xlu2 %v774_v32, %s2685_s15 }
 0x523   :  { %v729_v52 = vor.u32 1.1754944e-38, %v728_v43  ;;  %vm727_vm6 = vcmp.eq.f32.partialorder %v726_v47, 8.507059e+37 }
 0x524   :  { %v705_v36 = vmul.f32 %v2463_v28, %v704_v33 }
 0x525   :  { %v687_v34 = vpop.f32.mrf.mxu3 }
 0x526   :  { %v2465_v35 = vpop.eup %2464  ;;  %2468 = vtanh.f32 %v687_v34  ;;  %v706_v42 = vadd.f32 %v2463_v28, %v705_v36 }
 0x527   :  { %v2467_v37 = vpop.eup %2466  ;;  %v701_v38 = vadd.f32 1.0, %v2465_v35 }
 0x528   :  { %v718_v39 = vmul.f32 %v2467_v37, %v700_v29  ;;  %vm723_vm13 = vweird.f32 %v2467_v37  ;;  %v710_v49 = vsel %vm709_vm14, %v2463_v28, %v706_v42 }
 0x529   :  { %2470 = vrcp.f32 %v701_v38  ;;  %vm724_vm15 = vmor %vm722_vm0, %vm723_vm13  ;;  %v715_v56 = vsel %vm712_vm5, %v714_v53, %v710_v49  ;;  %v743_v1 = vand.u32 2147483648, %v701_v38  ;;  %vm737_vm12 = vweird.f32 %v701_v38 }
 0x52a   :  { %v719_v40 = vsub.f32 1.0, %v718_v39  ;;  %v741_v2 = vand.u32 2147483647, %v701_v38 }
 0x52b   :  { %v744_v4 = vor.u32 1.1754944e-38, %v743_v1 }
 0x52c   :  { %v720_v45 = vmul.f32 %v2467_v37, %v719_v40  ;;  %v2469_v48 = vpop.eup %2468  ;;  %vm742_vm14 = vcmp.eq.f32.partialorder %v741_v2, 8.507059e+37 }
 0x52d   :  { %v749_v59 = vmul.f32 %v2469_v48, %v715_v56 }
 0x52e   :  { %v721_v10 = vadd.f32 %v2467_v37, %v720_v45 }
 0x52f   :  { %v2471_v51 = vpop.eup %2470 }
 0x530   :  { %v733_v54 = vmul.f32 %v2471_v51, %v701_v38  ;;  %v725_v55 = vsel %vm724_vm15, %v2467_v37, %v721_v10  ;;  %vm738_vm11 = vweird.f32 %v2471_v51 }
 0x531   :  { %v730_v57 = vsel %vm727_vm6, %v729_v52, %v725_v55  ;;  %vm739_vm13 = vmor %vm737_vm12, %vm738_vm11 }
 0x532   :  { %v748_v58 = vmul.f32 %v730_v57, %v2848_v41  ;;  %v734_v60 = vsub.f32 1.0, %v733_v54 }
 0x534   :  { %v2882_v61 = vadd.f32 %v749_v59, %v748_v58  ;;  %v735_v62 = vmul.f32 %v2471_v51, %v734_v60 }
 0x536   :  { %v736_v63 = vadd.f32 %v2471_v51, %v735_v62  ;;  %2472 = vtanh.f32 %v2882_v61 }
 0x538   :  { %v740_v3 = vsel %vm739_vm13, %v2471_v51, %v736_v63 }
 0x539   :  { %v745_v6 = vsel %vm742_vm14, %v744_v4, %v740_v3 }
 0x53c   :  { %v2473_v5 = vpop.eup %2472 }
 0x53d   :  { %v2885_v7 = vmul.f32 %v2473_v5, %v745_v6 }
 0x53f   :  { %865 = vrot.lane.b32.xlu1 %v2885_v7, %s2685_s15 }
 0x564   :  { %v782_v41 = vpop.permute.xlu2 %781 }
 0x565   :  { %v793_v12 = vadd.f32 %v782_v41, %v2754_v11 }
 0x567   :  { %v2109_v13 = vmul.f32 -1.442695, %v793_v12 }
 0x569   :  { %2474 = vpow2.f32 %v2109_v13 }
 0x56f   :  { %v2475_v14 = vpop.eup %2474 }
 0x570   :  { %v806_v16 = vadd.f32 1.0, %v2475_v14 }
 0x572   :  { %2476 = vrcp.f32 %v806_v16  ;;  %vm814_vm15 = vweird.f32 %v806_v16  ;;  %v820_v40 = vand.u32 2147483648, %v806_v16  ;;  %v818_v43 = vand.u32 2147483647, %v806_v16 }
 0x574   :  { %v821_v10 = vor.u32 1.1754944e-38, %v820_v40  ;;  %vm819_vm13 = vcmp.eq.f32.partialorder %v818_v43, 8.507059e+37 }
 0x578   :  { %v2477_v20 = vpop.eup %2476 }
 0x579   :  { %v810_v23 = vmul.f32 %v2477_v20, %v806_v16  ;;  %vm815_vm0 = vweird.f32 %v2477_v20 }
 0x57a   :  { %vm816_vm6 = vmor %vm814_vm15, %vm815_vm0 }
 0x57b   :  { %v811_v31 = vsub.f32 1.0, %v810_v23 }
 0x57c   :  { %v788_v29 = vpop.permute.xlu2 %787 }
 0x57d   :  { %v796_v32 = vadd.f32 %v788_v29, %v2763_v30  ;;  %v812_v34 = vmul.f32 %v2477_v20, %v811_v31 }
 0x57f   :  { %v813_v38 = vadd.f32 %v2477_v20, %v812_v34  ;;  %v2906_v34 = vld [vmem:[%s3111_s2] sm:$0xff] }
 0x581   :  { %v817_v47 = vsel %vm816_vm6, %v2477_v20, %v813_v38 }
 0x582   :  { %v822_v54 = vsel %vm819_vm13, %v821_v10, %v817_v47 }
 0x584   :  { %v784_v0 = vpop.permute.xlu0 %783 }
 0x585   :  { %v794_v18 = vadd.f32 %v784_v0, %v2757_v15 }
 0x587   :  { %v2110_v19 = vmul.f32 -1.442695, %v794_v18 }
 0x589   :  { %2478 = vpow2.f32 %v2110_v19 }
 0x58c   :  { %v786_v25 = vpop.permute.xlu1 %785  ;;  %v857_v56 = vpop.permute.xlu0 %856 }
 0x58d   :  { %v795_v9 = vadd.f32 %v786_v25, %v2760_v17 }
 0x58f   :  { %v2479_v26 = vpop.eup %2478  ;;  %v2111_v27 = vmul.f32 -1.442695, %v795_v9 }
 0x590   :  { %v807_v28 = vadd.f32 1.0, %v2479_v26 }
 0x591   :  { %2480 = vpow2.f32 %v2111_v27 }
 0x592   :  { %2482 = vrcp.f32 %v807_v28  ;;  %v835_v42 = vand.u32 2147483648, %v807_v28  ;;  %v833_v45 = vand.u32 2147483647, %v807_v28  ;;  %vm829_vm11 = vweird.f32 %v807_v28 }
 0x593   :  { %2484 = vtanh.f32 %v796_v32 }
 0x594   :  { %v836_v51 = vor.u32 1.1754944e-38, %v835_v42  ;;  %vm834_vm14 = vcmp.eq.f32.partialorder %v833_v45, 8.507059e+37 }
 0x597   :  { %v2481_v33 = vpop.eup %2480 }
 0x598   :  { %v2483_v35 = vpop.eup %2482  ;;  %v808_v36 = vadd.f32 1.0, %v2481_v33 }
 0x599   :  { %v825_v37 = vmul.f32 %v2483_v35, %v807_v28  ;;  %vm830_vm5 = vweird.f32 %v2483_v35  ;;  %v2485_v46 = vpop.eup %2484 }
 0x59a   :  { %2486 = vrcp.f32 %v808_v36  ;;  %vm831_vm12 = vmor %vm829_vm11, %vm830_vm5  ;;  %v860_v58 = vmul.f32 %v2485_v46, %v822_v54  ;;  %v850_v1 = vand.u32 2147483648, %v808_v36  ;;  %vm844_vm15 = vweird.f32 %v808_v36 }
 0x59b   :  { %v826_v39 = vsub.f32 1.0, %v825_v37  ;;  %v848_v2 = vand.u32 2147483647, %v808_v36  ;;  %v2929_v37 = vld [vmem:[%s3112_s3 + $0x8] sm:$0xff] }
 0x59c   :  { %v851_v5 = vor.u32 1.1754944e-38, %v850_v1 }
 0x59d   :  { %v827_v44 = vmul.f32 %v2483_v35, %v826_v39  ;;  %vm849_vm6 = vcmp.eq.f32.partialorder %v848_v2, 8.507059e+37 }
 0x59f   :  { %v828_v48 = vadd.f32 %v2483_v35, %v827_v44 }
 0x5a0   :  { %v2487_v49 = vpop.eup %2486 }
 0x5a1   :  { %v832_v52 = vsel %vm831_vm12, %v2483_v35, %v828_v48  ;;  %v840_v53 = vmul.f32 %v2487_v49, %v808_v36  ;;  %vm845_vm0 = vweird.f32 %v2487_v49  ;;  %v2915_v35 = vld [vmem:[%s3112_s3] sm:$0xff]  ;;  %v2922_v36 = vld [vmem:[%s3111_s2 + $0x8] sm:$0xff] }
 0x5a2   :  { %v837_v55 = vsel %vm834_vm14, %v836_v51, %v832_v52  ;;  %vm846_vm5 = vmor %vm844_vm15, %vm845_vm0 }
 0x5a3   :  { %v859_v57 = vmul.f32 %v857_v56, %v837_v55  ;;  %v841_v59 = vsub.f32 1.0, %v840_v53 }
 0x5a5   :  { %v2893_v60 = vadd.f32 %v860_v58, %v859_v57  ;;  %v842_v62 = vmul.f32 %v2487_v49, %v841_v59 }
 0x5a7   :  { %2488 = vtanh.f32 %v2893_v60  ;;  %v843_v63 = vadd.f32 %v2487_v49, %v842_v62 }
 0x5a9   :  { %v847_v3 = vsel %vm846_vm5, %v2487_v49, %v843_v63 }
 0x5aa   :  { %v852_v6 = vsel %vm849_vm6, %v851_v5, %v847_v3 }
 0x5ad   :  { %v2489_v4 = vpop.eup %2488 }
 0x5ae   :  { %v863_v41 = vmul.f32 %v2489_v4, %v852_v6 }
 0x5b1   :  { %v866_v12 = vpop.permute.xlu1 %865 }
 0x5b2   :  { %v2313_v13 = vpack.i.bf16 %v866_v12, %v863_v41 }
 0x5b4   :  { %2314 = vrot.lane.b32.xlu1 %v2313_v13, %s2686_s16  ;;  %2309 = vrot.lane.b32.xlu0 %v2313_v13, %s2687_s17 }
 0x5b5   :  { %2304 = vrot.lane.b32.xlu2 %v2313_v13, %s2688_s18 }
 0x60f   :  { %v2305_v14 = vpop.permute.xlu2 %2304 }
 0x610   :  { %v2307_v16 = vunpack.i.h.bf16 %v2305_v14  ;;  %v2306_v0 = vunpack.i.l.bf16 %v2305_v14 }
 0x612   :  { %v882_v18 = vsel %vm204_vm2, %v2306_v0, 0.0  ;;  %v2113_v19 = vpack.c.bf16 %v2307_v16, %v2306_v0 }
 0x613   :  { %v976_v20 = vpack.c.bf16 %v882_v18, %v882_v18 }
 0x614   :  { %2114 = vmatpush.bf16.msk.msra.mxu0 %vm2771_vm3, %v2113_v19 }
 0x615   :  { %v978_v25 = vsel %vm97_vm4, %v976_v20, 0 }
 0x616   :  { %986 = vmatpush.bf16.msra.mxu1 %v978_v25 }
 0x626   :  { %v2315_v9 = vpop.permute.xlu1 %2314  ;;  %v2310_v26 = vpop.permute.xlu0 %2309 }
 0x627   :  { %v2316_v23 = vunpack.i.l.bf16 %v2315_v9  ;;  %v2312_v27 = vunpack.i.h.bf16 %v2310_v26  ;;  %v2311_v28 = vunpack.i.l.bf16 %v2310_v26  ;;  %v2317_v29 = vunpack.i.h.bf16 %v2315_v9 }
 0x629   :  { %v891_v31 = vpack.c.bf16 %v2312_v27, %v2311_v28  ;;  %v2127_v32 = vpack.c.bf16 %v2311_v28, %v2316_v23  ;;  %v2118_v33 = vpack.c.bf16 %v2317_v29, %v2316_v23 }
 0x62b   :  { %899 = vmatpush.bf16.msra.mxu0 %v891_v31  ;;  %2128 = vmatpush.bf16.msk.msra.mxu1 %vm2784_vm9, %v2127_v32 }
 0x62e   :  { %2129 = vmatmul.msk.bf16.vlgmr.msra.gmra.mxu1 %vm90_vm1, %v2906_v34 }
 0x62f   :  { %2119 = vmatpush.bf16.msk.msra.mxu0 %vm2779_vm7, %v2118_v33 }
 0x632   :  { %2120 = vmatmul.msk.bf16.vlgmr.msra.gmra.mxu0 %vm220_vm10, %v2915_v35 }
 0x63e   :  { %2130 = vmatmul.msk.bf16.gmra.mxu1 %vm90_vm1, %v2922_v36 }
 0x642   :  { %2121 = vmatmul.msk.bf16.gmra.mxu0 %vm220_vm10, %v2929_v37 }
 0x6ab   :  { %v989_v38 = vpop.f32.mrf.mxu1 }
 0x6ac   :  { %1003 = vrot.lane.b32.xlu2 %v989_v38, %s2689_s26 }
 0x6af   :  { %v902_v39 = vpop.f32.mrf.mxu0 }
 0x6b0   :  { %v2122_v40 = vmul.f32 -1.442695, %v902_v39 }
 0x6b2   :  { %2490 = vpow2.f32 %v2122_v40 }
 0x6b3   :  { %v991_v42 = vpop.f32.mrf.mxu1 }
 0x6b4   :  { %1005 = vrot.lane.b32.xlu0 %v991_v42, %s2689_s26 }
 0x6b7   :  { %v904_v43 = vpop.f32.mrf.mxu0 }
 0x6b8   :  { %v2491_v44 = vpop.eup %2490  ;;  %v2123_v45 = vmul.f32 -1.442695, %v904_v43 }
 0x6b9   :  { %v921_v46 = vadd.f32 1.0, %v2491_v44 }
 0x6ba   :  { %2492 = vpow2.f32 %v2123_v45 }
 0x6bb   :  { %2494 = vrcp.f32 %v921_v46  ;;  %v994_v47 = vpop.f32.mrf.mxu1  ;;  %vm929_vm12 = vweird.f32 %v921_v46  ;;  %v935_v3 = vand.u32 2147483648, %v921_v46  ;;  %v933_v5 = vand.u32 2147483647, %v921_v46 }
 0x6bc   :  { %1078 = vrot.lane.b32.xlu0 %v2893_v60, %s2676_s28  ;;  %1007 = vrot.lane.b32.xlu1 %v994_v47, %s2689_s26 }
 0x6bd   :  { %v936_v0 = vor.u32 1.1754944e-38, %v935_v3  ;;  %vm934_vm5 = vcmp.eq.f32.partialorder %v933_v5, 8.507059e+37 }
 0x6bf   :  { %v907_v48 = vpop.f32.mrf.mxu0 }
 0x6c0   :  { %v2493_v49 = vpop.eup %2492  ;;  %v2124_v10 = vmul.f32 -1.442695, %v907_v48 }
 0x6c1   :  { %v2495_v51 = vpop.eup %2494  ;;  %v922_v52 = vadd.f32 1.0, %v2493_v49 }
 0x6c2   :  { %v925_v53 = vmul.f32 %v2495_v51, %v921_v46  ;;  %2496 = vpow2.f32 %v2124_v10  ;;  %vm930_vm11 = vweird.f32 %v2495_v51 }
 0x6c3   :  { %2498 = vrcp.f32 %v922_v52  ;;  %v996_v54 = vpop.f32.mrf.mxu1  ;;  %v950_v2 = vand.u32 2147483648, %v922_v52  ;;  %v948_v6 = vand.u32 2147483647, %v922_v52  ;;  %vm931_vm14 = vmor %vm929_vm12, %vm930_vm11  ;;  %vm944_vm0 = vweird.f32 %v922_v52 }
 0x6c4   :  { %v926_v55 = vsub.f32 1.0, %v925_v53  ;;  %1009 = vrot.lane.b32.xlu2 %v996_v54, %s2689_s26 }
 0x6c5   :  { %v951_v16 = vor.u32 1.1754944e-38, %v950_v2  ;;  %vm949_vm6 = vcmp.eq.f32.partialorder %v948_v6, 8.507059e+37 }
 0x6c6   :  { %v927_v58 = vmul.f32 %v2495_v51, %v926_v55 }
 0x6c7   :  { %v909_v56 = vpop.f32.mrf.mxu0 }
 0x6c8   :  { %v2497_v57 = vpop.eup %2496  ;;  %2500 = vtanh.f32 %v909_v56  ;;  %v928_v1 = vadd.f32 %v2495_v51, %v927_v58 }
 0x6c9   :  { %v2499_v59 = vpop.eup %2498  ;;  %v923_v62 = vadd.f32 1.0, %v2497_v57 }
 0x6ca   :  { %v940_v60 = vmul.f32 %v2499_v59, %v922_v52  ;;  %vm945_vm13 = vweird.f32 %v2499_v59  ;;  %v932_v12 = vsel %vm931_vm14, %v2495_v51, %v928_v1 }
 0x6cb   :  { %2502 = vrcp.f32 %v923_v62  ;;  %vm946_vm15 = vmor %vm944_vm0, %vm945_vm13  ;;  %v937_v20 = vsel %vm934_vm5, %v936_v0, %v932_v12  ;;  %v965_v31 = vand.u32 2147483648, %v923_v62  ;;  %vm959_vm12 = vweird.f32 %v923_v62 }
 0x6cc   :  { %v941_v63 = vsub.f32 1.0, %v940_v60  ;;  %v963_v32 = vand.u32 2147483647, %v923_v62 }
 0x6cd   :  { %v966_v38 = vor.u32 1.1754944e-38, %v965_v31 }
 0x6ce   :  { %v942_v4 = vmul.f32 %v2499_v59, %v941_v63  ;;  %v2501_v41 = vpop.eup %2500  ;;  %vm964_vm14 = vcmp.eq.f32.partialorder %v963_v32, 8.507059e+37 }
 0x6cf   :  { %v971_v26 = vmul.f32 %v2501_v41, %v937_v20 }
 0x6d0   :  { %v943_v13 = vadd.f32 %v2499_v59, %v942_v4 }
 0x6d1   :  { %v2503_v14 = vpop.eup %2502 }
 0x6d2   :  { %v955_v18 = vmul.f32 %v2503_v14, %v923_v62  ;;  %v947_v19 = vsel %vm946_vm15, %v2499_v59, %v943_v13  ;;  %vm960_vm11 = vweird.f32 %v2503_v14 }
 0x6d3   :  { %v952_v25 = vsel %vm949_vm6, %v951_v16, %v947_v19  ;;  %vm961_vm13 = vmor %vm959_vm12, %vm960_vm11 }
 0x6d4   :  { %v970_v9 = vmul.f32 %v952_v25, %v2882_v61  ;;  %v956_v23 = vsub.f32 1.0, %v955_v18 }
 0x6d6   :  { %v2940_v27 = vadd.f32 %v971_v26, %v970_v9  ;;  %v957_v28 = vmul.f32 %v2503_v14, %v956_v23 }
 0x6d8   :  { %v958_v29 = vadd.f32 %v2503_v14, %v957_v28  ;;  %2504 = vtanh.f32 %v2940_v27 }
 0x6da   :  { %v962_v33 = vsel %vm961_vm13, %v2503_v14, %v958_v29 }
 0x6db   :  { %v967_v40 = vsel %vm964_vm14, %v966_v38, %v962_v33 }
 0x6de   :  { %v2505_v39 = vpop.eup %2504 }
 0x6df   :  { %v2943_v42 = vmul.f32 %v2505_v39, %v967_v40 }
 0x6e1   :  { %1087 = vrot.lane.b32.xlu1 %v2943_v42, %s2689_s26 }
 0x706   :  { %v1004_v61 = vpop.permute.xlu2 %1003 }
 0x707   :  { %v1015_v43 = vadd.f32 %v1004_v61, %v2754_v11 }
 0x709   :  { %v2131_v44 = vmul.f32 -1.442695, %v1015_v43 }
 0x70b   :  { %2506 = vpow2.f32 %v2131_v44 }
 0x711   :  { %v2507_v45 = vpop.eup %2506 }
 0x712   :  { %v1028_v46 = vadd.f32 1.0, %v2507_v45 }
 0x714   :  { %2508 = vrcp.f32 %v1028_v46  ;;  %vm1036_vm15 = vweird.f32 %v1028_v46  ;;  %v1042_v5 = vand.u32 2147483648, %v1028_v46  ;;  %v1040_v41 = vand.u32 2147483647, %v1028_v46 }
 0x716   :  { %v1043_v19 = vor.u32 1.1754944e-38, %v1042_v5  ;;  %vm1041_vm13 = vcmp.eq.f32.partialorder %v1040_v41, 8.507059e+37 }
 0x71a   :  { %v2509_v10 = vpop.eup %2508 }
 0x71b   :  { %v1032_v54 = vmul.f32 %v2509_v10, %v1028_v46  ;;  %vm1037_vm0 = vweird.f32 %v2509_v10 }
 0x71c   :  { %vm1038_vm6 = vmor %vm1036_vm15, %vm1037_vm0 }
 0x71d   :  { %v1033_v58 = vsub.f32 1.0, %v1032_v54 }
 0x71e   :  { %v1010_v57 = vpop.permute.xlu2 %1009 }
 0x71f   :  { %v1018_v59 = vadd.f32 %v1010_v57, %v2763_v30  ;;  %v1034_v60 = vmul.f32 %v2509_v10, %v1033_v58 }
 0x721   :  { %v1035_v3 = vadd.f32 %v2509_v10, %v1034_v60 }
 0x723   :  { %v1039_v16 = vsel %vm1038_vm6, %v2509_v10, %v1035_v3 }
 0x724   :  { %v1044_v26 = vsel %vm1041_vm13, %v1043_v19, %v1039_v16 }
 0x726   :  { %v1006_v47 = vpop.permute.xlu0 %1005 }
 0x727   :  { %v1016_v48 = vadd.f32 %v1006_v47, %v2757_v15 }
 0x729   :  { %v2132_v49 = vmul.f32 -1.442695, %v1016_v48 }
 0x72b   :  { %2510 = vpow2.f32 %v2132_v49 }
 0x72e   :  { %v1008_v51 = vpop.permute.xlu1 %1007  ;;  %v1079_v28 = vpop.permute.xlu0 %1078 }
 0x72f   :  { %v1017_v52 = vadd.f32 %v1008_v51, %v2760_v17 }
 0x731   :  { %v2511_v53 = vpop.eup %2510  ;;  %v2133_v55 = vmul.f32 -1.442695, %v1017_v52 }
 0x732   :  { %v1029_v56 = vadd.f32 1.0, %v2511_v53 }
 0x733   :  { %2512 = vpow2.f32 %v2133_v55 }
 0x734   :  { %2514 = vrcp.f32 %v1029_v56  ;;  %v1057_v6 = vand.u32 2147483648, %v1029_v56  ;;  %v1055_v13 = vand.u32 2147483647, %v1029_v56  ;;  %vm1051_vm11 = vweird.f32 %v1029_v56 }
 0x735   :  { %2516 = vtanh.f32 %v1018_v59 }
 0x736   :  { %v1058_v20 = vor.u32 1.1754944e-38, %v1057_v6  ;;  %vm1056_vm14 = vcmp.eq.f32.partialorder %v1055_v13, 8.507059e+37 }
 0x739   :  { %v2513_v62 = vpop.eup %2512 }
 0x73a   :  { %v2515_v63 = vpop.eup %2514  ;;  %v1030_v1 = vadd.f32 1.0, %v2513_v62 }
 0x73b   :  { %v1047_v2 = vmul.f32 %v2515_v63, %v1029_v56  ;;  %vm1052_vm5 = vweird.f32 %v2515_v63  ;;  %v2517_v14 = vpop.eup %2516 }
 0x73c   :  { %2518 = vrcp.f32 %v1030_v1  ;;  %vm1053_vm12 = vmor %vm1051_vm11, %vm1052_vm5  ;;  %v1082_v31 = vmul.f32 %v2517_v14, %v1044_v26  ;;  %v1072_v40 = vand.u32 2147483648, %v1030_v1  ;;  %vm1066_vm15 = vweird.f32 %v1030_v1 }
 0x73d   :  { %v1048_v4 = vsub.f32 1.0, %v1047_v2  ;;  %v1070_v61 = vand.u32 2147483647, %v1030_v1 }
 0x73e   :  { %v1073_v45 = vor.u32 1.1754944e-38, %v1072_v40 }
 0x73f   :  { %v1049_v12 = vmul.f32 %v2515_v63, %v1048_v4  ;;  %vm1071_vm6 = vcmp.eq.f32.partialorder %v1070_v61, 8.507059e+37 }
 0x741   :  { %v1050_v0 = vadd.f32 %v2515_v63, %v1049_v12 }
 0x742   :  { %v2519_v18 = vpop.eup %2518 }
 0x743   :  { %v1054_v25 = vsel %vm1053_vm12, %v2515_v63, %v1050_v0  ;;  %v1062_v9 = vmul.f32 %v2519_v18, %v1030_v1  ;;  %vm1067_vm0 = vweird.f32 %v2519_v18 }
 0x744   :  { %v1059_v23 = vsel %vm1056_vm14, %v1058_v20, %v1054_v25  ;;  %vm1068_vm5 = vmor %vm1066_vm15, %vm1067_vm0 }
 0x745   :  { %v1081_v29 = vmul.f32 %v1079_v28, %v1059_v23  ;;  %v1063_v32 = vsub.f32 1.0, %v1062_v9 }
 0x747   :  { %v1083_v33 = vadd.f32 %v1082_v31, %v1081_v29  ;;  %v1064_v38 = vmul.f32 %v2519_v18, %v1063_v32 }
 0x749   :  { %2520 = vtanh.f32 %v1083_v33  ;;  %v1065_v39 = vadd.f32 %v2519_v18, %v1064_v38 }
 0x74b   :  { %v1069_v43 = vsel %vm1068_vm5, %v2519_v18, %v1065_v39 }
 0x74c   :  { %v1074_v46 = vsel %vm1071_vm6, %v1073_v45, %v1069_v43 }
 0x74f   :  { %v2521_v44 = vpop.eup %2520 }
 0x750   :  { %v1085_v47 = vmul.f32 %v2521_v44, %v1074_v46 }
 0x753   :  { %v1088_v48 = vpop.permute.xlu1 %1087 }
 0x754   :  { %v2328_v49 = vpack.i.bf16 %v1088_v48, %v1085_v47 }
 0x756   :  { %2329 = vrot.lane.b32.xlu1 %v2328_v49, %s2690_s29  ;;  %2324 = vrot.lane.b32.xlu0 %v2328_v49, %s2689_s26 }
 0x757   :  { %2319 = vrot.lane.b32.xlu2 %v2328_v49, %s2691_s30 }
 0x7b1   :  { %v2320_v10 = vpop.permute.xlu2 %2319 }
 0x7b2   :  { %v2322_v51 = vunpack.i.h.bf16 %v2320_v10  ;;  %v2321_v52 = vunpack.i.l.bf16 %v2320_v10 }
 0x7b4   :  { %v1104_v53 = vsel %vm204_vm2, %v2321_v52, 0.0  ;;  %v2135_v54 = vpack.c.bf16 %v2322_v51, %v2321_v52 }
 0x7b5   :  { %v1198_v55 = vpack.c.bf16 %v1104_v53, %v1104_v53 }
 0x7b6   :  { %2136 = vmatpush.bf16.msk.msrb.mxu3 %vm2771_vm3, %v2135_v54 }
 0x7b7   :  { %v1200_v56 = vsel %vm97_vm4, %v1198_v55, 0 }
 0x7b8   :  { %1208 = vmatpush.bf16.msra.mxu2 %v1200_v56 }
 0x7c8   :  { %v2330_v57 = vpop.permute.xlu1 %2329  ;;  %v2325_v58 = vpop.permute.xlu0 %2324 }
 0x7c9   :  { %v2331_v59 = vunpack.i.l.bf16 %v2330_v57  ;;  %v2327_v62 = vunpack.i.h.bf16 %v2325_v58  ;;  %v2326_v60 = vunpack.i.l.bf16 %v2325_v58  ;;  %v2332_v63 = vunpack.i.h.bf16 %v2330_v57 }
 0x7cb   :  { %v1113_v1 = vpack.c.bf16 %v2327_v62, %v2326_v60  ;;  %v2149_v2 = vpack.c.bf16 %v2326_v60, %v2331_v59  ;;  %v2140_v3 = vpack.c.bf16 %v2332_v63, %v2331_v59 }
 0x7cd   :  { %1121 = vmatpush.bf16.msrb.mxu3 %v1113_v1  ;;  %2150 = vmatpush.bf16.msk.msra.mxu2 %vm2784_vm9, %v2149_v2 }
 0x7d0   :  { %2151 = vmatmul.msk.bf16.vlgmr.msra.gmra.mxu2 %vm90_vm1, %v2906_v34 }
 0x7d1   :  { %2141 = vmatpush.bf16.msk.msrb.mxu3 %vm2779_vm7, %v2140_v3 }
 0x7d4   :  { %2142 = vmatmul.msk.bf16.vlgmr.msrb.gmra.mxu3 %vm220_vm10, %v2915_v35 }
 0x7e0   :  { %2152 = vmatmul.msk.bf16.gmra.mxu2 %vm90_vm1, %v2922_v36 }
 0x7e4   :  { %2143 = vmatmul.msk.bf16.gmra.mxu3 %vm220_vm10, %v2929_v37 }
 0x853   :  { %v1211_v4 = vpop.f32.mrf.mxu2 }
 0x854   :  { %1225 = vrot.lane.b32.xlu2 %v1211_v4, %s2687_s17 }
 0x857   :  { %v1124_v5 = vpop.f32.mrf.mxu3 }
 0x858   :  { %v2144_v6 = vmul.f32 -1.442695, %v1124_v5 }
 0x85a   :  { %2522 = vpow2.f32 %v2144_v6 }
 0x85b   :  { %v1213_v41 = vpop.f32.mrf.mxu2 }
 0x85c   :  { %1227 = vrot.lane.b32.xlu0 %v1213_v41, %s2687_s17 }
 0x85f   :  { %v1126_v12 = vpop.f32.mrf.mxu3 }
 0x860   :  { %v2523_v13 = vpop.eup %2522  ;;  %v2145_v14 = vmul.f32 -1.442695, %v1126_v12 }
 0x861   :  { %v1143_v16 = vadd.f32 1.0, %v2523_v13 }
 0x862   :  { %2524 = vpow2.f32 %v2145_v14 }
 0x863   :  { %2526 = vrcp.f32 %v1143_v16  ;;  %v1216_v0 = vpop.f32.mrf.mxu2  ;;  %vm1151_vm12 = vweird.f32 %v1143_v16  ;;  %v1157_v44 = vand.u32 2147483648, %v1143_v16  ;;  %v1155_v46 = vand.u32 2147483647, %v1143_v16 }
 0x864   :  { %1300 = vrot.lane.b32.xlu0 %v1083_v33, %s2676_s28  ;;  %1229 = vrot.lane.b32.xlu1 %v1216_v0, %s2687_s17 }
 0x865   :  { %v1158_v53 = vor.u32 1.1754944e-38, %v1157_v44  ;;  %vm1156_vm5 = vcmp.eq.f32.partialorder %v1155_v46, 8.507059e+37 }
 0x867   :  { %v1129_v18 = vpop.f32.mrf.mxu3 }
 0x868   :  { %v2525_v19 = vpop.eup %2524  ;;  %v2146_v20 = vmul.f32 -1.442695, %v1129_v18 }
 0x869   :  { %v2527_v25 = vpop.eup %2526  ;;  %v1144_v9 = vadd.f32 1.0, %v2525_v19 }
 0x86a   :  { %v1147_v26 = vmul.f32 %v2527_v25, %v1143_v16  ;;  %2528 = vpow2.f32 %v2146_v20  ;;  %vm1152_vm11 = vweird.f32 %v2527_v25 }
 0x86b   :  { %2530 = vrcp.f32 %v1144_v9  ;;  %v1218_v23 = vpop.f32.mrf.mxu2  ;;  %v1172_v43 = vand.u32 2147483648, %v1144_v9  ;;  %v1170_v47 = vand.u32 2147483647, %v1144_v9  ;;  %vm1153_vm14 = vmor %vm1151_vm12, %vm1152_vm11  ;;  %vm1166_vm0 = vweird.f32 %v1144_v9 }
 0x86c   :  { %v1148_v28 = vsub.f32 1.0, %v1147_v26  ;;  %1231 = vrot.lane.b32.xlu2 %v1218_v23, %s2687_s17 }
 0x86d   :  { %v1173_v52 = vor.u32 1.1754944e-38, %v1172_v43  ;;  %vm1171_vm6 = vcmp.eq.f32.partialorder %v1170_v47, 8.507059e+37 }
 0x86e   :  { %v1149_v32 = vmul.f32 %v2527_v25, %v1148_v28 }
 0x86f   :  { %v1131_v29 = vpop.f32.mrf.mxu3 }
 0x870   :  { %v2529_v31 = vpop.eup %2528  ;;  %2532 = vtanh.f32 %v1131_v29  ;;  %v1150_v61 = vadd.f32 %v2527_v25, %v1149_v32 }
 0x871   :  { %v2531_v38 = vpop.eup %2530  ;;  %v1145_v39 = vadd.f32 1.0, %v2529_v31 }
 0x872   :  { %v1162_v33 = vmul.f32 %v2531_v38, %v1144_v9  ;;  %vm1167_vm13 = vweird.f32 %v2531_v38  ;;  %v1154_v49 = vsel %vm1153_vm14, %v2527_v25, %v1150_v61 }
 0x873   :  { %2534 = vrcp.f32 %v1145_v39  ;;  %vm1168_vm15 = vmor %vm1166_vm0, %vm1167_vm13  ;;  %v1159_v56 = vsel %vm1156_vm5, %v1158_v53, %v1154_v49  ;;  %v1187_v2 = vand.u32 2147483648, %v1145_v39  ;;  %vm1181_vm12 = vweird.f32 %v1145_v39 }
 0x874   :  { %v1163_v40 = vsub.f32 1.0, %v1162_v33  ;;  %v1185_v3 = vand.u32 2147483647, %v1145_v39 }
 0x875   :  { %v1188_v5 = vor.u32 1.1754944e-38, %v1187_v2 }
 0x876   :  { %v1164_v45 = vmul.f32 %v2531_v38, %v1163_v40  ;;  %v2533_v48 = vpop.eup %2532  ;;  %vm1186_vm14 = vcmp.eq.f32.partialorder %v1185_v3, 8.507059e+37 }
 0x877   :  { %v1193_v59 = vmul.f32 %v2533_v48, %v1159_v56 }
 0x878   :  { %v1165_v10 = vadd.f32 %v2531_v38, %v1164_v45 }
 0x879   :  { %v2535_v51 = vpop.eup %2534 }
 0x87a   :  { %v1177_v54 = vmul.f32 %v2535_v51, %v1145_v39  ;;  %v1169_v55 = vsel %vm1168_vm15, %v2531_v38, %v1165_v10  ;;  %vm1182_vm11 = vweird.f32 %v2535_v51 }
 0x87b   :  { %v1174_v57 = vsel %vm1171_vm6, %v1173_v52, %v1169_v55  ;;  %vm1183_vm13 = vmor %vm1181_vm12, %vm1182_vm11 }
 0x87c   :  { %v1192_v58 = vmul.f32 %v1174_v57, %v2940_v27  ;;  %v1178_v62 = vsub.f32 1.0, %v1177_v54 }
 0x87e   :  { %v2974_v60 = vadd.f32 %v1193_v59, %v1192_v58  ;;  %v1179_v63 = vmul.f32 %v2535_v51, %v1178_v62 }
 0x880   :  { %v1180_v1 = vadd.f32 %v2535_v51, %v1179_v63  ;;  %2536 = vtanh.f32 %v2974_v60 }
 0x882   :  { %v1184_v4 = vsel %vm1183_vm13, %v2535_v51, %v1180_v1 }
 0x883   :  { %v1189_v41 = vsel %vm1186_vm14, %v1188_v5, %v1184_v4 }
 0x886   :  { %v2537_v6 = vpop.eup %2536 }
 0x887   :  { %v2977_v12 = vmul.f32 %v2537_v6, %v1189_v41 }
 0x889   :  { %1309 = vrot.lane.b32.xlu1 %v2977_v12, %s2687_s17 }
 0x8ae   :  { %v1226_v27 = vpop.permute.xlu2 %1225 }
 0x8af   :  { %v1237_v13 = vadd.f32 %v1226_v27, %v2754_v11 }
 0x8b1   :  { %v2153_v14 = vmul.f32 -1.442695, %v1237_v13 }
 0x8b3   :  { %2538 = vpow2.f32 %v2153_v14 }
 0x8b9   :  { %v2539_v16 = vpop.eup %2538 }
 0x8ba   :  { %v1250_v0 = vadd.f32 1.0, %v2539_v16 }
 0x8bc   :  { %2540 = vrcp.f32 %v1250_v0  ;;  %vm1258_vm15 = vweird.f32 %v1250_v0  ;;  %v1264_v47 = vand.u32 2147483648, %v1250_v0  ;;  %v1262_v49 = vand.u32 2147483647, %v1250_v0 }
 0x8be   :  { %v1265_v56 = vor.u32 1.1754944e-38, %v1264_v47  ;;  %vm1263_vm13 = vcmp.eq.f32.partialorder %v1262_v49, 8.507059e+37 }
 0x8c2   :  { %v2541_v25 = vpop.eup %2540 }
 0x8c3   :  { %v1254_v28 = vmul.f32 %v2541_v25, %v1250_v0  ;;  %vm1259_vm0 = vweird.f32 %v2541_v25 }
 0x8c4   :  { %vm1260_vm6 = vmor %vm1258_vm15, %vm1259_vm0 }
 0x8c5   :  { %v1255_v38 = vsub.f32 1.0, %v1254_v28 }
 0x8c6   :  { %v1232_v32 = vpop.permute.xlu2 %1231 }
 0x8c7   :  { %v1240_v39 = vadd.f32 %v1232_v32, %v2763_v30  ;;  %v1256_v40 = vmul.f32 %v2541_v25, %v1255_v38 }
 0x8c9   :  { %v1257_v45 = vadd.f32 %v2541_v25, %v1256_v40 }
 0x8cb   :  { %v1261_v53 = vsel %vm1260_vm6, %v2541_v25, %v1257_v45 }
 0x8cc   :  { %v1266_v62 = vsel %vm1263_vm13, %v1265_v56, %v1261_v53 }
 0x8ce   :  { %v1228_v18 = vpop.permute.xlu0 %1227 }
 0x8cf   :  { %v1238_v19 = vadd.f32 %v1228_v18, %v2757_v15 }
 0x8d1   :  { %v2154_v20 = vmul.f32 -1.442695, %v1238_v19 }
 0x8d3   :  { %2542 = vpow2.f32 %v2154_v20 }
 0x8d6   :  { %v1230_v9 = vpop.permute.xlu1 %1229  ;;  %v1301_v1 = vpop.permute.xlu0 %1300 }
 0x8d7   :  { %v1239_v26 = vadd.f32 %v1230_v9, %v2760_v17 }
 0x8d9   :  { %v2543_v23 = vpop.eup %2542  ;;  %v2155_v29 = vmul.f32 -1.442695, %v1239_v26 }
 0x8da   :  { %v1251_v31 = vadd.f32 1.0, %v2543_v23 }
 0x8db   :  { %2544 = vpow2.f32 %v2155_v29 }
 0x8dc   :  { %2546 = vrcp.f32 %v1251_v31  ;;  %v1279_v48 = vand.u32 2147483648, %v1251_v31  ;;  %v1277_v51 = vand.u32 2147483647, %v1251_v31  ;;  %vm1273_vm11 = vweird.f32 %v1251_v31 }
 0x8dd   :  { %2548 = vtanh.f32 %v1240_v39 }
 0x8de   :  { %v1280_v57 = vor.u32 1.1754944e-38, %v1279_v48  ;;  %vm1278_vm14 = vcmp.eq.f32.partialorder %v1277_v51, 8.507059e+37 }
 0x8e1   :  { %v2545_v33 = vpop.eup %2544 }
 0x8e2   :  { %v2547_v61 = vpop.eup %2546  ;;  %v1252_v43 = vadd.f32 1.0, %v2545_v33 }
 0x8e3   :  { %v1269_v44 = vmul.f32 %v2547_v61, %v1251_v31  ;;  %vm1274_vm5 = vweird.f32 %v2547_v61  ;;  %v2549_v52 = vpop.eup %2548 }
 0x8e4   :  { %2550 = vrcp.f32 %v1252_v43  ;;  %vm1275_vm12 = vmor %vm1273_vm11, %vm1274_vm5  ;;  %v1304_v3 = vmul.f32 %v2549_v52, %v1266_v62  ;;  %v1294_v27 = vand.u32 2147483648, %v1252_v43  ;;  %vm1288_vm15 = vweird.f32 %v1252_v43 }
 0x8e5   :  { %v1270_v46 = vsub.f32 1.0, %v1269_v44  ;;  %v1292_v13 = vand.u32 2147483647, %v1252_v43 }
 0x8e6   :  { %v1295_v0 = vor.u32 1.1754944e-38, %v1294_v27 }
 0x8e7   :  { %v1271_v10 = vmul.f32 %v2547_v61, %v1270_v46  ;;  %vm1293_vm6 = vcmp.eq.f32.partialorder %v1292_v13, 8.507059e+37 }
 0x8e9   :  { %v1272_v54 = vadd.f32 %v2547_v61, %v1271_v10 }
 0x8ea   :  { %v2551_v55 = vpop.eup %2550 }
 0x8eb   :  { %v1276_v58 = vsel %vm1275_vm12, %v2547_v61, %v1272_v54  ;;  %v1284_v59 = vmul.f32 %v2551_v55, %v1252_v43  ;;  %vm1289_vm0 = vweird.f32 %v2551_v55 }
 0x8ec   :  { %v1281_v63 = vsel %vm1278_vm14, %v1280_v57, %v1276_v58  ;;  %vm1290_vm5 = vmor %vm1288_vm15, %vm1289_vm0 }
 0x8ed   :  { %v1303_v2 = vmul.f32 %v1301_v1, %v1281_v63  ;;  %v1285_v4 = vsub.f32 1.0, %v1284_v59 }
 0x8ef   :  { %v1305_v5 = vadd.f32 %v1304_v3, %v1303_v2  ;;  %v1286_v6 = vmul.f32 %v2551_v55, %v1285_v4 }
 0x8f1   :  { %2552 = vtanh.f32 %v1305_v5  ;;  %v1287_v41 = vadd.f32 %v2551_v55, %v1286_v6 }
 0x8f3   :  { %v1291_v14 = vsel %vm1290_vm5, %v2551_v55, %v1287_v41 }
 0x8f4   :  { %v1296_v18 = vsel %vm1293_vm6, %v1295_v0, %v1291_v14 }
 0x8f7   :  { %v2553_v16 = vpop.eup %2552 }
 0x8f8   :  { %v1307_v19 = vmul.f32 %v2553_v16, %v1296_v18 }
 0x8fb   :  { %v1310_v20 = vpop.permute.xlu1 %1309 }
 0x8fc   :  { %v2343_v25 = vpack.i.bf16 %v1310_v20, %v1307_v19 }
 0x8fe   :  { %2344 = vrot.lane.b32.xlu1 %v2343_v25, %s2692_s6  ;;  %2339 = vrot.lane.b32.xlu0 %v2343_v25, %s2685_s15 }
 0x8ff   :  { %2334 = vrot.lane.b32.xlu2 %v2343_v25, %s2693_s7 }
 0x959   :  { %v2335_v9 = vpop.permute.xlu2 %2334 }
 0x95a   :  { %v2337_v26 = vunpack.i.h.bf16 %v2335_v9  ;;  %v2336_v23 = vunpack.i.l.bf16 %v2335_v9 }
 0x95c   :  { %v1326_v28 = vsel %vm204_vm2, %v2336_v23, 0.0  ;;  %v2157_v29 = vpack.c.bf16 %v2337_v26, %v2336_v23 }
 0x95d   :  { %v1420_v31 = vpack.c.bf16 %v1326_v28, %v1326_v28 }
 0x95e   :  { %2158 = vmatpush.bf16.msk.msrb.mxu0 %vm2771_vm3, %v2157_v29 }
 0x95f   :  { %v1422_v32 = vsel %vm97_vm4, %v1420_v31, 0 }
 0x960   :  { %1430 = vmatpush.bf16.msrb.mxu1 %v1422_v32 }
 0x970   :  { %v2345_v38 = vpop.permute.xlu1 %2344  ;;  %v2340_v39 = vpop.permute.xlu0 %2339 }
 0x971   :  { %v2346_v33 = vunpack.i.l.bf16 %v2345_v38  ;;  %v2342_v40 = vunpack.i.h.bf16 %v2340_v39  ;;  %v2341_v61 = vunpack.i.l.bf16 %v2340_v39  ;;  %v2347_v43 = vunpack.i.h.bf16 %v2345_v38 }
 0x973   :  { %v1335_v44 = vpack.c.bf16 %v2342_v40, %v2341_v61  ;;  %v2171_v45 = vpack.c.bf16 %v2341_v61, %v2346_v33  ;;  %v2162_v46 = vpack.c.bf16 %v2347_v43, %v2346_v33 }
 0x975   :  { %1343 = vmatpush.bf16.msrb.mxu0 %v1335_v44  ;;  %2172 = vmatpush.bf16.msk.msrb.mxu1 %vm2784_vm9, %v2171_v45 }
 0x978   :  { %2173 = vmatmul.msk.bf16.vlgmr.msrb.gmra.mxu1 %vm90_vm1, %v2906_v34 }
 0x979   :  { %2163 = vmatpush.bf16.msk.msrb.mxu0 %vm2779_vm7, %v2162_v46 }
 0x97c   :  { %2164 = vmatmul.msk.bf16.vlgmr.msrb.gmra.mxu0 %vm220_vm10, %v2915_v35 }
 0x988   :  { %2174 = vmatmul.msk.bf16.gmra.mxu1 %vm90_vm1, %v2922_v36 }
 0x98c   :  { %2165 = vmatmul.msk.bf16.gmra.mxu0 %vm220_vm10, %v2929_v37 }
 0x9f5   :  { %v1433_v47 = vpop.f32.mrf.mxu1 }
 0x9f6   :  { %1447 = vrot.lane.b32.xlu2 %v1433_v47, %s2683_s13 }
 0x9f9   :  { %v1346_v48 = vpop.f32.mrf.mxu0 }
 0x9fa   :  { %v2166_v49 = vmul.f32 -1.442695, %v1346_v48 }
 0x9fc   :  { %2554 = vpow2.f32 %v2166_v49 }
 0x9fd   :  { %v1435_v10 = vpop.f32.mrf.mxu1 }
 0x9fe   :  { %1449 = vrot.lane.b32.xlu0 %v1435_v10, %s2683_s13 }
 0xa01   :  { %v1348_v34 = vpop.f32.mrf.mxu0 }
 0xa02   :  { %v2555_v51 = vpop.eup %2554  ;;  %v2167_v52 = vmul.f32 -1.442695, %v1348_v34 }
 0xa03   :  { %v1365_v53 = vadd.f32 1.0, %v2555_v51 }
 0xa04   :  { %2556 = vpow2.f32 %v2167_v52 }
 0xa05   :  { %2558 = vrcp.f32 %v1365_v53  ;;  %v1438_v35 = vpop.f32.mrf.mxu1  ;;  %vm1373_vm12 = vweird.f32 %v1365_v53  ;;  %v1379_v27 = vand.u32 2147483648, %v1365_v53  ;;  %v1377_v14 = vand.u32 2147483647, %v1365_v53 }
 0xa06   :  { %1522 = vrot.lane.b32.xlu0 %v1305_v5, %s2676_s28  ;;  %1451 = vrot.lane.b32.xlu1 %v1438_v35, %s2683_s13 }
 0xa07   :  { %v1380_v9 = vor.u32 1.1754944e-38, %v1379_v27  ;;  %vm1378_vm5 = vcmp.eq.f32.partialorder %v1377_v14, 8.507059e+37 }
 0xa09   :  { %v1351_v36 = vpop.f32.mrf.mxu0 }
 0xa0a   :  { %v2557_v37 = vpop.eup %2556  ;;  %v2168_v54 = vmul.f32 -1.442695, %v1351_v36 }
 0xa0b   :  { %v2559_v55 = vpop.eup %2558  ;;  %v1366_v56 = vadd.f32 1.0, %v2557_v37 }
 0xa0c   :  { %v1369_v57 = vmul.f32 %v2559_v55, %v1365_v53  ;;  %2560 = vpow2.f32 %v2168_v54  ;;  %vm1374_vm11 = vweird.f32 %v2559_v55 }
 0xa0d   :  { %2562 = vrcp.f32 %v1366_v56  ;;  %v1440_v58 = vpop.f32.mrf.mxu1  ;;  %v1394_v41 = vand.u32 2147483648, %v1366_v56  ;;  %v1392_v16 = vand.u32 2147483647, %v1366_v56  ;;  %vm1375_vm14 = vmor %vm1373_vm12, %vm1374_vm11  ;;  %vm1388_vm0 = vweird.f32 %v1366_v56 }
 0xa0e   :  { %v1370_v59 = vsub.f32 1.0, %v1369_v57  ;;  %1453 = vrot.lane.b32.xlu2 %v1440_v58, %s2683_s13 }
 0xa0f   :  { %v1395_v25 = vor.u32 1.1754944e-38, %v1394_v41  ;;  %vm1393_vm6 = vcmp.eq.f32.partialorder %v1392_v16, 8.507059e+37 }
 0xa10   :  { %v1371_v1 = vmul.f32 %v2559_v55, %v1370_v59 }
 0xa11   :  { %v1353_v62 = vpop.f32.mrf.mxu0 }
 0xa12   :  { %v2561_v63 = vpop.eup %2560  ;;  %2564 = vtanh.f32 %v1353_v62  ;;  %v1372_v6 = vadd.f32 %v2559_v55, %v1371_v1 }
 0xa13   :  { %v2563_v2 = vpop.eup %2562  ;;  %v1367_v3 = vadd.f32 1.0, %v2561_v63 }
 0xa14   :  { %v1384_v4 = vmul.f32 %v2563_v2, %v1366_v56  ;;  %vm1389_vm13 = vweird.f32 %v2563_v2  ;;  %v1376_v18 = vsel %vm1375_vm14, %v2559_v55, %v1372_v6 }
 0xa15   :  { %2566 = vrcp.f32 %v1367_v3  ;;  %vm1390_vm15 = vmor %vm1388_vm0, %vm1389_vm13  ;;  %v1381_v28 = vsel %vm1378_vm5, %v1380_v9, %v1376_v18  ;;  %v1409_v61 = vand.u32 2147483648, %v1367_v3  ;;  %vm1403_vm12 = vweird.f32 %v1367_v3 }
 0xa16   :  { %v1385_v5 = vsub.f32 1.0, %v1384_v4  ;;  %v1407_v43 = vand.u32 2147483647, %v1367_v3 }
 0xa17   :  { %v1410_v45 = vor.u32 1.1754944e-38, %v1409_v61 }
 0xa18   :  { %v1386_v13 = vmul.f32 %v2563_v2, %v1385_v5  ;;  %v2565_v0 = vpop.eup %2564  ;;  %vm1408_vm14 = vcmp.eq.f32.partialorder %v1407_v43, 8.507059e+37 }
 0xa19   :  { %v1415_v32 = vmul.f32 %v2565_v0, %v1381_v28 }
 0xa1a   :  { %v1387_v19 = vadd.f32 %v2563_v2, %v1386_v13 }
 0xa1b   :  { %v2567_v20 = vpop.eup %2566 }
 0xa1c   :  { %v1399_v26 = vmul.f32 %v2567_v20, %v1367_v3  ;;  %v1391_v23 = vsel %vm1390_vm15, %v2563_v2, %v1387_v19  ;;  %vm1404_vm11 = vweird.f32 %v2567_v20 }
 0xa1d   :  { %v1396_v29 = vsel %vm1393_vm6, %v1395_v25, %v1391_v23  ;;  %vm1405_vm13 = vmor %vm1403_vm12, %vm1404_vm11 }
 0xa1e   :  { %v1414_v31 = vmul.f32 %v1396_v29, %v2974_v60  ;;  %v1400_v38 = vsub.f32 1.0, %v1399_v26 }
 0xa20   :  { %v3008_v39 = vadd.f32 %v1415_v32, %v1414_v31  ;;  %v1401_v33 = vmul.f32 %v2567_v20, %v1400_v38 }
 0xa22   :  { %v1402_v40 = vadd.f32 %v2567_v20, %v1401_v33  ;;  %2568 = vtanh.f32 %v3008_v39 }
 0xa24   :  { %v1406_v44 = vsel %vm1405_vm13, %v2567_v20, %v1402_v40 }
 0xa25   :  { %v1411_v47 = vsel %vm1408_vm14, %v1410_v45, %v1406_v44 }
 0xa28   :  { %v2569_v46 = vpop.eup %2568 }
 0xa29   :  { %v3011_v48 = vmul.f32 %v2569_v46, %v1411_v47 }
 0xa2b   :  { %1531 = vrot.lane.b32.xlu1 %v3011_v48, %s2683_s13 }
 0xa50   :  { %v1448_v60 = vpop.permute.xlu2 %1447 }
 0xa51   :  { %v1459_v49 = vadd.f32 %v1448_v60, %v2754_v11 }
 0xa53   :  { %v2175_v10 = vmul.f32 -1.442695, %v1459_v49 }
 0xa55   :  { %2570 = vpow2.f32 %v2175_v10 }
 0xa5b   :  { %v2571_v34 = vpop.eup %2570 }
 0xa5c   :  { %v1472_v51 = vadd.f32 1.0, %v2571_v34 }
 0xa5e   :  { %2572 = vrcp.f32 %v1472_v51  ;;  %vm1480_vm15 = vweird.f32 %v1472_v51  ;;  %v1486_v27 = vand.u32 2147483648, %v1472_v51  ;;  %v1484_v14 = vand.u32 2147483647, %v1472_v51 }
 0xa60   :  { %v1487_v9 = vor.u32 1.1754944e-38, %v1486_v27  ;;  %vm1485_vm13 = vcmp.eq.f32.partialorder %v1484_v14, 8.507059e+37 }
 0xa64   :  { %v2573_v36 = vpop.eup %2572 }
 0xa65   :  { %v1476_v56 = vmul.f32 %v2573_v36, %v1472_v51  ;;  %vm1481_vm0 = vweird.f32 %v2573_v36 }
 0xa66   :  { %vm1482_vm6 = vmor %vm1480_vm15, %vm1481_vm0 }
 0xa67   :  { %v1477_v62 = vsub.f32 1.0, %v1476_v56 }
 0xa68   :  { %v1454_v59 = vpop.permute.xlu2 %1453 }
 0xa69   :  { %v1462_v63 = vadd.f32 %v1454_v59, %v2763_v30  ;;  %v1478_v2 = vmul.f32 %v2573_v36, %v1477_v62 }
 0xa6b   :  { %v1479_v6 = vadd.f32 %v2573_v36, %v1478_v2 }
 0xa6d   :  { %v1483_v19 = vsel %vm1482_vm6, %v2573_v36, %v1479_v6  ;;  %v3038_v6 = vld [vmem:[%s3112_s3] sm:$0xff] }
 0xa6e   :  { %v1488_v29 = vsel %vm1485_vm13, %v1487_v9, %v1483_v19 }
 0xa70   :  { %v1450_v52 = vpop.permute.xlu0 %1449 }
 0xa71   :  { %v1460_v53 = vadd.f32 %v1450_v52, %v2757_v15 }
 0xa73   :  { %v2176_v35 = vmul.f32 -1.442695, %v1460_v53 }
 0xa75   :  { %2574 = vpow2.f32 %v2176_v35 }
 0xa78   :  { %v1452_v37 = vpop.permute.xlu1 %1451  ;;  %v1523_v32 = vpop.permute.xlu0 %1522 }
 0xa79   :  { %v1461_v54 = vadd.f32 %v1452_v37, %v2760_v17 }
 0xa7b   :  { %v2575_v55 = vpop.eup %2574  ;;  %v2177_v57 = vmul.f32 -1.442695, %v1461_v54 }
 0xa7c   :  { %v1473_v58 = vadd.f32 1.0, %v2575_v55 }
 0xa7d   :  { %2576 = vpow2.f32 %v2177_v57 }
 0xa7e   :  { %2578 = vrcp.f32 %v1473_v58  ;;  %v1501_v13 = vand.u32 2147483648, %v1473_v58  ;;  %v1499_v0 = vand.u32 2147483647, %v1473_v58  ;;  %vm1495_vm11 = vweird.f32 %v1473_v58 }
 0xa7f   :  { %2580 = vtanh.f32 %v1462_v63 }
 0xa80   :  { %v1502_v26 = vor.u32 1.1754944e-38, %v1501_v13  ;;  %vm1500_vm14 = vcmp.eq.f32.partialorder %v1499_v0, 8.507059e+37 }
 0xa83   :  { %v2577_v1 = vpop.eup %2576 }
 0xa84   :  { %v2579_v3 = vpop.eup %2578  ;;  %v1474_v4 = vadd.f32 1.0, %v2577_v1 }
 0xa85   :  { %v1491_v5 = vmul.f32 %v2579_v3, %v1473_v58  ;;  %vm1496_vm5 = vweird.f32 %v2579_v3  ;;  %v2581_v18 = vpop.eup %2580 }
 0xa86   :  { %2582 = vrcp.f32 %v1474_v4  ;;  %vm1497_vm12 = vmor %vm1495_vm11, %vm1496_vm5  ;;  %v1526_v33 = vmul.f32 %v2581_v18, %v1488_v29  ;;  %v1516_v45 = vand.u32 2147483648, %v1474_v4  ;;  %vm1510_vm15 = vweird.f32 %v1474_v4 }
 0xa87   :  { %v1492_v41 = vsub.f32 1.0, %v1491_v5  ;;  %v1514_v46 = vand.u32 2147483647, %v1474_v4  ;;  %v2642_v5 = vld [vmem:[%s3111_s2] sm:$0xff]  ;;  %s2696_s2 = smov 17  }
 0xa88   :  { %v1517_v49 = vor.u32 1.1754944e-38, %v1516_v45 }
 0xa89   :  { %v1493_v16 = vmul.f32 %v2579_v3, %v1492_v41  ;;  %vm1515_vm6 = vcmp.eq.f32.partialorder %v1514_v46, 8.507059e+37  ;;  %v3049_v41 = vld [vmem:[%s3112_s3 + $0x8] sm:$0xff]  ;;  %s2697_s3 = smov 15  }
 0xa8b   :  { %v1494_v20 = vadd.f32 %v2579_v3, %v1493_v16 }
 0xa8c   :  { %v2583_v25 = vpop.eup %2582 }
 0xa8d   :  { %v1498_v23 = vsel %vm1497_vm12, %v2579_v3, %v1494_v20  ;;  %v1506_v28 = vmul.f32 %v2583_v25, %v1474_v4  ;;  %vm1511_vm0 = vweird.f32 %v2583_v25 }
 0xa8e   :  { %v1503_v31 = vsel %vm1500_vm14, %v1502_v26, %v1498_v23  ;;  %vm1512_vm5 = vmor %vm1510_vm15, %vm1511_vm0 }
 0xa8f   :  { %v1525_v38 = vmul.f32 %v1523_v32, %v1503_v31  ;;  %v1507_v40 = vsub.f32 1.0, %v1506_v28 }
 0xa91   :  { %v3019_v61 = vadd.f32 %v1526_v33, %v1525_v38  ;;  %v1508_v43 = vmul.f32 %v2583_v25, %v1507_v40 }
 0xa93   :  { %2584 = vtanh.f32 %v3019_v61  ;;  %v1509_v44 = vadd.f32 %v2583_v25, %v1508_v43 }
 0xa95   :  { %v1513_v47 = vsel %vm1512_vm5, %v2583_v25, %v1509_v44 }
 0xa96   :  { %v1518_v10 = vsel %vm1515_vm6, %v1517_v49, %v1513_v47 }
 0xa99   :  { %v2585_v60 = vpop.eup %2584 }
 0xa9a   :  { %v1529_v34 = vmul.f32 %v2585_v60, %v1518_v10 }
 0xa9d   :  { %v1532_v51 = vpop.permute.xlu1 %1531 }
 0xa9e   :  { %v2358_v52 = vpack.i.bf16 %v1532_v51, %v1529_v34 }
 0xaa0   :  { %2359 = vrot.lane.b32.xlu1 %v2358_v52, %s2694_s8  ;;  %2354 = vrot.lane.b32.xlu0 %v2358_v52, %s2681_s11 }
 0xaa1   :  { %2349 = vrot.lane.b32.xlu2 %v2358_v52, %s2695_s10 }
 0xafb   :  { %v2350_v53 = vpop.permute.xlu2 %2349 }
 0xafc   :  { %v2352_v35 = vunpack.i.h.bf16 %v2350_v53  ;;  %v2351_v36 = vunpack.i.l.bf16 %v2350_v53 }
 0xafe   :  { %v1548_v37 = vsel %vm204_vm2, %v2351_v36, 0.0  ;;  %v2179_v54 = vpack.c.bf16 %v2352_v35, %v2351_v36 }
 0xaff   :  { %v1642_v55 = vpack.c.bf16 %v1548_v37, %v1548_v37 }
 0xb00   :  { %2180 = vmatpush.bf16.msk.msra.mxu3 %vm2771_vm3, %v2179_v54 }
 0xb01   :  { %v1644_v56 = vsel %vm97_vm4, %v1642_v55, 0 }
 0xb02   :  { %1652 = vmatpush.bf16.msrb.mxu2 %v1644_v56 }
 0xb12   :  { %v2360_v57 = vpop.permute.xlu1 %2359  ;;  %v2355_v58 = vpop.permute.xlu0 %2354 }
 0xb13   :  { %v2361_v59 = vunpack.i.l.bf16 %v2360_v57  ;;  %v2357_v62 = vunpack.i.h.bf16 %v2355_v58  ;;  %v2356_v63 = vunpack.i.l.bf16 %v2355_v58  ;;  %v2362_v1 = vunpack.i.h.bf16 %v2360_v57 }
 0xb15   :  { %v1557_v2 = vpack.c.bf16 %v2357_v62, %v2356_v63  ;;  %v2193_v3 = vpack.c.bf16 %v2356_v63, %v2361_v59  ;;  %v2184_v4 = vpack.c.bf16 %v2362_v1, %v2361_v59 }
 0xb17   :  { %1565 = vmatpush.bf16.msra.mxu3 %v1557_v2  ;;  %2194 = vmatpush.bf16.msk.msrb.mxu2 %vm2784_vm9, %v2193_v3 }
 0xb1a   :  { %2195 = vmatmul.msk.bf16.vlgmr.msrb.gmra.mxu2 %vm90_vm1, %v2642_v5 }
 0xb1b   :  { %2185 = vmatpush.bf16.msk.msra.mxu3 %vm2779_vm7, %v2184_v4 }
 0xb1e   :  { %2186 = vmatmul.msk.bf16.vlgmr.msra.gmra.mxu3 %vm220_vm10, %v3038_v6 }
 0xb2a   :  { %2196 = vmatmul.msk.bf16.gmra.mxu2 %vm90_vm1, %v2644_v22 }
 0xb2e   :  { %2187 = vmatmul.msk.bf16.gmra.mxu3 %vm220_vm10, %v3049_v41 }
 0xb9d   :  { %v1655_v27 = vpop.f32.mrf.mxu2 }
 0xb9e   :  { %1669 = vrot.lane.b32.xlu2 %v1655_v27, %s2679_s9 }
 0xba1   :  { %v1568_v13 = vpop.f32.mrf.mxu3 }
 0xba2   :  { %v2188_v14 = vmul.f32 -1.442695, %v1568_v13 }
 0xba4   :  { %2586 = vpow2.f32 %v2188_v14 }
 0xba5   :  { %v1657_v16 = vpop.f32.mrf.mxu2 }
 0xba6   :  { %1671 = vrot.lane.b32.xlu0 %v1657_v16, %s2679_s9 }
 0xba9   :  { %v1570_v0 = vpop.f32.mrf.mxu3 }
 0xbaa   :  { %v2587_v18 = vpop.eup %2586  ;;  %v2189_v19 = vmul.f32 -1.442695, %v1570_v0 }
 0xbab   :  { %v1587_v20 = vadd.f32 1.0, %v2587_v18 }
 0xbac   :  { %2588 = vpow2.f32 %v2189_v19 }
 0xbad   :  { %2590 = vrcp.f32 %v1587_v20  ;;  %v1660_v25 = vpop.f32.mrf.mxu2  ;;  %vm1595_vm9 = vweird.f32 %v1587_v20  ;;  %v1601_v49 = vand.u32 2147483648, %v1587_v20  ;;  %v1599_v34 = vand.u32 2147483647, %v1587_v20 }
 0xbae   :  { %1744 = vrot.lane.b32.xlu0 %v3019_v61, %s2676_s28  ;;  %1673 = vrot.lane.b32.xlu1 %v1660_v25, %s2679_s9 }
 0xbaf   :  { %v1602_v54 = vor.u32 1.1754944e-38, %v1601_v49  ;;  %vm1600_vm0 = vcmp.eq.f32.partialorder %v1599_v34, 8.507059e+37 }
 0xbb1   :  { %v1573_v9 = vpop.f32.mrf.mxu3 }
 0xbb2   :  { %v2589_v26 = vpop.eup %2588  ;;  %v2190_v23 = vmul.f32 -1.442695, %v1573_v9 }
 0xbb3   :  { %v2591_v28 = vpop.eup %2590  ;;  %v1588_v29 = vadd.f32 1.0, %v2589_v26 }
 0xbb4   :  { %v1591_v31 = vmul.f32 %v2591_v28, %v1587_v20  ;;  %2592 = vpow2.f32 %v2190_v23  ;;  %vm1596_vm2 = vweird.f32 %v2591_v28 }
 0xbb5   :  { %2594 = vrcp.f32 %v1588_v29  ;;  %v1662_v32 = vpop.f32.mrf.mxu2  ;;  %v1616_v60 = vand.u32 2147483648, %v1588_v29  ;;  %v1614_v51 = vand.u32 2147483647, %v1588_v29  ;;  %vm1597_vm12 = vmor %vm1595_vm9, %vm1596_vm2  ;;  %vm1610_vm13 = vweird.f32 %v1588_v29 }
 0xbb6   :  { %v1592_v38 = vsub.f32 1.0, %v1591_v31  ;;  %1675 = vrot.lane.b32.xlu2 %v1662_v32, %s2679_s9 }
 0xbb7   :  { %v1617_v37 = vor.u32 1.1754944e-38, %v1616_v60  ;;  %vm1615_vm15 = vcmp.eq.f32.partialorder %v1614_v51, 8.507059e+37 }
 0xbb8   :  { %v1593_v43 = vmul.f32 %v2591_v28, %v1592_v38 }
 0xbb9   :  { %v1575_v33 = vpop.f32.mrf.mxu3 }
 0xbba   :  { %v2593_v40 = vpop.eup %2592  ;;  %2596 = vtanh.f32 %v1575_v33  ;;  %v1594_v47 = vadd.f32 %v2591_v28, %v1593_v43 }
 0xbbb   :  { %v2595_v44 = vpop.eup %2594  ;;  %v1589_v45 = vadd.f32 1.0, %v2593_v40 }
 0xbbc   :  { %v1606_v61 = vmul.f32 %v2595_v44, %v1588_v29  ;;  %vm1611_vm11 = vweird.f32 %v2595_v44  ;;  %v1598_v53 = vsel %vm1597_vm12, %v2591_v28, %v1594_v47 }
 0xbbd   :  { %2598 = vrcp.f32 %v1589_v45  ;;  %vm1612_vm14 = vmor %vm1610_vm13, %vm1611_vm11  ;;  %v1603_v57 = vsel %vm1600_vm0, %v1602_v54, %v1598_v53  ;;  %v1631_v4 = vand.u32 2147483648, %v1589_v45  ;;  %vm1625_vm6 = vweird.f32 %v1589_v45 }
 0xbbe   :  { %v1607_v46 = vsub.f32 1.0, %v1606_v61  ;;  %v1629_v5 = vand.u32 2147483647, %v1589_v45 }
 0xbbf   :  { %v1632_v27 = vor.u32 1.1754944e-38, %v1631_v4 }
 0xbc0   :  { %v1608_v10 = vmul.f32 %v2595_v44, %v1607_v46  ;;  %v2597_v52 = vpop.eup %2596  ;;  %vm1630_vm9 = vcmp.eq.f32.partialorder %v1629_v5, 8.507059e+37 }
 0xbc1   :  { %v1637_v62 = vmul.f32 %v2597_v52, %v1603_v57 }
 0xbc2   :  { %v1609_v35 = vadd.f32 %v2595_v44, %v1608_v10 }
 0xbc3   :  { %v2599_v36 = vpop.eup %2598 }
 0xbc4   :  { %v1621_v55 = vmul.f32 %v2599_v36, %v1589_v45  ;;  %v1613_v56 = vsel %vm1612_vm14, %v2595_v44, %v1609_v35  ;;  %vm1626_vm5 = vweird.f32 %v2599_v36 }
 0xbc5   :  { %v1618_v58 = vsel %vm1615_vm15, %v1617_v37, %v1613_v56  ;;  %vm1627_vm2 = vmor %vm1625_vm6, %vm1626_vm5 }
 0xbc6   :  { %v1636_v59 = vmul.f32 %v1618_v58, %v3008_v39  ;;  %v1622_v63 = vsub.f32 1.0, %v1621_v55 }
 0xbc8   :  { %v3060_v1 = vadd.f32 %v1637_v62, %v1636_v59  ;;  %v1623_v2 = vmul.f32 %v2599_v36, %v1622_v63 }
 0xbca   :  { %2600 = vtanh.f32 %v3060_v1  ;;  %v1624_v3 = vadd.f32 %v2599_v36, %v1623_v2 }
 0xbcc   :  { %v1628_v22 = vsel %vm1627_vm2, %v2599_v36, %v1624_v3 }
 0xbcd   :  { %v1633_v14 = vsel %vm1630_vm9, %v1632_v27, %v1628_v22 }
 0xbd0   :  { %v2601_v13 = vpop.eup %2600 }
 0xbd1   :  { %v3063_v16 = vmul.f32 %v2601_v13, %v1633_v14 }
 0xbd3   :  { %1753 = vrot.lane.b32.xlu1 %v3063_v16, %s2679_s9 }
 0xbf8   :  { %v1670_v39 = vpop.permute.xlu2 %1669 }
 0xbf9   :  { %v1681_v0 = vadd.f32 %v1670_v39, %v2754_v11 }
 0xbfb   :  { %v2197_v18 = vmul.f32 -1.442695, %v1681_v0 }
 0xbfd   :  { %2602 = vpow2.f32 %v2197_v18 }
 0xc03   :  { %v2603_v19 = vpop.eup %2602 }
 0xc04   :  { %v1694_v20 = vadd.f32 1.0, %v2603_v19 }
 0xc06   :  { %2604 = vrcp.f32 %v1694_v20  ;;  %vm1702_vm12 = vweird.f32 %v1694_v20  ;;  %v1708_v60 = vand.u32 2147483648, %v1694_v20  ;;  %v1706_v10 = vand.u32 2147483647, %v1694_v20 }
 0xc08   :  { %v1709_v36 = vor.u32 1.1754944e-38, %v1708_v60  ;;  %vm1707_vm5 = vcmp.eq.f32.partialorder %v1706_v10, 8.507059e+37 }
 0xc0c   :  { %v2605_v23 = vpop.eup %2604 }
 0xc0d   :  { %v1698_v32 = vmul.f32 %v2605_v23, %v1694_v20  ;;  %vm1703_vm11 = vweird.f32 %v2605_v23 }
 0xc0e   :  { %vm1704_vm14 = vmor %vm1702_vm12, %vm1703_vm11 }
 0xc0f   :  { %v1699_v40 = vsub.f32 1.0, %v1698_v32 }
 0xc10   :  { %v1676_v11 = vpop.permute.xlu2 %1675 }
 0xc11   :  { %v1684_v43 = vadd.f32 %v1676_v11, %v2763_v30  ;;  %v1700_v45 = vmul.f32 %v2605_v23, %v1699_v40 }
 0xc13   :  { %v1701_v47 = vadd.f32 %v2605_v23, %v1700_v45 }
 0xc15   :  { %v1705_v30 = vsel %vm1704_vm14, %v2605_v23, %v1701_v47 }
 0xc16   :  { %v1710_v56 = vsel %vm1707_vm5, %v1709_v36, %v1705_v30 }
 0xc18   :  { %v1672_v25 = vpop.permute.xlu0 %1671 }
 0xc19   :  { %v1682_v9 = vadd.f32 %v1672_v25, %v2757_v15 }
 0xc1b   :  { %v2198_v26 = vmul.f32 -1.442695, %v1682_v9 }
 0xc1d   :  { %2606 = vpow2.f32 %v2198_v26 }
 0xc20   :  { %v1674_v28 = vpop.permute.xlu1 %1673  ;;  %v1745_v58 = vpop.permute.xlu0 %1744 }
 0xc21   :  { %v1683_v29 = vadd.f32 %v1674_v28, %v2760_v17 }
 0xc23   :  { %v2607_v31 = vpop.eup %2606  ;;  %v2199_v38 = vmul.f32 -1.442695, %v1683_v29 }
 0xc24   :  { %v1695_v33 = vadd.f32 1.0, %v2607_v31 }
 0xc25   :  { %2608 = vpow2.f32 %v2199_v38 }
 0xc26   :  { %2610 = vrcp.f32 %v1695_v33  ;;  %v1723_v49 = vand.u32 2147483648, %v1695_v33  ;;  %v1721_v51 = vand.u32 2147483647, %v1695_v33  ;;  %vm1717_vm0 = vweird.f32 %v1695_v33 }
 0xc27   :  { %2612 = vtanh.f32 %v1684_v43 }
 0xc28   :  { %v1724_v37 = vor.u32 1.1754944e-38, %v1723_v49  ;;  %vm1722_vm6 = vcmp.eq.f32.partialorder %v1721_v51, 8.507059e+37 }
 0xc2b   :  { %v2609_v44 = vpop.eup %2608 }
 0xc2c   :  { %v2611_v15 = vpop.eup %2610  ;;  %v1696_v61 = vadd.f32 1.0, %v2609_v44 }
 0xc2d   :  { %v1713_v46 = vmul.f32 %v2611_v15, %v1695_v33  ;;  %vm1718_vm13 = vweird.f32 %v2611_v15  ;;  %v2613_v52 = vpop.eup %2612 }
 0xc2e   :  { %2614 = vrcp.f32 %v1696_v61  ;;  %vm1719_vm15 = vmor %vm1717_vm0, %vm1718_vm13  ;;  %v1748_v62 = vmul.f32 %v2613_v52, %v1710_v56  ;;  %v1738_v5 = vand.u32 2147483648, %v1696_v61  ;;  %vm1732_vm9 = vweird.f32 %v1696_v61 }
 0xc2f   :  { %v1714_v17 = vsub.f32 1.0, %v1713_v46  ;;  %v1736_v22 = vand.u32 2147483647, %v1696_v61 }
 0xc30   :  { %v1739_v14 = vor.u32 1.1754944e-38, %v1738_v5 }
 0xc31   :  { %v1715_v34 = vmul.f32 %v2611_v15, %v1714_v17  ;;  %vm1737_vm12 = vcmp.eq.f32.partialorder %v1736_v22, 8.507059e+37 }
 0xc33   :  { %v1716_v53 = vadd.f32 %v2611_v15, %v1715_v34 }
 0xc34   :  { %v2615_v35 = vpop.eup %2614 }
 0xc35   :  { %v1720_v54 = vsel %vm1719_vm15, %v2611_v15, %v1716_v53  ;;  %v1728_v55 = vmul.f32 %v2615_v35, %v1696_v61  ;;  %vm1733_vm2 = vweird.f32 %v2615_v35 }
 0xc36   :  { %v1725_v57 = vsel %vm1722_vm6, %v1724_v37, %v1720_v54  ;;  %vm1734_vm11 = vmor %vm1732_vm9, %vm1733_vm2 }
 0xc37   :  { %v1747_v59 = vmul.f32 %v1745_v58, %v1725_v57  ;;  %v1729_v63 = vsub.f32 1.0, %v1728_v55 }
 0xc39   :  { %v1749_v2 = vadd.f32 %v1748_v62, %v1747_v59  ;;  %v1730_v3 = vmul.f32 %v2615_v35, %v1729_v63 }
 0xc3b   :  { %2616 = vtanh.f32 %v1749_v2  ;;  %v1731_v4 = vadd.f32 %v2615_v35, %v1730_v3 }
 0xc3d   :  { %v1735_v27 = vsel %vm1734_vm11, %v2615_v35, %v1731_v4 }
 0xc3e   :  { %v1740_v39 = vsel %vm1737_vm12, %v1739_v14, %v1735_v27 }
 0xc41   :  { %v2617_v13 = vpop.eup %2616 }
 0xc42   :  { %v1751_v0 = vmul.f32 %v2617_v13, %v1740_v39 }
 0xc45   :  { %v1754_v18 = vpop.permute.xlu1 %1753 }
 0xc46   :  { %v2373_v19 = vpack.i.bf16 %v1754_v18, %v1751_v0 }
 0xc48   :  { %2374 = vrot.lane.b32.xlu1 %v2373_v19, %s2696_s2  ;;  %2369 = vrot.lane.b32.xlu0 %v2373_v19, %s2676_s28 }
 0xc49   :  { %2364 = vrot.lane.b32.xlu2 %v2373_v19, %s2697_s3 }
 0xc50   :  { %1869 = vrot.lane.b32.xlu1 %v2943_v42, %s2685_s15  ;;  %1866 = vrot.lane.b32.xlu0 %v2885_v7, %s2681_s11 }
 0xc51   :  { %1863 = vrot.lane.b32.xlu2 %v2851_v50, %s2676_s28 }
 0xc58   :  { %1878 = vrot.lane.b32.xlu1 %v3063_v16, %s2683_s13  ;;  %1875 = vrot.lane.b32.xlu0 %v3011_v48, %s2687_s17 }
 0xc59   :  { %1872 = vrot.lane.b32.xlu2 %v2977_v12, %s2689_s26  ;;  %s2006_s26 = sshll.u32 %s3114_s5, 4  ;;  %s2007_s26 = int_to_ptr.hbm [resolvable:$true] %s2006_s26 }
 0xca3   :  { %v2365_v20 = vpop.permute.xlu2 %2364 }
 0xca4   :  { %v2367_v25 = vunpack.i.h.bf16 %v2365_v20  ;;  %v2366_v9 = vunpack.i.l.bf16 %v2365_v20 }
 0xca6   :  { %v2201_v26 = vpack.c.bf16 %v2367_v25, %v2366_v9 }
 0xca8   :  { %2202 = vmatpush.bf16.msk.msra.mxu0 %vm2771_vm3, %v2201_v26 }
 0xcba   :  { %v2375_v7 = vpop.permute.xlu1 %2374  ;;  %v2370_v42 = vpop.permute.xlu0 %2369 }
 0xcbb   :  { %v2372_v23 = vunpack.i.h.bf16 %v2370_v42  ;;  %v2371_v50 = vunpack.i.l.bf16 %v2370_v42  ;;  %v2377_v28 = vunpack.i.h.bf16 %v2375_v7  ;;  %v2376_v29 = vunpack.i.l.bf16 %v2375_v7 }
 0xcbd   :  { %v1779_v16 = vpack.c.bf16 %v2372_v23, %v2371_v50  ;;  %v2206_v31 = vpack.c.bf16 %v2377_v28, %v2376_v29 }
 0xcbf   :  { %1787 = vmatpush.bf16.msra.mxu0 %v1779_v16 }
 0xcc2   :  { %v1867_v19 = vpop.permute.xlu0 %1866  ;;  %v1870_v20 = vpop.permute.xlu1 %1869 }
 0xcc3   :  { %2207 = vmatpush.bf16.msk.msra.mxu0 %vm2779_vm7, %v2206_v31 }
 0xcc6   :  { %2208 = vmatmul.msk.bf16.vlgmr.msra.gmra.mxu0 %vm220_vm10, %v3038_v6 }
 0xcca   :  { %v1876_v42 = vpop.permute.xlu0 %1875  ;;  %v1879_v50 = vpop.permute.xlu1 %1878 }
 0xcd6   :  { %2209 = vmatmul.msk.bf16.gmra.mxu0 %vm220_vm10, %v3049_v41 }
 0xd43   :  { %v1790_v8 = vpop.f32.mrf.mxu0 }
 0xd44   :  { %v2210_v12 = vmul.f32 -1.442695, %v1790_v8 }
 0xd46   :  { %2618 = vpow2.f32 %v2210_v12 }
 0xd4b   :  { %v1792_v48 = vpop.f32.mrf.mxu0 }
 0xd4c   :  { %v2619_v32 = vpop.eup %2618  ;;  %v2211_v38 = vmul.f32 -1.442695, %v1792_v48 }
 0xd4d   :  { %v1809_v33 = vadd.f32 1.0, %v2619_v32 }
 0xd4e   :  { %2620 = vpow2.f32 %v2211_v38 }
 0xd4f   :  { %2622 = vrcp.f32 %v1809_v33  ;;  %vm1817_vm7 = vweird.f32 %v1809_v33  ;;  %v1823_v34 = vand.u32 2147483648, %v1809_v33  ;;  %v1821_v52 = vand.u32 2147483647, %v1809_v33 }
 0xd51   :  { %v1824_v55 = vor.u32 1.1754944e-38, %v1823_v34  ;;  %vm1822_vm5 = vcmp.eq.f32.partialorder %v1821_v52, 8.507059e+37 }
 0xd53   :  { %v1795_v11 = vpop.f32.mrf.mxu0 }
 0xd54   :  { %v2621_v40 = vpop.eup %2620  ;;  %v2212_v43 = vmul.f32 -1.442695, %v1795_v11 }
 0xd55   :  { %v2623_v21 = vpop.eup %2622  ;;  %v1810_v44 = vadd.f32 1.0, %v2621_v40 }
 0xd56   :  { %v1813_v45 = vmul.f32 %v2623_v21, %v1809_v33  ;;  %2624 = vpow2.f32 %v2212_v43  ;;  %vm1818_vm3 = vweird.f32 %v2623_v21  ;;  %v34_v43 = vld [vmem:[%s3113_s4] sm:$0x1] }
 0xd57   :  { %2626 = vrcp.f32 %v1810_v44  ;;  %v1838_v10 = vand.u32 2147483648, %v1810_v44  ;;  %v1836_v30 = vand.u32 2147483647, %v1810_v44  ;;  %vm1819_vm14 = vmor %vm1817_vm7, %vm1818_vm3  ;;  %vm1832_vm0 = vweird.f32 %v1810_v44 }
 0xd58   :  { %v1814_v6 = vsub.f32 1.0, %v1813_v45  ;;  %vm1885_vm3 = vcmask 130048   ;;  %vm1887_vm7 = vcmask 261120  }
 0xd59   :  { %v1839_v54 = vor.u32 1.1754944e-38, %v1838_v10  ;;  %vm1837_vm6 = vcmp.eq.f32.partialorder %v1836_v30, 8.507059e+37 }
 0xd5a   :  { %v1815_v61 = vmul.f32 %v2623_v21, %v1814_v6  ;;  %v2698_v6 = vmov 128.0  }
 0xd5b   :  { %v1797_v15 = vpop.f32.mrf.mxu0 }
 0xd5c   :  { %v2625_v41 = vpop.eup %2624  ;;  %2628 = vtanh.f32 %v1797_v15  ;;  %v1816_v49 = vadd.f32 %v2623_v21, %v1815_v61 }
 0xd5d   :  { %v2627_v46 = vpop.eup %2626  ;;  %v1811_v47 = vadd.f32 1.0, %v2625_v41 }
 0xd5e   :  { %v1828_v17 = vmul.f32 %v2627_v46, %v1810_v44  ;;  %vm1833_vm13 = vweird.f32 %v2627_v46  ;;  %v1820_v35 = vsel %vm1819_vm14, %v2623_v21, %v1816_v49  ;;  %vm1892_vm14 = vcmask 654336  }
 0xd5f   :  { %2630 = vrcp.f32 %v1811_v47  ;;  %vm1834_vm15 = vmor %vm1832_vm0, %vm1833_vm13  ;;  %v1825_v58 = vsel %vm1822_vm5, %v1824_v55, %v1820_v35  ;;  %v1853_v22 = vand.u32 2147483648, %v1811_v47  ;;  %vm1847_vm9 = vweird.f32 %v1811_v47 }
 0xd60   :  { %v1829_v60 = vsub.f32 1.0, %v1828_v17  ;;  %v1851_v27 = vand.u32 2147483647, %v1811_v47  ;;  %vm1890_vm13 = vcmask 523264   ;;  %vm1894_vm0 = vcmask 785408  }
 0xd61   :  { %v1854_v14 = vor.u32 1.1754944e-38, %v1853_v22 }
 0xd62   :  { %v1830_v51 = vmul.f32 %v2627_v46, %v1829_v60  ;;  %v2629_v53 = vpop.eup %2628  ;;  %vm1852_vm12 = vcmp.eq.f32.partialorder %v1851_v27, 8.507059e+37 }
 0xd63   :  { %v1859_v63 = vmul.f32 %v2629_v53, %v1825_v58 }
 0xd64   :  { %v1831_v36 = vadd.f32 %v2627_v46, %v1830_v51 }
 0xd65   :  { %v2631_v37 = vpop.eup %2630 }
 0xd66   :  { %v1843_v56 = vmul.f32 %v2631_v37, %v1811_v47  ;;  %v1835_v57 = vsel %vm1834_vm15, %v2627_v46, %v1831_v36  ;;  %vm1848_vm2 = vweird.f32 %v2631_v37  ;;  %vm1896_vm15 = vcmask 916480  }
 0xd67   :  { %v1840_v59 = vsel %vm1837_vm6, %v1839_v54, %v1835_v57  ;;  %vm1849_vm11 = vmor %vm1847_vm9, %vm1848_vm2  ;;  %vm3122_vm2 = vcmask 1040384  }
 0xd68   :  { %v1858_v62 = vmul.f32 %v1840_v59, %v3060_v1  ;;  %v1844_v2 = vsub.f32 1.0, %v1843_v56  ;;  %v1864_v1 = vpop.permute.xlu2 %1863 }
 0xd69   :  { %v1886_v25 = vsel %vm1885_vm3, %v2817_v24, %v1864_v1  ;;  %v1898_v24 = vlaneseq }
 0xd6a   :  { %v1860_v3 = vadd.f32 %v1859_v63, %v1858_v62  ;;  %v1845_v4 = vmul.f32 %v2631_v37, %v1844_v2  ;;  %v1888_v9 = vsel %vm1887_vm7, %v1886_v25, %v1867_v19 }
 0xd6b   :  { %v1889_v7 = vsel %vm220_vm10, %v1888_v9, %v1870_v20  ;;  %v1899_v8 = vand.u32 127, %v1898_v24 }
 0xd6c   :  { %2632 = vtanh.f32 %v1860_v3  ;;  %v1846_v5 = vadd.f32 %v2631_v37, %v1845_v4 }
 0xd6d   :  { %v1904_v12 = vand.u32 15, %v1899_v8  ;;  %2634 = vrcp.f32 %v2698_v6 }
 0xd6e   :  { %v1850_v13 = vsel %vm1849_vm11, %v2631_v37, %v1846_v5 }
 0xd6f   :  { %v1855_v0 = vsel %vm1852_vm12, %v1854_v14, %v1850_v13  ;;  %vm1916_vm5 = vcmp.eq.s32.totalorder %v1904_v12, 15  ;;  %vm2224_vm10 = vcmp.ne.s32.totalorder %v1904_v12, 0 }
 0xd70   :  { %v1873_v26 = vpop.permute.xlu2 %1872  ;;  %vm2214_vm6 = vmpackc.low %vm2677_vm8, %vm2224_vm10 }
 0xd71   :  { %v1891_v23 = vsel %vm1890_vm13, %v1889_v7, %v1873_v26 }
 0xd72   :  { %v2633_v39 = vpop.eup %2632  ;;  %v1893_v28 = vsel %vm1892_vm14, %v1891_v23, %v1876_v42 }
 0xd73   :  { %v1862_v18 = vmul.f32 %v2633_v39, %v1855_v0  ;;  %v1895_v16 = vsel %vm1894_vm0, %v1893_v28, %v1879_v50  ;;  %v2635_v15 = vpop.eup %2634 }
 0xd74   :  { %v1952_v41 = vmul.f32 128.0, %v2635_v15 }
 0xd75   :  { %1882 = vrot.lane.b32.xlu2 %v1862_v18, %s2679_s9 }
 0xd76   :  { %v1953_v61 = vsub.f32 1.0, %v1952_v41 }
 0xd78   :  { %v1954_v60 = vmul.f32 %v2635_v15, %v1953_v61 }
 0xd7a   :  { %v1955_v34 = vadd.f32 %v2635_v15, %v1954_v60 }
 0xdcf   :  { %v1883_v29 = vpop.permute.xlu2 %1882 }
 0xdd0   :  { %v1897_v31 = vsel %vm1896_vm15, %v1895_v16, %v1883_v29 }
 0xdd1   :  { %1913 = vrot.lane.b32.xlu1 %v1897_v31, %s2675_s27  ;;  %1917 = vrot.lane.b32.xlu0 %v1897_v31, %s2674_s1 }
 0xe43   :  { %v1918_v48 = vpop.permute.xlu0 %1917  ;;  %v1914_v33 = vpop.permute.xlu1 %1913 }
 0xe44   :  { %v1919_v32 = vsel %vm1916_vm5, 0.0, %v1918_v48  ;;  %v2215_v40 = vpack.c.bf16 %v1897_v31, %v1914_v33 }
 0xe45   :  { %v1921_v38 = vpack.c.bf16 %v1919_v32, %v1919_v32 }
 0xe47   :  { %v1926_v11 = vsel %vm97_vm4, %v1921_v38, 0  ;;  %vm1956_vm4 = vweird.f32 %v2635_v15 }
 0xe48   :  { %1934 = vmatpush.bf16.msra.mxu1 %v1926_v11  ;;  %v1957_v30 = vsel %vm1956_vm4, %v2635_v15, %v1955_v34 }
 0xe4c   :  { %2216 = vmatpush.bf16.msk.msra.mxu1 %vm2214_vm6, %v2215_v40 }
 0xe4f   :  { %2217 = vmatmul.msk.bf16.vlgmr.msra.gmra.mxu1 %vm90_vm1, %v34_v43  ;;  %vm3123_vm1 = vmmov %vm3122_vm2 }
 0xecc   :  { %v1937_v21 = vpop.f32.mrf.mxu1 }
 0xecd   :  { %v1941_v44 = vsel %vm3122_vm2, %v1937_v21, 0.0 }
 0xece   :  { %1942 = vadd.xlane.f32.xlu2 %v1941_v44 }
 0xed4   :  { %v1939_v45 = vpop.f32.mrf.mxu1 }
 0xf41   :  { %v1943_v46 = vpop.xlane.xlu2 %1942 }
 0xf42   :  { %v1944_v47 = vrot.slane %v1943_v46, 4 }
 0xf44   :  { %v1945_v17 = vadd.f32 %v1944_v47, %v1943_v46 }
 0xf46   :  { %v1946_v49 = vrot.slane %v1945_v17, 2 }
 0xf48   :  { %v1947_v10 = vadd.f32 %v1946_v49, %v1945_v17 }
 0xf4a   :  { %v1948_v51 = vrot.slane %v1947_v10, 1 }
 0xf4c   :  { %v1949_v52 = vadd.f32 %v1948_v51, %v1947_v10 }
 0xf4e   :  { %2226 = vpush %v1949_v52 }
 0xf4f   :  { %2228 = vpush %v1957_v30 }
 0xf7f   :  { %s2227_s4 = spop %2226 }
 0xf80   :  { %s2229_s1 = spop %2228 }
 0xf81   :  { %s1959_s9 = smul.f32 %s2229_s1, %s2227_s4 }
 0xf83   :  { %v1960_v53 = vstv %s1959_s9 }
 0xf84   :  { %v1961_v35 = vsub.f32 %v1937_v21, %v1960_v53 }
 0xf86   :  { %v1962_v36 = vmul.f32 %v1961_v35, %v1961_v35 }
 0xf88   :  { %v1963_v37 = vsel %vm3123_vm1, %v1962_v36, 0.0 }
 0xf89   :  { %1964 = vadd.xlane.f32.xlu0 %v1963_v37 }
 0xffc   :  { %v1965_v54 = vpop.xlane.xlu0 %1964 }
 0xffd   :  { %v1966_v55 = vrot.slane %v1965_v54, 4 }
 0xfff   :  { %v1967_v56 = vadd.f32 %v1966_v55, %v1965_v54 }
0x1001   :  { %v1968_v57 = vrot.slane %v1967_v56, 2 }
0x1003   :  { %v1969_v58 = vadd.f32 %v1968_v57, %v1967_v56 }
0x1005   :  { %v1970_v59 = vrot.slane %v1969_v58, 1 }
0x1007   :  { %v1971_v62 = vadd.f32 %v1970_v59, %v1969_v58 }
0x1009   :  { %2230 = vpush %v1971_v62 }
0x103a   :  { %s2231_s11 = spop %2230 }
0x103b   :  { %s1981_s13 = smul.f32 %s2231_s11, %s2229_s1 }
0x103d   :  { %s1982_s15 = sadd.f32 1e-05, %s1981_s13 }
0x103f   :  { %v1983_v63 = vstv %s1982_s15 }
0x1040   :  { %2636 = vrsqrt.f32 %v1983_v63  ;;  %vm1990_vm9 = vweird.f32 %v1983_v63 }
0x1046   :  { %v2637_v2 = vpop.eup %2636 }
0x1047   :  { %v1985_v3 = vmul.f32 %v2637_v2, %v1983_v63  ;;  %vm1991_vm8 = vweird.f32 %v2637_v2 }
0x1048   :  { %vm1992_vm11 = vmor %vm1990_vm9, %vm1991_vm8 }
0x1049   :  { %v1986_v4 = vmul.f32 %v2637_v2, %v1985_v3 }
0x104b   :  { %v1987_v5 = vmul.f32 0.5, %v1986_v4 }
0x104d   :  { %v1988_v22 = vsub.f32 1.5, %v1987_v5 }
0x104f   :  { %v1989_v27 = vmul.f32 %v2637_v2, %v1988_v22 }
0x1051   :  { %v1993_v13 = vsel %vm1992_vm11, %v2637_v2, %v1989_v27 }
0x1052   :  { %2232 = vpush %v1993_v13 }
0x1083   :  { %s2233_s17 = spop %2232 }
0x1084   :  { %v1995_v14 = vstv %s2233_s17 }
0x1085   :  { %v1996_v39 = vmul.f32 %v1995_v14, %v1961_v35 }
0x1087   :  { %v1997_v0 = vmax.f32 %v1996_v39, 0.0 }
0x1089   :  { %1998 = vst [vmem:[#allocation2] sm:$0x1] %v1997_v0 }
0x108a   :  { %2009 = dma.vmem_to_hbm [thread:$0]  %s2005_s24, 16, %s2007_s26, [#allocation3]  }
0x108b   :  { %2670 = dma.done.wait [#allocation3], 16  }
0x108c   :  { %2671 = vsyncadd [#allocation3], 4294967280 }
0x108d   :  { %2014 = vsyncpa [#allocation3], 1 }

</bundles_post_ra>
